<compile_context>
chip_gen: v6e
topology: v6e:2x2x1
jax: 0.10.0
libtpu: 0.0.40
codegen_flags: <defaults>
</compile_context>

<pallas_src>
import jax
import jax.numpy as jnp
from jax.experimental import pallas as pl
from jax.experimental.pallas import tpu as pltpu

VOCAB = 128
EMB = 32
HID = 32
PAD = 0

_VMEM = pl.BlockSpec(memory_space=pltpu.MemorySpace.VMEM)


# ---------------------------------------------------------------------------
# The fused kernel.
# ---------------------------------------------------------------------------
def seq2seq_kernel(xpe_ref, xpd_ref, len_ref, wa_ref, wkv_ref, batt_ref,
                   out_ref, enc_sc, dec_sc):
    B, S, _ = xpe_ref.shape
    T = xpd_ref.shape[1]
    H = HID
    V = out_ref.shape[-1]

    lens = len_ref[...]                     # (B, 2) int32
    src_len = lens[:, 0:1]                  # (B, 1)
    tgt_len = lens[:, 1:2]                  # (B, 1)

    # Packed weights (bf16), loaded once as static lane slices of one buffer.
    whh_f = wa_ref[:, 0:4 * H]                                   # (H, 4H)
    whh_b = wa_ref[:, 4 * H:8 * H]                               # (H, 4H)
    whh_d = wa_ref[:, 8 * H:12 * H]                              # (H, 4H)
    head_wt = wa_ref[:, 12 * H:12 * H + V]                       # (H, V)
    w_qpd = wa_ref[:, 12 * H + V:12 * H + V + 2 * H]             # (H, 2H) [wq^T | wpd^T]
    w_pa = wa_ref[:, 12 * H + V + 2 * H:12 * H + V + 3 * H]      # (H, H)

    def cell(gates, h_prev, c_prev, m):
        # One full-width sigmoid + one full-width tanh per step; slice after.
        sg = jax.nn.sigmoid(gates)
        th = jnp.tanh(gates)
        i_g = sg[:, 0:H]
        f_g = sg[:, H:2 * H]
        g_g = th[:, 2 * H:3 * H]
        o_g = sg[:, 3 * H:4 * H]
        c_new = f_g * c_prev + i_g * g_g
        h_new = o_g * jnp.tanh(c_new)
        # pack_padded semantics: freeze state and zero output past each length.
        h_out = jnp.where(m, h_new, h_prev)
        c_out = jnp.where(m, c_new, c_prev)
        y = jnp.where(m, h_new, 0.0)
        return h_out, c_out, y

    zeros = jnp.zeros((B, H), jnp.float32)
    h_f, c_f = zeros, zeros
    h_b, c_b = zeros, zeros

    # ---- fused bidirectional encoder LSTM (static unroll; both directions
    # interleaved; per-step outputs streamed straight into VMEM scratch) ----
    for s in range(S):
        tb = S - 1 - s
        m_f = src_len > s
        m_b = src_len > tb
        # gate pre-activations (embedding + x@W_ih + bias) come pre-computed
        # per token; only h @ W_hh sits on the recurrent critical path.
        g_f = xpe_ref[:, s, 0:4 * H] + jnp.dot(
            h_f.astype(jnp.bfloat16), whh_f, preferred_element_type=jnp.float32)
        g_b = xpe_ref[:, tb, 4 * H:8 * H] + jnp.dot(
            h_b.astype(jnp.bfloat16), whh_b, preferred_element_type=jnp.float32)
        h_f, c_f, y_f = cell(g_f, h_f, c_f, m_f)
        h_b, c_b, y_b = cell(g_b, h_b, c_b, m_b)
        enc_sc[:, s, 0:H] = y_f
        enc_sc[:, tb, H:2 * H] = y_b

    # ---- decoder LSTM, init state = encoder forward-direction final memory ----
    h, c = h_f, c_f
    for t in range(T):
        m = tgt_len > t
        g = xpd_ref[:, t, :] + jnp.dot(
            h.astype(jnp.bfloat16), whh_d, preferred_element_type=jnp.float32)
        h, c, y = cell(g, h, c, m)
        dec_sc[:, t, :] = y

    # ---- attention + projections + vocab head (all batches at once) ----
    enc = enc_sc[...].reshape(B * S, 2 * H).astype(jnp.bfloat16)   # (B*S, 2H)
    dec = dec_sc[...].reshape(B * T, H).astype(jnp.bfloat16)       # (B*T, H)

    b_qp = batt_ref[:, 0:2 * H]           # (1, 2H) = [bq | bp]
    b_kv = batt_ref[:, 2 * H:4 * H]       # (1, 2H) = [bk | bv]

    kv = jnp.dot(enc, wkv_ref[...], preferred_element_type=jnp.float32) + b_kv
    k = kv[:, 0:H].reshape(B, S, H)
    v = kv[:, H:2 * H].reshape(B, S, H)

    qpd = jnp.dot(dec, w_qpd, preferred_element_type=jnp.float32) + b_qp
    q = qpd[:, 0:H].reshape(B, T, H)
    p_dec = qpd[:, H:2 * H]               # (B*T, H): dec @ wpd^T + bp

    # NOTE: no padding mask on the scores — matches the PyTorch reference.
    scores = jnp.einsum('btd,bsd->bts', q.astype(jnp.bfloat16),
                        k.astype(jnp.bfloat16),
                        preferred_element_type=jnp.float32)        # (B, T, S)
    scores = scores - jnp.max(scores, axis=-1, keepdims=True)
    e = jnp.exp(scores)
    dist = e / jnp.sum(e, axis=-1, keepdims=True)
    att = jnp.einsum('bts,bsd->btd', dist.astype(jnp.bfloat16),
                     v.astype(jnp.bfloat16),
                     preferred_element_type=jnp.float32)           # (B, T, H)

    out = p_dec + jnp.dot(att.reshape(B * T, H).astype(jnp.bfloat16), w_pa,
                          preferred_element_type=jnp.float32)      # (B*T, H)
    logits = jnp.dot(out.astype(jnp.bfloat16), head_wt,
                     preferred_element_type=jnp.float32)           # (B*T, V)
    out_ref[...] = logits.reshape(B, T, V)


def seq2seq_call(xpe, xpd, lens, wa, wkv, b_att):
    B, S, _ = xpe.shape
    T = xpd.shape[1]
    return pl.pallas_call(
        seq2seq_kernel,
        out_shape=jax.ShapeDtypeStruct((B, T, VOCAB), jnp.float32),
        in_specs=[_VMEM] * 6,
        out_specs=_VMEM,
        scratch_shapes=[pltpu.VMEM((B, S, 2 * HID), jnp.float32),   # encoder outputs
                        pltpu.VMEM((B, T, HID), jnp.float32)],      # decoder outputs
    )(xpe, xpd, lens, wa, wkv, b_att)


# ---------------------------------------------------------------------------
# Parameters (deterministic synthetic init; torch weight layouts) + packing.
# ---------------------------------------------------------------------------
def init_params(key):
    ks = jax.random.split(key, 24)

    def nrm(k, shape, scale=0.1):
        return jax.random.normal(k, shape, jnp.float32) * scale

    p = {}
    src_emb = nrm(ks[0], (VOCAB, EMB), 1.0)
    p['src_emb'] = src_emb.at[PAD].set(0.0)          # nn.Embedding(padding_idx=0)
    p['head_w'] = nrm(ks[1], (VOCAB, HID))           # nn.Linear(HID, VOCAB, bias=False).weight
    p['tgt_emb'] = p['head_w']                       # weight tying

    for name, k0 in [('enc_f', 2), ('enc_b', 6), ('dec', 10)]:
        p[name + '_wih'] = nrm(ks[k0 + 0], (4 * HID, EMB))
        p[name + '_whh'] = nrm(ks[k0 + 1], (4 * HID, HID))
        p[name + '_bih'] = nrm(ks[k0 + 2], (4 * HID,))
        p[name + '_bhh'] = nrm(ks[k0 + 3], (4 * HID,))

    p['wq'] = nrm(ks[14], (HID, HID));     p['bq'] = nrm(ks[15], (HID,))
    p['wk'] = nrm(ks[16], (HID, 2 * HID)); p['bk'] = nrm(ks[17], (HID,))
    p['wv'] = nrm(ks[18], (HID, 2 * HID)); p['bv'] = nrm(ks[19], (HID,))
    p['wp'] = nrm(ks[20], (HID, 2 * HID)); p['bp'] = nrm(ks[21], (HID,))
    return p


def pack_params(p):
    """One-time weight packing / pre-projection (runs once, outside the jitted
    forward): fuses embedding + W_ih + gate bias into gather tables, stacks
    everything else into 3 contiguous bf16 buffers + one f32 bias row."""
    def lstm_parts(prefix):
        wih_t = p[prefix + '_wih'].T                                  # (E, 4H)
        whh_t = p[prefix + '_whh'].T                                  # (H, 4H)
        b = (p[prefix + '_bih'] + p[prefix + '_bhh'])[None, :]        # (1, 4H)
        return wih_t, whh_t, b

    wih_f, whh_f, b_f = lstm_parts('enc_f')
    wih_b, whh_b, b_b = lstm_parts('enc_b')
    wih_d, whh_d, b_d = lstm_parts('dec')

    # Per-token gate-input tables: table[id] == emb[id] @ W_ih^T + (b_ih+b_hh).
    enc_tab = jnp.concatenate([p['src_emb'] @ wih_f + b_f,
                               p['src_emb'] @ wih_b + b_b], axis=-1)  # (V, 8H)
    dec_tab = p['tgt_emb'] @ wih_d + b_d                              # (V, 4H)

    wp = p['wp']                                                      # (H, 2H)
    wa = jnp.concatenate(
        [whh_f, whh_b, whh_d,        # (H, 12H) recurrent weights
         p['head_w'].T,              # (H, V)   vocab head (tied)
         p['wq'].T,                  # (H, H)   query projection
         wp[:, :HID].T,              # (H, H)   attention-proj, decoder part
         wp[:, HID:].T],             # (H, H)   attention-proj, attention part
        axis=-1).astype(jnp.bfloat16)                                 # (H, 15H+V)

    wkv = jnp.concatenate([p['wk'].T, p['wv'].T],
                          axis=-1).astype(jnp.bfloat16)               # (2H, 2H)
    b_att = jnp.concatenate([p['bq'], p['bp'],
                             p['bk'], p['bv']])[None, :]              # (1, 4H)

    return {'enc_tab': enc_tab.astype(jnp.float32),
            'dec_tab': dec_tab.astype(jnp.float32),
            'wa': wa, 'wkv': wkv,
            'b_att': b_att.astype(jnp.float32)}


def forward(packed, src, tgt):
    # NOTE: tensor_trimming is a no-op here (at least one sample spans full
    # length); pack/pad semantics are handled by the in-kernel length masks.
    src_len = (src != PAD).sum(axis=1).astype(jnp.int32)
    tgt_len = (tgt != PAD).sum(axis=1).astype(jnp.int32)
    lens = jnp.stack([src_len, tgt_len], axis=1)                      # (B, 2)

    # Embedding lookup + input-to-gate projection + gate bias, as a single
    # gather per side from the pre-projected tables built in pack_params().
    xpe = packed['enc_tab'][src]                                      # (B, S, 8H)
    xpd = packed['dec_tab'][tgt]                                      # (B, T, 4H)
    # TODO(synk): SpatialDropout / attention Dropout treated as identity (eval mode).
    return seq2seq_call(xpe, xpd, lens,
                        packed['wa'], packed['wkv'], packed['b_att'])


if __name__ == "__main__":
    key = jax.random.PRNGKey(0)
    B, S, T = 2, 8, 8
    pk, sk, tk = jax.random.split(key, 3)
    params = init_params(pk)
    packed = pack_params(params)

    src = jax.random.randint(sk, (B, S), 1, VOCAB, dtype=jnp.int32)
    tgt = jax.random.randint(tk, (B, T), 1, VOCAB, dtype=jnp.int32)
    src = src.at[1, 6:].set(PAD)   # sample 1 has length 6; sample 0 is full-length
    tgt = tgt.at[1, 5:].set(PAD)   # sample 1 has length 5; sample 0 is full-length

    logits = jax.jit(forward)(packed, src, tgt)
    jax.block_until_ready(logits)
    assert logits.shape == (B, T, VOCAB)
    assert jnp.all(jnp.isfinite(logits))
    print("KERNEL_OK")
</pallas_src>

<mosaic_0001>
module attributes {stable_mosaic.version = 11 : i64} {
  func.func @seq2seq_kernel(%arg0: memref<2x8x256xf32, #tpu.memory_space<vmem>>, %arg1: memref<2x8x128xf32, #tpu.memory_space<vmem>>, %arg2: memref<2x2xi32, #tpu.memory_space<vmem>>, %arg3: memref<32x608xbf16, #tpu.memory_space<vmem>>, %arg4: memref<64x64xbf16, #tpu.memory_space<vmem>>, %arg5: memref<1x128xf32, #tpu.memory_space<vmem>>, %arg6: memref<2x8x128xf32, #tpu.memory_space<vmem>>, %arg7: memref<2x8x64xf32, #tpu.memory_space<vmem>>, %arg8: memref<2x8x32xf32, #tpu.memory_space<vmem>>) attributes {dimension_semantics = [], scalar_prefetch = 0 : i64, scratch_operands = 2 : i64, tpu.core_type = #tpu.core_type<tc>} {
    %c0 = arith.constant 0 : index
    %c0_0 = arith.constant 0 : index
    %0 = vector.load %arg2[%c0, %c0_0] : memref<2x2xi32, #tpu.memory_space<vmem>>, vector<2x2xi32>
    %1 = vector.extract_strided_slice %0 {offsets = [0, 0], sizes = [2, 1], strides = [1, 1]} : vector<2x2xi32> to vector<2x1xi32>
    %2 = vector.extract_strided_slice %0 {offsets = [0, 1], sizes = [2, 1], strides = [1, 1]} : vector<2x2xi32> to vector<2x1xi32>
    %c0_1 = arith.constant 0 : index
    %c0_2 = arith.constant 0 : index
    %3 = vector.load %arg3[%c0_1, %c0_2] : memref<32x608xbf16, #tpu.memory_space<vmem>>, vector<32x128xbf16>
    %c0_3 = arith.constant 0 : index
    %c128 = arith.constant 128 : index
    %4 = vector.load %arg3[%c0_3, %c128] : memref<32x608xbf16, #tpu.memory_space<vmem>>, vector<32x128xbf16>
    %c0_4 = arith.constant 0 : index
    %c256 = arith.constant 256 : index
    %5 = vector.load %arg3[%c0_4, %c256] : memref<32x608xbf16, #tpu.memory_space<vmem>>, vector<32x128xbf16>
    %c0_5 = arith.constant 0 : index
    %c384 = arith.constant 384 : index
    %6 = vector.load %arg3[%c0_5, %c384] : memref<32x608xbf16, #tpu.memory_space<vmem>>, vector<32x128xbf16>
    %c0_6 = arith.constant 0 : index
    %c512 = arith.constant 512 : index
    %7 = vector.load %arg3[%c0_6, %c512] : memref<32x608xbf16, #tpu.memory_space<vmem>>, vector<32x64xbf16>
    %c0_7 = arith.constant 0 : index
    %c576 = arith.constant 576 : index
    %8 = vector.load %arg3[%c0_7, %c576] : memref<32x608xbf16, #tpu.memory_space<vmem>>, vector<32x32xbf16>
    %cst = arith.constant 0.000000e+00 : f32
    %9 = vector.broadcast %cst : f32 to vector<2x32xf32>
    %c0_i32 = arith.constant 0 : i32
    %10 = vector.broadcast %c0_i32 : i32 to vector<2x1xi32>
    %11 = arith.cmpi sgt, %1, %10 : vector<2x1xi32>
    %c7_i32 = arith.constant 7 : i32
    %12 = vector.broadcast %c7_i32 : i32 to vector<2x1xi32>
    %13 = arith.cmpi sgt, %1, %12 : vector<2x1xi32>
    %c0_8 = arith.constant 0 : index
    %c0_9 = arith.constant 0 : index
    %c0_10 = arith.constant 0 : index
    %14 = vector.load %arg0[%c0_8, %c0_9, %c0_10] : memref<2x8x256xf32, #tpu.memory_space<vmem>>, vector<2x1x128xf32>
    %15 = vector.shape_cast %14 : vector<2x1x128xf32> to vector<2x128xf32>
    %16 = arith.truncf %9 : vector<2x32xf32> to vector<2x32xbf16>
    %cst_11 = arith.constant dense<0.000000e+00> : vector<2x128xf32>
    %17 = tpu.matmul %16, %3, %cst_11 {dimension_numbers = #tpu.dot_dimension_numbers<[1], [0], [0], [1], [0, 0, 1, 1], [], []>} : vector<2x32xbf16>, vector<32x128xbf16>, vector<2x128xf32> -> vector<2x128xf32>
    %18 = arith.addf %15, %17 : vector<2x128xf32>
    %c0_12 = arith.constant 0 : index
    %c7 = arith.constant 7 : index
    %c128_13 = arith.constant 128 : index
    %19 = vector.load %arg0[%c0_12, %c7, %c128_13] : memref<2x8x256xf32, #tpu.memory_space<vmem>>, vector<2x1x128xf32>
    %20 = vector.shape_cast %19 : vector<2x1x128xf32> to vector<2x128xf32>
    %21 = arith.truncf %9 : vector<2x32xf32> to vector<2x32xbf16>
    %cst_14 = arith.constant dense<0.000000e+00> : vector<2x128xf32>
    %22 = tpu.matmul %21, %4, %cst_14 {dimension_numbers = #tpu.dot_dimension_numbers<[1], [0], [0], [1], [0, 0, 1, 1], [], []>} : vector<2x32xbf16>, vector<32x128xbf16>, vector<2x128xf32> -> vector<2x128xf32>
    %23 = arith.addf %20, %22 : vector<2x128xf32>
    %24 = arith.negf %18 : vector<2x128xf32>
    %25 = math.exp %24 : vector<2x128xf32>
    %cst_15 = arith.constant 1.000000e+00 : f32
    %26 = vector.broadcast %cst_15 : f32 to vector<2x128xf32>
    %27 = arith.addf %26, %25 : vector<2x128xf32>
    %28 = arith.divf %26, %27 : vector<2x128xf32>
    %29 = math.tanh %18 : vector<2x128xf32>
    %30 = vector.extract_strided_slice %28 {offsets = [0, 0], sizes = [2, 32], strides = [1, 1]} : vector<2x128xf32> to vector<2x32xf32>
    %31 = vector.extract_strided_slice %28 {offsets = [0, 32], sizes = [2, 32], strides = [1, 1]} : vector<2x128xf32> to vector<2x32xf32>
    %32 = vector.extract_strided_slice %29 {offsets = [0, 64], sizes = [2, 32], strides = [1, 1]} : vector<2x128xf32> to vector<2x32xf32>
    %33 = vector.extract_strided_slice %28 {offsets = [0, 96], sizes = [2, 32], strides = [1, 1]} : vector<2x128xf32> to vector<2x32xf32>
    %34 = arith.mulf %31, %9 : vector<2x32xf32>
    %35 = arith.mulf %30, %32 : vector<2x32xf32>
    %36 = arith.addf %34, %35 : vector<2x32xf32>
    %37 = math.tanh %36 : vector<2x32xf32>
    %38 = arith.mulf %33, %37 : vector<2x32xf32>
    %39 = vector.shape_cast %11 : vector<2x1xi1> to vector<2x1xi1>
    %40 = vector.broadcast %39 : vector<2x1xi1> to vector<2x32xi1>
    %41 = arith.select %40, %38, %9 : vector<2x32xi1>, vector<2x32xf32>
    %42 = vector.shape_cast %11 : vector<2x1xi1> to vector<2x1xi1>
    %43 = vector.broadcast %42 : vector<2x1xi1> to vector<2x32xi1>
    %44 = arith.select %43, %36, %9 : vector<2x32xi1>, vector<2x32xf32>
    %cst_16 = arith.constant 0.000000e+00 : f32
    %45 = vector.shape_cast %11 : vector<2x1xi1> to vector<2x1xi1>
    %46 = vector.broadcast %45 : vector<2x1xi1> to vector<2x32xi1>
    %47 = vector.broadcast %cst_16 : f32 to vector<2x32xf32>
    %48 = arith.select %46, %38, %47 : vector<2x32xi1>, vector<2x32xf32>
    %49 = arith.negf %23 : vector<2x128xf32>
    %50 = math.exp %49 : vector<2x128xf32>
    %cst_17 = arith.constant 1.000000e+00 : f32
    %51 = vector.broadcast %cst_17 : f32 to vector<2x128xf32>
    %52 = arith.addf %51, %50 : vector<2x128xf32>
    %53 = arith.divf %51, %52 : vector<2x128xf32>
    %54 = math.tanh %23 : vector<2x128xf32>
    %55 = vector.extract_strided_slice %53 {offsets = [0, 0], sizes = [2, 32], strides = [1, 1]} : vector<2x128xf32> to vector<2x32xf32>
    %56 = vector.extract_strided_slice %53 {offsets = [0, 32], sizes = [2, 32], strides = [1, 1]} : vector<2x128xf32> to vector<2x32xf32>
    %57 = vector.extract_strided_slice %54 {offsets = [0, 64], sizes = [2, 32], strides = [1, 1]} : vector<2x128xf32> to vector<2x32xf32>
    %58 = vector.extract_strided_slice %53 {offsets = [0, 96], sizes = [2, 32], strides = [1, 1]} : vector<2x128xf32> to vector<2x32xf32>
    %59 = arith.mulf %56, %9 : vector<2x32xf32>
    %60 = arith.mulf %55, %57 : vector<2x32xf32>
    %61 = arith.addf %59, %60 : vector<2x32xf32>
    %62 = math.tanh %61 : vector<2x32xf32>
    %63 = arith.mulf %58, %62 : vector<2x32xf32>
    %64 = vector.shape_cast %13 : vector<2x1xi1> to vector<2x1xi1>
    %65 = vector.broadcast %64 : vector<2x1xi1> to vector<2x32xi1>
    %66 = arith.select %65, %63, %9 : vector<2x32xi1>, vector<2x32xf32>
    %67 = vector.shape_cast %13 : vector<2x1xi1> to vector<2x1xi1>
    %68 = vector.broadcast %67 : vector<2x1xi1> to vector<2x32xi1>
    %69 = arith.select %68, %61, %9 : vector<2x32xi1>, vector<2x32xf32>
    %cst_18 = arith.constant 0.000000e+00 : f32
    %70 = vector.shape_cast %13 : vector<2x1xi1> to vector<2x1xi1>
    %71 = vector.broadcast %70 : vector<2x1xi1> to vector<2x32xi1>
    %72 = vector.broadcast %cst_18 : f32 to vector<2x32xf32>
    %73 = arith.select %71, %63, %72 : vector<2x32xi1>, vector<2x32xf32>
    %c0_19 = arith.constant 0 : index
    %c0_20 = arith.constant 0 : index
    %c0_21 = arith.constant 0 : index
    %74 = vector.load %arg7[%c0_19, %c0_20, %c0_21] : memref<2x8x64xf32, #tpu.memory_space<vmem>>, vector<2x1x32xf32>
    %75 = vector.shape_cast %74 : vector<2x1x32xf32> to vector<2x32xf32>
    %76 = vector.shape_cast %48 : vector<2x32xf32> to vector<2x1x32xf32>
    tpu.vector_store %arg7[%c0_19, %c0_20, %c0_21], %76 {strides = array<i32>} : memref<2x8x64xf32, #tpu.memory_space<vmem>>, vector<2x1x32xf32>,
    %c0_22 = arith.constant 0 : index
    %c7_23 = arith.constant 7 : index
    %c32 = arith.constant 32 : index
    %77 = vector.load %arg7[%c0_22, %c7_23, %c32] : memref<2x8x64xf32, #tpu.memory_space<vmem>>, vector<2x1x32xf32>
    %78 = vector.shape_cast %77 : vector<2x1x32xf32> to vector<2x32xf32>
    %79 = vector.shape_cast %73 : vector<2x32xf32> to vector<2x1x32xf32>
    tpu.vector_store %arg7[%c0_22, %c7_23, %c32], %79 {strides = array<i32>} : memref<2x8x64xf32, #tpu.memory_space<vmem>>, vector<2x1x32xf32>,
    %c1_i32 = arith.constant 1 : i32
    %80 = vector.broadcast %c1_i32 : i32 to vector<2x1xi32>
    %81 = arith.cmpi sgt, %1, %80 : vector<2x1xi32>
    %c6_i32 = arith.constant 6 : i32
    %82 = vector.broadcast %c6_i32 : i32 to vector<2x1xi32>
    %83 = arith.cmpi sgt, %1, %82 : vector<2x1xi32>
    %c0_24 = arith.constant 0 : index
    %c1 = arith.constant 1 : index
    %c0_25 = arith.constant 0 : index
    %84 = vector.load %arg0[%c0_24, %c1, %c0_25] : memref<2x8x256xf32, #tpu.memory_space<vmem>>, vector<2x1x128xf32>
    %85 = vector.shape_cast %84 : vector<2x1x128xf32> to vector<2x128xf32>
    %86 = arith.truncf %41 : vector<2x32xf32> to vector<2x32xbf16>
    %cst_26 = arith.constant dense<0.000000e+00> : vector<2x128xf32>
    %87 = tpu.matmul %86, %3, %cst_26 {dimension_numbers = #tpu.dot_dimension_numbers<[1], [0], [0], [1], [0, 0, 1, 1], [], []>} : vector<2x32xbf16>, vector<32x128xbf16>, vector<2x128xf32> -> vector<2x128xf32>
    %88 = arith.addf %85, %87 : vector<2x128xf32>
    %c0_27 = arith.constant 0 : index
    %c6 = arith.constant 6 : index
    %c128_28 = arith.constant 128 : index
    %89 = vector.load %arg0[%c0_27, %c6, %c128_28] : memref<2x8x256xf32, #tpu.memory_space<vmem>>, vector<2x1x128xf32>
    %90 = vector.shape_cast %89 : vector<2x1x128xf32> to vector<2x128xf32>
    %91 = arith.truncf %66 : vector<2x32xf32> to vector<2x32xbf16>
    %cst_29 = arith.constant dense<0.000000e+00> : vector<2x128xf32>
    %92 = tpu.matmul %91, %4, %cst_29 {dimension_numbers = #tpu.dot_dimension_numbers<[1], [0], [0], [1], [0, 0, 1, 1], [], []>} : vector<2x32xbf16>, vector<32x128xbf16>, vector<2x128xf32> -> vector<2x128xf32>
    %93 = arith.addf %90, %92 : vector<2x128xf32>
    %94 = arith.negf %88 : vector<2x128xf32>
    %95 = math.exp %94 : vector<2x128xf32>
    %cst_30 = arith.constant 1.000000e+00 : f32
    %96 = vector.broadcast %cst_30 : f32 to vector<2x128xf32>
    %97 = arith.addf %96, %95 : vector<2x128xf32>
    %98 = arith.divf %96, %97 : vector<2x128xf32>
    %99 = math.tanh %88 : vector<2x128xf32>
    %100 = vector.extract_strided_slice %98 {offsets = [0, 0], sizes = [2, 32], strides = [1, 1]} : vector<2x128xf32> to vector<2x32xf32>
    %101 = vector.extract_strided_slice %98 {offsets = [0, 32], sizes = [2, 32], strides = [1, 1]} : vector<2x128xf32> to vector<2x32xf32>
    %102 = vector.extract_strided_slice %99 {offsets = [0, 64], sizes = [2, 32], strides = [1, 1]} : vector<2x128xf32> to vector<2x32xf32>
    %103 = vector.extract_strided_slice %98 {offsets = [0, 96], sizes = [2, 32], strides = [1, 1]} : vector<2x128xf32> to vector<2x32xf32>
    %104 = arith.mulf %101, %44 : vector<2x32xf32>
    %105 = arith.mulf %100, %102 : vector<2x32xf32>
    %106 = arith.addf %104, %105 : vector<2x32xf32>
    %107 = math.tanh %106 : vector<2x32xf32>
    %108 = arith.mulf %103, %107 : vector<2x32xf32>
    %109 = vector.shape_cast %81 : vector<2x1xi1> to vector<2x1xi1>
    %110 = vector.broadcast %109 : vector<2x1xi1> to vector<2x32xi1>
    %111 = arith.select %110, %108, %41 : vector<2x32xi1>, vector<2x32xf32>
    %112 = vector.shape_cast %81 : vector<2x1xi1> to vector<2x1xi1>
    %113 = vector.broadcast %112 : vector<2x1xi1> to vector<2x32xi1>
    %114 = arith.select %113, %106, %44 : vector<2x32xi1>, vector<2x32xf32>
    %cst_31 = arith.constant 0.000000e+00 : f32
    %115 = vector.shape_cast %81 : vector<2x1xi1> to vector<2x1xi1>
    %116 = vector.broadcast %115 : vector<2x1xi1> to vector<2x32xi1>
    %117 = vector.broadcast %cst_31 : f32 to vector<2x32xf32>
    %118 = arith.select %116, %108, %117 : vector<2x32xi1>, vector<2x32xf32>
    %119 = arith.negf %93 : vector<2x128xf32>
    %120 = math.exp %119 : vector<2x128xf32>
    %cst_32 = arith.constant 1.000000e+00 : f32
    %121 = vector.broadcast %cst_32 : f32 to vector<2x128xf32>
    %122 = arith.addf %121, %120 : vector<2x128xf32>
    %123 = arith.divf %121, %122 : vector<2x128xf32>
    %124 = math.tanh %93 : vector<2x128xf32>
    %125 = vector.extract_strided_slice %123 {offsets = [0, 0], sizes = [2, 32], strides = [1, 1]} : vector<2x128xf32> to vector<2x32xf32>
    %126 = vector.extract_strided_slice %123 {offsets = [0, 32], sizes = [2, 32], strides = [1, 1]} : vector<2x128xf32> to vector<2x32xf32>
    %127 = vector.extract_strided_slice %124 {offsets = [0, 64], sizes = [2, 32], strides = [1, 1]} : vector<2x128xf32> to vector<2x32xf32>
    %128 = vector.extract_strided_slice %123 {offsets = [0, 96], sizes = [2, 32], strides = [1, 1]} : vector<2x128xf32> to vector<2x32xf32>
    %129 = arith.mulf %126, %69 : vector<2x32xf32>
    %130 = arith.mulf %125, %127 : vector<2x32xf32>
    %131 = arith.addf %129, %130 : vector<2x32xf32>
    %132 = math.tanh %131 : vector<2x32xf32>
    %133 = arith.mulf %128, %132 : vector<2x32xf32>
    %134 = vector.shape_cast %83 : vector<2x1xi1> to vector<2x1xi1>
    %135 = vector.broadcast %134 : vector<2x1xi1> to vector<2x32xi1>
    %136 = arith.select %135, %133, %66 : vector<2x32xi1>, vector<2x32xf32>
    %137 = vector.shape_cast %83 : vector<2x1xi1> to vector<2x1xi1>
    %138 = vector.broadcast %137 : vector<2x1xi1> to vector<2x32xi1>
    %139 = arith.select %138, %131, %69 : vector<2x32xi1>, vector<2x32xf32>
    %cst_33 = arith.constant 0.000000e+00 : f32
    %140 = vector.shape_cast %83 : vector<2x1xi1> to vector<2x1xi1>
    %141 = vector.broadcast %140 : vector<2x1xi1> to vector<2x32xi1>
    %142 = vector.broadcast %cst_33 : f32 to vector<2x32xf32>
    %143 = arith.select %141, %133, %142 : vector<2x32xi1>, vector<2x32xf32>
    %c0_34 = arith.constant 0 : index
    %c1_35 = arith.constant 1 : index
    %c0_36 = arith.constant 0 : index
    %144 = vector.load %arg7[%c0_34, %c1_35, %c0_36] : memref<2x8x64xf32, #tpu.memory_space<vmem>>, vector<2x1x32xf32>
    %145 = vector.shape_cast %144 : vector<2x1x32xf32> to vector<2x32xf32>
    %146 = vector.shape_cast %118 : vector<2x32xf32> to vector<2x1x32xf32>
    tpu.vector_store %arg7[%c0_34, %c1_35, %c0_36], %146 {strides = array<i32>} : memref<2x8x64xf32, #tpu.memory_space<vmem>>, vector<2x1x32xf32>,
    %c0_37 = arith.constant 0 : index
    %c6_38 = arith.constant 6 : index
    %c32_39 = arith.constant 32 : index
    %147 = vector.load %arg7[%c0_37, %c6_38, %c32_39] : memref<2x8x64xf32, #tpu.memory_space<vmem>>, vector<2x1x32xf32>
    %148 = vector.shape_cast %147 : vector<2x1x32xf32> to vector<2x32xf32>
    %149 = vector.shape_cast %143 : vector<2x32xf32> to vector<2x1x32xf32>
    tpu.vector_store %arg7[%c0_37, %c6_38, %c32_39], %149 {strides = array<i32>} : memref<2x8x64xf32, #tpu.memory_space<vmem>>, vector<2x1x32xf32>,
    %c2_i32 = arith.constant 2 : i32
    %150 = vector.broadcast %c2_i32 : i32 to vector<2x1xi32>
    %151 = arith.cmpi sgt, %1, %150 : vector<2x1xi32>
    %c5_i32 = arith.constant 5 : i32
    %152 = vector.broadcast %c5_i32 : i32 to vector<2x1xi32>
    %153 = arith.cmpi sgt, %1, %152 : vector<2x1xi32>
    %c0_40 = arith.constant 0 : index
    %c2 = arith.constant 2 : index
    %c0_41 = arith.constant 0 : index
    %154 = vector.load %arg0[%c0_40, %c2, %c0_41] : memref<2x8x256xf32, #tpu.memory_space<vmem>>, vector<2x1x128xf32>
    %155 = vector.shape_cast %154 : vector<2x1x128xf32> to vector<2x128xf32>
    %156 = arith.truncf %111 : vector<2x32xf32> to vector<2x32xbf16>
    %cst_42 = arith.constant dense<0.000000e+00> : vector<2x128xf32>
    %157 = tpu.matmul %156, %3, %cst_42 {dimension_numbers = #tpu.dot_dimension_numbers<[1], [0], [0], [1], [0, 0, 1, 1], [], []>} : vector<2x32xbf16>, vector<32x128xbf16>, vector<2x128xf32> -> vector<2x128xf32>
    %158 = arith.addf %155, %157 : vector<2x128xf32>
    %c0_43 = arith.constant 0 : index
    %c5 = arith.constant 5 : index
    %c128_44 = arith.constant 128 : index
    %159 = vector.load %arg0[%c0_43, %c5, %c128_44] : memref<2x8x256xf32, #tpu.memory_space<vmem>>, vector<2x1x128xf32>
    %160 = vector.shape_cast %159 : vector<2x1x128xf32> to vector<2x128xf32>
    %161 = arith.truncf %136 : vector<2x32xf32> to vector<2x32xbf16>
    %cst_45 = arith.constant dense<0.000000e+00> : vector<2x128xf32>
    %162 = tpu.matmul %161, %4, %cst_45 {dimension_numbers = #tpu.dot_dimension_numbers<[1], [0], [0], [1], [0, 0, 1, 1], [], []>} : vector<2x32xbf16>, vector<32x128xbf16>, vector<2x128xf32> -> vector<2x128xf32>
    %163 = arith.addf %160, %162 : vector<2x128xf32>
    %164 = arith.negf %158 : vector<2x128xf32>
    %165 = math.exp %164 : vector<2x128xf32>
    %cst_46 = arith.constant 1.000000e+00 : f32
    %166 = vector.broadcast %cst_46 : f32 to vector<2x128xf32>
    %167 = arith.addf %166, %165 : vector<2x128xf32>
    %168 = arith.divf %166, %167 : vector<2x128xf32>
    %169 = math.tanh %158 : vector<2x128xf32>
    %170 = vector.extract_strided_slice %168 {offsets = [0, 0], sizes = [2, 32], strides = [1, 1]} : vector<2x128xf32> to vector<2x32xf32>
    %171 = vector.extract_strided_slice %168 {offsets = [0, 32], sizes = [2, 32], strides = [1, 1]} : vector<2x128xf32> to vector<2x32xf32>
    %172 = vector.extract_strided_slice %169 {offsets = [0, 64], sizes = [2, 32], strides = [1, 1]} : vector<2x128xf32> to vector<2x32xf32>
    %173 = vector.extract_strided_slice %168 {offsets = [0, 96], sizes = [2, 32], strides = [1, 1]} : vector<2x128xf32> to vector<2x32xf32>
    %174 = arith.mulf %171, %114 : vector<2x32xf32>
    %175 = arith.mulf %170, %172 : vector<2x32xf32>
    %176 = arith.addf %174, %175 : vector<2x32xf32>
    %177 = math.tanh %176 : vector<2x32xf32>
    %178 = arith.mulf %173, %177 : vector<2x32xf32>
    %179 = vector.shape_cast %151 : vector<2x1xi1> to vector<2x1xi1>
    %180 = vector.broadcast %179 : vector<2x1xi1> to vector<2x32xi1>
    %181 = arith.select %180, %178, %111 : vector<2x32xi1>, vector<2x32xf32>
    %182 = vector.shape_cast %151 : vector<2x1xi1> to vector<2x1xi1>
    %183 = vector.broadcast %182 : vector<2x1xi1> to vector<2x32xi1>
    %184 = arith.select %183, %176, %114 : vector<2x32xi1>, vector<2x32xf32>
    %cst_47 = arith.constant 0.000000e+00 : f32
    %185 = vector.shape_cast %151 : vector<2x1xi1> to vector<2x1xi1>
    %186 = vector.broadcast %185 : vector<2x1xi1> to vector<2x32xi1>
    %187 = vector.broadcast %cst_47 : f32 to vector<2x32xf32>
    %188 = arith.select %186, %178, %187 : vector<2x32xi1>, vector<2x32xf32>
    %189 = arith.negf %163 : vector<2x128xf32>
    %190 = math.exp %189 : vector<2x128xf32>
    %cst_48 = arith.constant 1.000000e+00 : f32
    %191 = vector.broadcast %cst_48 : f32 to vector<2x128xf32>
    %192 = arith.addf %191, %190 : vector<2x128xf32>
    %193 = arith.divf %191, %192 : vector<2x128xf32>
    %194 = math.tanh %163 : vector<2x128xf32>
    %195 = vector.extract_strided_slice %193 {offsets = [0, 0], sizes = [2, 32], strides = [1, 1]} : vector<2x128xf32> to vector<2x32xf32>
    %196 = vector.extract_strided_slice %193 {offsets = [0, 32], sizes = [2, 32], strides = [1, 1]} : vector<2x128xf32> to vector<2x32xf32>
    %197 = vector.extract_strided_slice %194 {offsets = [0, 64], sizes = [2, 32], strides = [1, 1]} : vector<2x128xf32> to vector<2x32xf32>
    %198 = vector.extract_strided_slice %193 {offsets = [0, 96], sizes = [2, 32], strides = [1, 1]} : vector<2x128xf32> to vector<2x32xf32>
    %199 = arith.mulf %196, %139 : vector<2x32xf32>
    %200 = arith.mulf %195, %197 : vector<2x32xf32>
    %201 = arith.addf %199, %200 : vector<2x32xf32>
    %202 = math.tanh %201 : vector<2x32xf32>
    %203 = arith.mulf %198, %202 : vector<2x32xf32>
    %204 = vector.shape_cast %153 : vector<2x1xi1> to vector<2x1xi1>
    %205 = vector.broadcast %204 : vector<2x1xi1> to vector<2x32xi1>
    %206 = arith.select %205, %203, %136 : vector<2x32xi1>, vector<2x32xf32>
    %207 = vector.shape_cast %153 : vector<2x1xi1> to vector<2x1xi1>
    %208 = vector.broadcast %207 : vector<2x1xi1> to vector<2x32xi1>
    %209 = arith.select %208, %201, %139 : vector<2x32xi1>, vector<2x32xf32>
    %cst_49 = arith.constant 0.000000e+00 : f32
    %210 = vector.shape_cast %153 : vector<2x1xi1> to vector<2x1xi1>
    %211 = vector.broadcast %210 : vector<2x1xi1> to vector<2x32xi1>
    %212 = vector.broadcast %cst_49 : f32 to vector<2x32xf32>
    %213 = arith.select %211, %203, %212 : vector<2x32xi1>, vector<2x32xf32>
    %c0_50 = arith.constant 0 : index
    %c2_51 = arith.constant 2 : index
    %c0_52 = arith.constant 0 : index
    %214 = vector.load %arg7[%c0_50, %c2_51, %c0_52] : memref<2x8x64xf32, #tpu.memory_space<vmem>>, vector<2x1x32xf32>
    %215 = vector.shape_cast %214 : vector<2x1x32xf32> to vector<2x32xf32>
    %216 = vector.shape_cast %188 : vector<2x32xf32> to vector<2x1x32xf32>
    tpu.vector_store %arg7[%c0_50, %c2_51, %c0_52], %216 {strides = array<i32>} : memref<2x8x64xf32, #tpu.memory_space<vmem>>, vector<2x1x32xf32>,
    %c0_53 = arith.constant 0 : index
    %c5_54 = arith.constant 5 : index
    %c32_55 = arith.constant 32 : index
    %217 = vector.load %arg7[%c0_53, %c5_54, %c32_55] : memref<2x8x64xf32, #tpu.memory_space<vmem>>, vector<2x1x32xf32>
    %218 = vector.shape_cast %217 : vector<2x1x32xf32> to vector<2x32xf32>
    %219 = vector.shape_cast %213 : vector<2x32xf32> to vector<2x1x32xf32>
    tpu.vector_store %arg7[%c0_53, %c5_54, %c32_55], %219 {strides = array<i32>} : memref<2x8x64xf32, #tpu.memory_space<vmem>>, vector<2x1x32xf32>,
    %c3_i32 = arith.constant 3 : i32
    %220 = vector.broadcast %c3_i32 : i32 to vector<2x1xi32>
    %221 = arith.cmpi sgt, %1, %220 : vector<2x1xi32>
    %c4_i32 = arith.constant 4 : i32
    %222 = vector.broadcast %c4_i32 : i32 to vector<2x1xi32>
    %223 = arith.cmpi sgt, %1, %222 : vector<2x1xi32>
    %c0_56 = arith.constant 0 : index
    %c3 = arith.constant 3 : index
    %c0_57 = arith.constant 0 : index
    %224 = vector.load %arg0[%c0_56, %c3, %c0_57] : memref<2x8x256xf32, #tpu.memory_space<vmem>>, vector<2x1x128xf32>
    %225 = vector.shape_cast %224 : vector<2x1x128xf32> to vector<2x128xf32>
    %226 = arith.truncf %181 : vector<2x32xf32> to vector<2x32xbf16>
    %cst_58 = arith.constant dense<0.000000e+00> : vector<2x128xf32>
    %227 = tpu.matmul %226, %3, %cst_58 {dimension_numbers = #tpu.dot_dimension_numbers<[1], [0], [0], [1], [0, 0, 1, 1], [], []>} : vector<2x32xbf16>, vector<32x128xbf16>, vector<2x128xf32> -> vector<2x128xf32>
    %228 = arith.addf %225, %227 : vector<2x128xf32>
    %c0_59 = arith.constant 0 : index
    %c4 = arith.constant 4 : index
    %c128_60 = arith.constant 128 : index
    %229 = vector.load %arg0[%c0_59, %c4, %c128_60] : memref<2x8x256xf32, #tpu.memory_space<vmem>>, vector<2x1x128xf32>
    %230 = vector.shape_cast %229 : vector<2x1x128xf32> to vector<2x128xf32>
    %231 = arith.truncf %206 : vector<2x32xf32> to vector<2x32xbf16>
    %cst_61 = arith.constant dense<0.000000e+00> : vector<2x128xf32>
    %232 = tpu.matmul %231, %4, %cst_61 {dimension_numbers = #tpu.dot_dimension_numbers<[1], [0], [0], [1], [0, 0, 1, 1], [], []>} : vector<2x32xbf16>, vector<32x128xbf16>, vector<2x128xf32> -> vector<2x128xf32>
    %233 = arith.addf %230, %232 : vector<2x128xf32>
    %234 = arith.negf %228 : vector<2x128xf32>
    %235 = math.exp %234 : vector<2x128xf32>
    %cst_62 = arith.constant 1.000000e+00 : f32
    %236 = vector.broadcast %cst_62 : f32 to vector<2x128xf32>
    %237 = arith.addf %236, %235 : vector<2x128xf32>
    %238 = arith.divf %236, %237 : vector<2x128xf32>
    %239 = math.tanh %228 : vector<2x128xf32>
    %240 = vector.extract_strided_slice %238 {offsets = [0, 0], sizes = [2, 32], strides = [1, 1]} : vector<2x128xf32> to vector<2x32xf32>
    %241 = vector.extract_strided_slice %238 {offsets = [0, 32], sizes = [2, 32], strides = [1, 1]} : vector<2x128xf32> to vector<2x32xf32>
    %242 = vector.extract_strided_slice %239 {offsets = [0, 64], sizes = [2, 32], strides = [1, 1]} : vector<2x128xf32> to vector<2x32xf32>
    %243 = vector.extract_strided_slice %238 {offsets = [0, 96], sizes = [2, 32], strides = [1, 1]} : vector<2x128xf32> to vector<2x32xf32>
    %244 = arith.mulf %241, %184 : vector<2x32xf32>
    %245 = arith.mulf %240, %242 : vector<2x32xf32>
    %246 = arith.addf %244, %245 : vector<2x32xf32>
    %247 = math.tanh %246 : vector<2x32xf32>
    %248 = arith.mulf %243, %247 : vector<2x32xf32>
    %249 = vector.shape_cast %221 : vector<2x1xi1> to vector<2x1xi1>
    %250 = vector.broadcast %249 : vector<2x1xi1> to vector<2x32xi1>
    %251 = arith.select %250, %248, %181 : vector<2x32xi1>, vector<2x32xf32>
    %252 = vector.shape_cast %221 : vector<2x1xi1> to vector<2x1xi1>
    %253 = vector.broadcast %252 : vector<2x1xi1> to vector<2x32xi1>
    %254 = arith.select %253, %246, %184 : vector<2x32xi1>, vector<2x32xf32>
    %cst_63 = arith.constant 0.000000e+00 : f32
    %255 = vector.shape_cast %221 : vector<2x1xi1> to vector<2x1xi1>
    %256 = vector.broadcast %255 : vector<2x1xi1> to vector<2x32xi1>
    %257 = vector.broadcast %cst_63 : f32 to vector<2x32xf32>
    %258 = arith.select %256, %248, %257 : vector<2x32xi1>, vector<2x32xf32>
    %259 = arith.negf %233 : vector<2x128xf32>
    %260 = math.exp %259 : vector<2x128xf32>
    %cst_64 = arith.constant 1.000000e+00 : f32
    %261 = vector.broadcast %cst_64 : f32 to vector<2x128xf32>
    %262 = arith.addf %261, %260 : vector<2x128xf32>
    %263 = arith.divf %261, %262 : vector<2x128xf32>
    %264 = math.tanh %233 : vector<2x128xf32>
    %265 = vector.extract_strided_slice %263 {offsets = [0, 0], sizes = [2, 32], strides = [1, 1]} : vector<2x128xf32> to vector<2x32xf32>
    %266 = vector.extract_strided_slice %263 {offsets = [0, 32], sizes = [2, 32], strides = [1, 1]} : vector<2x128xf32> to vector<2x32xf32>
    %267 = vector.extract_strided_slice %264 {offsets = [0, 64], sizes = [2, 32], strides = [1, 1]} : vector<2x128xf32> to vector<2x32xf32>
    %268 = vector.extract_strided_slice %263 {offsets = [0, 96], sizes = [2, 32], strides = [1, 1]} : vector<2x128xf32> to vector<2x32xf32>
    %269 = arith.mulf %266, %209 : vector<2x32xf32>
    %270 = arith.mulf %265, %267 : vector<2x32xf32>
    %271 = arith.addf %269, %270 : vector<2x32xf32>
    %272 = math.tanh %271 : vector<2x32xf32>
    %273 = arith.mulf %268, %272 : vector<2x32xf32>
    %274 = vector.shape_cast %223 : vector<2x1xi1> to vector<2x1xi1>
    %275 = vector.broadcast %274 : vector<2x1xi1> to vector<2x32xi1>
    %276 = arith.select %275, %273, %206 : vector<2x32xi1>, vector<2x32xf32>
    %277 = vector.shape_cast %223 : vector<2x1xi1> to vector<2x1xi1>
    %278 = vector.broadcast %277 : vector<2x1xi1> to vector<2x32xi1>
    %279 = arith.select %278, %271, %209 : vector<2x32xi1>, vector<2x32xf32>
    %cst_65 = arith.constant 0.000000e+00 : f32
    %280 = vector.shape_cast %223 : vector<2x1xi1> to vector<2x1xi1>
    %281 = vector.broadcast %280 : vector<2x1xi1> to vector<2x32xi1>
    %282 = vector.broadcast %cst_65 : f32 to vector<2x32xf32>
    %283 = arith.select %281, %273, %282 : vector<2x32xi1>, vector<2x32xf32>
    %c0_66 = arith.constant 0 : index
    %c3_67 = arith.constant 3 : index
    %c0_68 = arith.constant 0 : index
    %284 = vector.load %arg7[%c0_66, %c3_67, %c0_68] : memref<2x8x64xf32, #tpu.memory_space<vmem>>, vector<2x1x32xf32>
    %285 = vector.shape_cast %284 : vector<2x1x32xf32> to vector<2x32xf32>
    %286 = vector.shape_cast %258 : vector<2x32xf32> to vector<2x1x32xf32>
    tpu.vector_store %arg7[%c0_66, %c3_67, %c0_68], %286 {strides = array<i32>} : memref<2x8x64xf32, #tpu.memory_space<vmem>>, vector<2x1x32xf32>,
    %c0_69 = arith.constant 0 : index
    %c4_70 = arith.constant 4 : index
    %c32_71 = arith.constant 32 : index
    %287 = vector.load %arg7[%c0_69, %c4_70, %c32_71] : memref<2x8x64xf32, #tpu.memory_space<vmem>>, vector<2x1x32xf32>
    %288 = vector.shape_cast %287 : vector<2x1x32xf32> to vector<2x32xf32>
    %289 = vector.shape_cast %283 : vector<2x32xf32> to vector<2x1x32xf32>
    tpu.vector_store %arg7[%c0_69, %c4_70, %c32_71], %289 {strides = array<i32>} : memref<2x8x64xf32, #tpu.memory_space<vmem>>, vector<2x1x32xf32>,
    %c4_i32_72 = arith.constant 4 : i32
    %290 = vector.broadcast %c4_i32_72 : i32 to vector<2x1xi32>
    %291 = arith.cmpi sgt, %1, %290 : vector<2x1xi32>
    %c3_i32_73 = arith.constant 3 : i32
    %292 = vector.broadcast %c3_i32_73 : i32 to vector<2x1xi32>
    %293 = arith.cmpi sgt, %1, %292 : vector<2x1xi32>
    %c0_74 = arith.constant 0 : index
    %c4_75 = arith.constant 4 : index
    %c0_76 = arith.constant 0 : index
    %294 = vector.load %arg0[%c0_74, %c4_75, %c0_76] : memref<2x8x256xf32, #tpu.memory_space<vmem>>, vector<2x1x128xf32>
    %295 = vector.shape_cast %294 : vector<2x1x128xf32> to vector<2x128xf32>
    %296 = arith.truncf %251 : vector<2x32xf32> to vector<2x32xbf16>
    %cst_77 = arith.constant dense<0.000000e+00> : vector<2x128xf32>
    %297 = tpu.matmul %296, %3, %cst_77 {dimension_numbers = #tpu.dot_dimension_numbers<[1], [0], [0], [1], [0, 0, 1, 1], [], []>} : vector<2x32xbf16>, vector<32x128xbf16>, vector<2x128xf32> -> vector<2x128xf32>
    %298 = arith.addf %295, %297 : vector<2x128xf32>
    %c0_78 = arith.constant 0 : index
    %c3_79 = arith.constant 3 : index
    %c128_80 = arith.constant 128 : index
    %299 = vector.load %arg0[%c0_78, %c3_79, %c128_80] : memref<2x8x256xf32, #tpu.memory_space<vmem>>, vector<2x1x128xf32>
    %300 = vector.shape_cast %299 : vector<2x1x128xf32> to vector<2x128xf32>
    %301 = arith.truncf %276 : vector<2x32xf32> to vector<2x32xbf16>
    %cst_81 = arith.constant dense<0.000000e+00> : vector<2x128xf32>
    %302 = tpu.matmul %301, %4, %cst_81 {dimension_numbers = #tpu.dot_dimension_numbers<[1], [0], [0], [1], [0, 0, 1, 1], [], []>} : vector<2x32xbf16>, vector<32x128xbf16>, vector<2x128xf32> -> vector<2x128xf32>
    %303 = arith.addf %300, %302 : vector<2x128xf32>
    %304 = arith.negf %298 : vector<2x128xf32>
    %305 = math.exp %304 : vector<2x128xf32>
    %cst_82 = arith.constant 1.000000e+00 : f32
    %306 = vector.broadcast %cst_82 : f32 to vector<2x128xf32>
    %307 = arith.addf %306, %305 : vector<2x128xf32>
    %308 = arith.divf %306, %307 : vector<2x128xf32>
    %309 = math.tanh %298 : vector<2x128xf32>
    %310 = vector.extract_strided_slice %308 {offsets = [0, 0], sizes = [2, 32], strides = [1, 1]} : vector<2x128xf32> to vector<2x32xf32>
    %311 = vector.extract_strided_slice %308 {offsets = [0, 32], sizes = [2, 32], strides = [1, 1]} : vector<2x128xf32> to vector<2x32xf32>
    %312 = vector.extract_strided_slice %309 {offsets = [0, 64], sizes = [2, 32], strides = [1, 1]} : vector<2x128xf32> to vector<2x32xf32>
    %313 = vector.extract_strided_slice %308 {offsets = [0, 96], sizes = [2, 32], strides = [1, 1]} : vector<2x128xf32> to vector<2x32xf32>
    %314 = arith.mulf %311, %254 : vector<2x32xf32>
    %315 = arith.mulf %310, %312 : vector<2x32xf32>
    %316 = arith.addf %314, %315 : vector<2x32xf32>
    %317 = math.tanh %316 : vector<2x32xf32>
    %318 = arith.mulf %313, %317 : vector<2x32xf32>
    %319 = vector.shape_cast %291 : vector<2x1xi1> to vector<2x1xi1>
    %320 = vector.broadcast %319 : vector<2x1xi1> to vector<2x32xi1>
    %321 = arith.select %320, %318, %251 : vector<2x32xi1>, vector<2x32xf32>
    %322 = vector.shape_cast %291 : vector<2x1xi1> to vector<2x1xi1>
    %323 = vector.broadcast %322 : vector<2x1xi1> to vector<2x32xi1>
    %324 = arith.select %323, %316, %254 : vector<2x32xi1>, vector<2x32xf32>
    %cst_83 = arith.constant 0.000000e+00 : f32
    %325 = vector.shape_cast %291 : vector<2x1xi1> to vector<2x1xi1>
    %326 = vector.broadcast %325 : vector<2x1xi1> to vector<2x32xi1>
    %327 = vector.broadcast %cst_83 : f32 to vector<2x32xf32>
    %328 = arith.select %326, %318, %327 : vector<2x32xi1>, vector<2x32xf32>
    %329 = arith.negf %303 : vector<2x128xf32>
    %330 = math.exp %329 : vector<2x128xf32>
    %cst_84 = arith.constant 1.000000e+00 : f32
    %331 = vector.broadcast %cst_84 : f32 to vector<2x128xf32>
    %332 = arith.addf %331, %330 : vector<2x128xf32>
    %333 = arith.divf %331, %332 : vector<2x128xf32>
    %334 = math.tanh %303 : vector<2x128xf32>
    %335 = vector.extract_strided_slice %333 {offsets = [0, 0], sizes = [2, 32], strides = [1, 1]} : vector<2x128xf32> to vector<2x32xf32>
    %336 = vector.extract_strided_slice %333 {offsets = [0, 32], sizes = [2, 32], strides = [1, 1]} : vector<2x128xf32> to vector<2x32xf32>
    %337 = vector.extract_strided_slice %334 {offsets = [0, 64], sizes = [2, 32], strides = [1, 1]} : vector<2x128xf32> to vector<2x32xf32>
    %338 = vector.extract_strided_slice %333 {offsets = [0, 96], sizes = [2, 32], strides = [1, 1]} : vector<2x128xf32> to vector<2x32xf32>
    %339 = arith.mulf %336, %279 : vector<2x32xf32>
    %340 = arith.mulf %335, %337 : vector<2x32xf32>
    %341 = arith.addf %339, %340 : vector<2x32xf32>
    %342 = math.tanh %341 : vector<2x32xf32>
    %343 = arith.mulf %338, %342 : vector<2x32xf32>
    %344 = vector.shape_cast %293 : vector<2x1xi1> to vector<2x1xi1>
    %345 = vector.broadcast %344 : vector<2x1xi1> to vector<2x32xi1>
    %346 = arith.select %345, %343, %276 : vector<2x32xi1>, vector<2x32xf32>
    %347 = vector.shape_cast %293 : vector<2x1xi1> to vector<2x1xi1>
    %348 = vector.broadcast %347 : vector<2x1xi1> to vector<2x32xi1>
    %349 = arith.select %348, %341, %279 : vector<2x32xi1>, vector<2x32xf32>
    %cst_85 = arith.constant 0.000000e+00 : f32
    %350 = vector.shape_cast %293 : vector<2x1xi1> to vector<2x1xi1>
    %351 = vector.broadcast %350 : vector<2x1xi1> to vector<2x32xi1>
    %352 = vector.broadcast %cst_85 : f32 to vector<2x32xf32>
    %353 = arith.select %351, %343, %352 : vector<2x32xi1>, vector<2x32xf32>
    %c0_86 = arith.constant 0 : index
    %c4_87 = arith.constant 4 : index
    %c0_88 = arith.constant 0 : index
    %354 = vector.load %arg7[%c0_86, %c4_87, %c0_88] : memref<2x8x64xf32, #tpu.memory_space<vmem>>, vector<2x1x32xf32>
    %355 = vector.shape_cast %354 : vector<2x1x32xf32> to vector<2x32xf32>
    %356 = vector.shape_cast %328 : vector<2x32xf32> to vector<2x1x32xf32>
    tpu.vector_store %arg7[%c0_86, %c4_87, %c0_88], %356 {strides = array<i32>} : memref<2x8x64xf32, #tpu.memory_space<vmem>>, vector<2x1x32xf32>,
    %c0_89 = arith.constant 0 : index
    %c3_90 = arith.constant 3 : index
    %c32_91 = arith.constant 32 : index
    %357 = vector.load %arg7[%c0_89, %c3_90, %c32_91] : memref<2x8x64xf32, #tpu.memory_space<vmem>>, vector<2x1x32xf32>
    %358 = vector.shape_cast %357 : vector<2x1x32xf32> to vector<2x32xf32>
    %359 = vector.shape_cast %353 : vector<2x32xf32> to vector<2x1x32xf32>
    tpu.vector_store %arg7[%c0_89, %c3_90, %c32_91], %359 {strides = array<i32>} : memref<2x8x64xf32, #tpu.memory_space<vmem>>, vector<2x1x32xf32>,
    %c5_i32_92 = arith.constant 5 : i32
    %360 = vector.broadcast %c5_i32_92 : i32 to vector<2x1xi32>
    %361 = arith.cmpi sgt, %1, %360 : vector<2x1xi32>
    %c2_i32_93 = arith.constant 2 : i32
    %362 = vector.broadcast %c2_i32_93 : i32 to vector<2x1xi32>
    %363 = arith.cmpi sgt, %1, %362 : vector<2x1xi32>
    %c0_94 = arith.constant 0 : index
    %c5_95 = arith.constant 5 : index
    %c0_96 = arith.constant 0 : index
    %364 = vector.load %arg0[%c0_94, %c5_95, %c0_96] : memref<2x8x256xf32, #tpu.memory_space<vmem>>, vector<2x1x128xf32>
    %365 = vector.shape_cast %364 : vector<2x1x128xf32> to vector<2x128xf32>
    %366 = arith.truncf %321 : vector<2x32xf32> to vector<2x32xbf16>
    %cst_97 = arith.constant dense<0.000000e+00> : vector<2x128xf32>
    %367 = tpu.matmul %366, %3, %cst_97 {dimension_numbers = #tpu.dot_dimension_numbers<[1], [0], [0], [1], [0, 0, 1, 1], [], []>} : vector<2x32xbf16>, vector<32x128xbf16>, vector<2x128xf32> -> vector<2x128xf32>
    %368 = arith.addf %365, %367 : vector<2x128xf32>
    %c0_98 = arith.constant 0 : index
    %c2_99 = arith.constant 2 : index
    %c128_100 = arith.constant 128 : index
    %369 = vector.load %arg0[%c0_98, %c2_99, %c128_100] : memref<2x8x256xf32, #tpu.memory_space<vmem>>, vector<2x1x128xf32>
    %370 = vector.shape_cast %369 : vector<2x1x128xf32> to vector<2x128xf32>
    %371 = arith.truncf %346 : vector<2x32xf32> to vector<2x32xbf16>
    %cst_101 = arith.constant dense<0.000000e+00> : vector<2x128xf32>
    %372 = tpu.matmul %371, %4, %cst_101 {dimension_numbers = #tpu.dot_dimension_numbers<[1], [0], [0], [1], [0, 0, 1, 1], [], []>} : vector<2x32xbf16>, vector<32x128xbf16>, vector<2x128xf32> -> vector<2x128xf32>
    %373 = arith.addf %370, %372 : vector<2x128xf32>
    %374 = arith.negf %368 : vector<2x128xf32>
    %375 = math.exp %374 : vector<2x128xf32>
    %cst_102 = arith.constant 1.000000e+00 : f32
    %376 = vector.broadcast %cst_102 : f32 to vector<2x128xf32>
    %377 = arith.addf %376, %375 : vector<2x128xf32>
    %378 = arith.divf %376, %377 : vector<2x128xf32>
    %379 = math.tanh %368 : vector<2x128xf32>
    %380 = vector.extract_strided_slice %378 {offsets = [0, 0], sizes = [2, 32], strides = [1, 1]} : vector<2x128xf32> to vector<2x32xf32>
    %381 = vector.extract_strided_slice %378 {offsets = [0, 32], sizes = [2, 32], strides = [1, 1]} : vector<2x128xf32> to vector<2x32xf32>
    %382 = vector.extract_strided_slice %379 {offsets = [0, 64], sizes = [2, 32], strides = [1, 1]} : vector<2x128xf32> to vector<2x32xf32>
    %383 = vector.extract_strided_slice %378 {offsets = [0, 96], sizes = [2, 32], strides = [1, 1]} : vector<2x128xf32> to vector<2x32xf32>
    %384 = arith.mulf %381, %324 : vector<2x32xf32>
    %385 = arith.mulf %380, %382 : vector<2x32xf32>
    %386 = arith.addf %384, %385 : vector<2x32xf32>
    %387 = math.tanh %386 : vector<2x32xf32>
    %388 = arith.mulf %383, %387 : vector<2x32xf32>
    %389 = vector.shape_cast %361 : vector<2x1xi1> to vector<2x1xi1>
    %390 = vector.broadcast %389 : vector<2x1xi1> to vector<2x32xi1>
    %391 = arith.select %390, %388, %321 : vector<2x32xi1>, vector<2x32xf32>
    %392 = vector.shape_cast %361 : vector<2x1xi1> to vector<2x1xi1>
    %393 = vector.broadcast %392 : vector<2x1xi1> to vector<2x32xi1>
    %394 = arith.select %393, %386, %324 : vector<2x32xi1>, vector<2x32xf32>
    %cst_103 = arith.constant 0.000000e+00 : f32
    %395 = vector.shape_cast %361 : vector<2x1xi1> to vector<2x1xi1>
    %396 = vector.broadcast %395 : vector<2x1xi1> to vector<2x32xi1>
    %397 = vector.broadcast %cst_103 : f32 to vector<2x32xf32>
    %398 = arith.select %396, %388, %397 : vector<2x32xi1>, vector<2x32xf32>
    %399 = arith.negf %373 : vector<2x128xf32>
    %400 = math.exp %399 : vector<2x128xf32>
    %cst_104 = arith.constant 1.000000e+00 : f32
    %401 = vector.broadcast %cst_104 : f32 to vector<2x128xf32>
    %402 = arith.addf %401, %400 : vector<2x128xf32>
    %403 = arith.divf %401, %402 : vector<2x128xf32>
    %404 = math.tanh %373 : vector<2x128xf32>
    %405 = vector.extract_strided_slice %403 {offsets = [0, 0], sizes = [2, 32], strides = [1, 1]} : vector<2x128xf32> to vector<2x32xf32>
    %406 = vector.extract_strided_slice %403 {offsets = [0, 32], sizes = [2, 32], strides = [1, 1]} : vector<2x128xf32> to vector<2x32xf32>
    %407 = vector.extract_strided_slice %404 {offsets = [0, 64], sizes = [2, 32], strides = [1, 1]} : vector<2x128xf32> to vector<2x32xf32>
    %408 = vector.extract_strided_slice %403 {offsets = [0, 96], sizes = [2, 32], strides = [1, 1]} : vector<2x128xf32> to vector<2x32xf32>
    %409 = arith.mulf %406, %349 : vector<2x32xf32>
    %410 = arith.mulf %405, %407 : vector<2x32xf32>
    %411 = arith.addf %409, %410 : vector<2x32xf32>
    %412 = math.tanh %411 : vector<2x32xf32>
    %413 = arith.mulf %408, %412 : vector<2x32xf32>
    %414 = vector.shape_cast %363 : vector<2x1xi1> to vector<2x1xi1>
    %415 = vector.broadcast %414 : vector<2x1xi1> to vector<2x32xi1>
    %416 = arith.select %415, %413, %346 : vector<2x32xi1>, vector<2x32xf32>
    %417 = vector.shape_cast %363 : vector<2x1xi1> to vector<2x1xi1>
    %418 = vector.broadcast %417 : vector<2x1xi1> to vector<2x32xi1>
    %419 = arith.select %418, %411, %349 : vector<2x32xi1>, vector<2x32xf32>
    %cst_105 = arith.constant 0.000000e+00 : f32
    %420 = vector.shape_cast %363 : vector<2x1xi1> to vector<2x1xi1>
    %421 = vector.broadcast %420 : vector<2x1xi1> to vector<2x32xi1>
    %422 = vector.broadcast %cst_105 : f32 to vector<2x32xf32>
    %423 = arith.select %421, %413, %422 : vector<2x32xi1>, vector<2x32xf32>
    %c0_106 = arith.constant 0 : index
    %c5_107 = arith.constant 5 : index
    %c0_108 = arith.constant 0 : index
    %424 = vector.load %arg7[%c0_106, %c5_107, %c0_108] : memref<2x8x64xf32, #tpu.memory_space<vmem>>, vector<2x1x32xf32>
    %425 = vector.shape_cast %424 : vector<2x1x32xf32> to vector<2x32xf32>
    %426 = vector.shape_cast %398 : vector<2x32xf32> to vector<2x1x32xf32>
    tpu.vector_store %arg7[%c0_106, %c5_107, %c0_108], %426 {strides = array<i32>} : memref<2x8x64xf32, #tpu.memory_space<vmem>>, vector<2x1x32xf32>,
    %c0_109 = arith.constant 0 : index
    %c2_110 = arith.constant 2 : index
    %c32_111 = arith.constant 32 : index
    %427 = vector.load %arg7[%c0_109, %c2_110, %c32_111] : memref<2x8x64xf32, #tpu.memory_space<vmem>>, vector<2x1x32xf32>
    %428 = vector.shape_cast %427 : vector<2x1x32xf32> to vector<2x32xf32>
    %429 = vector.shape_cast %423 : vector<2x32xf32> to vector<2x1x32xf32>
    tpu.vector_store %arg7[%c0_109, %c2_110, %c32_111], %429 {strides = array<i32>} : memref<2x8x64xf32, #tpu.memory_space<vmem>>, vector<2x1x32xf32>,
    %c6_i32_112 = arith.constant 6 : i32
    %430 = vector.broadcast %c6_i32_112 : i32 to vector<2x1xi32>
    %431 = arith.cmpi sgt, %1, %430 : vector<2x1xi32>
    %c1_i32_113 = arith.constant 1 : i32
    %432 = vector.broadcast %c1_i32_113 : i32 to vector<2x1xi32>
    %433 = arith.cmpi sgt, %1, %432 : vector<2x1xi32>
    %c0_114 = arith.constant 0 : index
    %c6_115 = arith.constant 6 : index
    %c0_116 = arith.constant 0 : index
    %434 = vector.load %arg0[%c0_114, %c6_115, %c0_116] : memref<2x8x256xf32, #tpu.memory_space<vmem>>, vector<2x1x128xf32>
    %435 = vector.shape_cast %434 : vector<2x1x128xf32> to vector<2x128xf32>
    %436 = arith.truncf %391 : vector<2x32xf32> to vector<2x32xbf16>
    %cst_117 = arith.constant dense<0.000000e+00> : vector<2x128xf32>
    %437 = tpu.matmul %436, %3, %cst_117 {dimension_numbers = #tpu.dot_dimension_numbers<[1], [0], [0], [1], [0, 0, 1, 1], [], []>} : vector<2x32xbf16>, vector<32x128xbf16>, vector<2x128xf32> -> vector<2x128xf32>
    %438 = arith.addf %435, %437 : vector<2x128xf32>
    %c0_118 = arith.constant 0 : index
    %c1_119 = arith.constant 1 : index
    %c128_120 = arith.constant 128 : index
    %439 = vector.load %arg0[%c0_118, %c1_119, %c128_120] : memref<2x8x256xf32, #tpu.memory_space<vmem>>, vector<2x1x128xf32>
    %440 = vector.shape_cast %439 : vector<2x1x128xf32> to vector<2x128xf32>
    %441 = arith.truncf %416 : vector<2x32xf32> to vector<2x32xbf16>
    %cst_121 = arith.constant dense<0.000000e+00> : vector<2x128xf32>
    %442 = tpu.matmul %441, %4, %cst_121 {dimension_numbers = #tpu.dot_dimension_numbers<[1], [0], [0], [1], [0, 0, 1, 1], [], []>} : vector<2x32xbf16>, vector<32x128xbf16>, vector<2x128xf32> -> vector<2x128xf32>
    %443 = arith.addf %440, %442 : vector<2x128xf32>
    %444 = arith.negf %438 : vector<2x128xf32>
    %445 = math.exp %444 : vector<2x128xf32>
    %cst_122 = arith.constant 1.000000e+00 : f32
    %446 = vector.broadcast %cst_122 : f32 to vector<2x128xf32>
    %447 = arith.addf %446, %445 : vector<2x128xf32>
    %448 = arith.divf %446, %447 : vector<2x128xf32>
    %449 = math.tanh %438 : vector<2x128xf32>
    %450 = vector.extract_strided_slice %448 {offsets = [0, 0], sizes = [2, 32], strides = [1, 1]} : vector<2x128xf32> to vector<2x32xf32>
    %451 = vector.extract_strided_slice %448 {offsets = [0, 32], sizes = [2, 32], strides = [1, 1]} : vector<2x128xf32> to vector<2x32xf32>
    %452 = vector.extract_strided_slice %449 {offsets = [0, 64], sizes = [2, 32], strides = [1, 1]} : vector<2x128xf32> to vector<2x32xf32>
    %453 = vector.extract_strided_slice %448 {offsets = [0, 96], sizes = [2, 32], strides = [1, 1]} : vector<2x128xf32> to vector<2x32xf32>
    %454 = arith.mulf %451, %394 : vector<2x32xf32>
    %455 = arith.mulf %450, %452 : vector<2x32xf32>
    %456 = arith.addf %454, %455 : vector<2x32xf32>
    %457 = math.tanh %456 : vector<2x32xf32>
    %458 = arith.mulf %453, %457 : vector<2x32xf32>
    %459 = vector.shape_cast %431 : vector<2x1xi1> to vector<2x1xi1>
    %460 = vector.broadcast %459 : vector<2x1xi1> to vector<2x32xi1>
    %461 = arith.select %460, %458, %391 : vector<2x32xi1>, vector<2x32xf32>
    %462 = vector.shape_cast %431 : vector<2x1xi1> to vector<2x1xi1>
    %463 = vector.broadcast %462 : vector<2x1xi1> to vector<2x32xi1>
    %464 = arith.select %463, %456, %394 : vector<2x32xi1>, vector<2x32xf32>
    %cst_123 = arith.constant 0.000000e+00 : f32
    %465 = vector.shape_cast %431 : vector<2x1xi1> to vector<2x1xi1>
    %466 = vector.broadcast %465 : vector<2x1xi1> to vector<2x32xi1>
    %467 = vector.broadcast %cst_123 : f32 to vector<2x32xf32>
    %468 = arith.select %466, %458, %467 : vector<2x32xi1>, vector<2x32xf32>
    %469 = arith.negf %443 : vector<2x128xf32>
    %470 = math.exp %469 : vector<2x128xf32>
    %cst_124 = arith.constant 1.000000e+00 : f32
    %471 = vector.broadcast %cst_124 : f32 to vector<2x128xf32>
    %472 = arith.addf %471, %470 : vector<2x128xf32>
    %473 = arith.divf %471, %472 : vector<2x128xf32>
    %474 = math.tanh %443 : vector<2x128xf32>
    %475 = vector.extract_strided_slice %473 {offsets = [0, 0], sizes = [2, 32], strides = [1, 1]} : vector<2x128xf32> to vector<2x32xf32>
    %476 = vector.extract_strided_slice %473 {offsets = [0, 32], sizes = [2, 32], strides = [1, 1]} : vector<2x128xf32> to vector<2x32xf32>
    %477 = vector.extract_strided_slice %474 {offsets = [0, 64], sizes = [2, 32], strides = [1, 1]} : vector<2x128xf32> to vector<2x32xf32>
    %478 = vector.extract_strided_slice %473 {offsets = [0, 96], sizes = [2, 32], strides = [1, 1]} : vector<2x128xf32> to vector<2x32xf32>
    %479 = arith.mulf %476, %419 : vector<2x32xf32>
    %480 = arith.mulf %475, %477 : vector<2x32xf32>
    %481 = arith.addf %479, %480 : vector<2x32xf32>
    %482 = math.tanh %481 : vector<2x32xf32>
    %483 = arith.mulf %478, %482 : vector<2x32xf32>
    %484 = vector.shape_cast %433 : vector<2x1xi1> to vector<2x1xi1>
    %485 = vector.broadcast %484 : vector<2x1xi1> to vector<2x32xi1>
    %486 = arith.select %485, %483, %416 : vector<2x32xi1>, vector<2x32xf32>
    %487 = vector.shape_cast %433 : vector<2x1xi1> to vector<2x1xi1>
    %488 = vector.broadcast %487 : vector<2x1xi1> to vector<2x32xi1>
    %489 = arith.select %488, %481, %419 : vector<2x32xi1>, vector<2x32xf32>
    %cst_125 = arith.constant 0.000000e+00 : f32
    %490 = vector.shape_cast %433 : vector<2x1xi1> to vector<2x1xi1>
    %491 = vector.broadcast %490 : vector<2x1xi1> to vector<2x32xi1>
    %492 = vector.broadcast %cst_125 : f32 to vector<2x32xf32>
    %493 = arith.select %491, %483, %492 : vector<2x32xi1>, vector<2x32xf32>
    %c0_126 = arith.constant 0 : index
    %c6_127 = arith.constant 6 : index
    %c0_128 = arith.constant 0 : index
    %494 = vector.load %arg7[%c0_126, %c6_127, %c0_128] : memref<2x8x64xf32, #tpu.memory_space<vmem>>, vector<2x1x32xf32>
    %495 = vector.shape_cast %494 : vector<2x1x32xf32> to vector<2x32xf32>
    %496 = vector.shape_cast %468 : vector<2x32xf32> to vector<2x1x32xf32>
    tpu.vector_store %arg7[%c0_126, %c6_127, %c0_128], %496 {strides = array<i32>} : memref<2x8x64xf32, #tpu.memory_space<vmem>>, vector<2x1x32xf32>,
    %c0_129 = arith.constant 0 : index
    %c1_130 = arith.constant 1 : index
    %c32_131 = arith.constant 32 : index
    %497 = vector.load %arg7[%c0_129, %c1_130, %c32_131] : memref<2x8x64xf32, #tpu.memory_space<vmem>>, vector<2x1x32xf32>
    %498 = vector.shape_cast %497 : vector<2x1x32xf32> to vector<2x32xf32>
    %499 = vector.shape_cast %493 : vector<2x32xf32> to vector<2x1x32xf32>
    tpu.vector_store %arg7[%c0_129, %c1_130, %c32_131], %499 {strides = array<i32>} : memref<2x8x64xf32, #tpu.memory_space<vmem>>, vector<2x1x32xf32>,
    %c7_i32_132 = arith.constant 7 : i32
    %500 = vector.broadcast %c7_i32_132 : i32 to vector<2x1xi32>
    %501 = arith.cmpi sgt, %1, %500 : vector<2x1xi32>
    %c0_i32_133 = arith.constant 0 : i32
    %502 = vector.broadcast %c0_i32_133 : i32 to vector<2x1xi32>
    %503 = arith.cmpi sgt, %1, %502 : vector<2x1xi32>
    %c0_134 = arith.constant 0 : index
    %c7_135 = arith.constant 7 : index
    %c0_136 = arith.constant 0 : index
    %504 = vector.load %arg0[%c0_134, %c7_135, %c0_136] : memref<2x8x256xf32, #tpu.memory_space<vmem>>, vector<2x1x128xf32>
    %505 = vector.shape_cast %504 : vector<2x1x128xf32> to vector<2x128xf32>
    %506 = arith.truncf %461 : vector<2x32xf32> to vector<2x32xbf16>
    %cst_137 = arith.constant dense<0.000000e+00> : vector<2x128xf32>
    %507 = tpu.matmul %506, %3, %cst_137 {dimension_numbers = #tpu.dot_dimension_numbers<[1], [0], [0], [1], [0, 0, 1, 1], [], []>} : vector<2x32xbf16>, vector<32x128xbf16>, vector<2x128xf32> -> vector<2x128xf32>
    %508 = arith.addf %505, %507 : vector<2x128xf32>
    %c0_138 = arith.constant 0 : index
    %c0_139 = arith.constant 0 : index
    %c128_140 = arith.constant 128 : index
    %509 = vector.load %arg0[%c0_138, %c0_139, %c128_140] : memref<2x8x256xf32, #tpu.memory_space<vmem>>, vector<2x1x128xf32>
    %510 = vector.shape_cast %509 : vector<2x1x128xf32> to vector<2x128xf32>
    %511 = arith.truncf %486 : vector<2x32xf32> to vector<2x32xbf16>
    %cst_141 = arith.constant dense<0.000000e+00> : vector<2x128xf32>
    %512 = tpu.matmul %511, %4, %cst_141 {dimension_numbers = #tpu.dot_dimension_numbers<[1], [0], [0], [1], [0, 0, 1, 1], [], []>} : vector<2x32xbf16>, vector<32x128xbf16>, vector<2x128xf32> -> vector<2x128xf32>
    %513 = arith.addf %510, %512 : vector<2x128xf32>
    %514 = arith.negf %508 : vector<2x128xf32>
    %515 = math.exp %514 : vector<2x128xf32>
    %cst_142 = arith.constant 1.000000e+00 : f32
    %516 = vector.broadcast %cst_142 : f32 to vector<2x128xf32>
    %517 = arith.addf %516, %515 : vector<2x128xf32>
    %518 = arith.divf %516, %517 : vector<2x128xf32>
    %519 = math.tanh %508 : vector<2x128xf32>
    %520 = vector.extract_strided_slice %518 {offsets = [0, 0], sizes = [2, 32], strides = [1, 1]} : vector<2x128xf32> to vector<2x32xf32>
    %521 = vector.extract_strided_slice %518 {offsets = [0, 32], sizes = [2, 32], strides = [1, 1]} : vector<2x128xf32> to vector<2x32xf32>
    %522 = vector.extract_strided_slice %519 {offsets = [0, 64], sizes = [2, 32], strides = [1, 1]} : vector<2x128xf32> to vector<2x32xf32>
    %523 = vector.extract_strided_slice %518 {offsets = [0, 96], sizes = [2, 32], strides = [1, 1]} : vector<2x128xf32> to vector<2x32xf32>
    %524 = arith.mulf %521, %464 : vector<2x32xf32>
    %525 = arith.mulf %520, %522 : vector<2x32xf32>
    %526 = arith.addf %524, %525 : vector<2x32xf32>
    %527 = math.tanh %526 : vector<2x32xf32>
    %528 = arith.mulf %523, %527 : vector<2x32xf32>
    %529 = vector.shape_cast %501 : vector<2x1xi1> to vector<2x1xi1>
    %530 = vector.broadcast %529 : vector<2x1xi1> to vector<2x32xi1>
    %531 = arith.select %530, %528, %461 : vector<2x32xi1>, vector<2x32xf32>
    %532 = vector.shape_cast %501 : vector<2x1xi1> to vector<2x1xi1>
    %533 = vector.broadcast %532 : vector<2x1xi1> to vector<2x32xi1>
    %534 = arith.select %533, %526, %464 : vector<2x32xi1>, vector<2x32xf32>
    %cst_143 = arith.constant 0.000000e+00 : f32
    %535 = vector.shape_cast %501 : vector<2x1xi1> to vector<2x1xi1>
    %536 = vector.broadcast %535 : vector<2x1xi1> to vector<2x32xi1>
    %537 = vector.broadcast %cst_143 : f32 to vector<2x32xf32>
    %538 = arith.select %536, %528, %537 : vector<2x32xi1>, vector<2x32xf32>
    %539 = arith.negf %513 : vector<2x128xf32>
    %540 = math.exp %539 : vector<2x128xf32>
    %cst_144 = arith.constant 1.000000e+00 : f32
    %541 = vector.broadcast %cst_144 : f32 to vector<2x128xf32>
    %542 = arith.addf %541, %540 : vector<2x128xf32>
    %543 = arith.divf %541, %542 : vector<2x128xf32>
    %544 = math.tanh %513 : vector<2x128xf32>
    %545 = vector.extract_strided_slice %543 {offsets = [0, 0], sizes = [2, 32], strides = [1, 1]} : vector<2x128xf32> to vector<2x32xf32>
    %546 = vector.extract_strided_slice %543 {offsets = [0, 32], sizes = [2, 32], strides = [1, 1]} : vector<2x128xf32> to vector<2x32xf32>
    %547 = vector.extract_strided_slice %544 {offsets = [0, 64], sizes = [2, 32], strides = [1, 1]} : vector<2x128xf32> to vector<2x32xf32>
    %548 = vector.extract_strided_slice %543 {offsets = [0, 96], sizes = [2, 32], strides = [1, 1]} : vector<2x128xf32> to vector<2x32xf32>
    %549 = arith.mulf %546, %489 : vector<2x32xf32>
    %550 = arith.mulf %545, %547 : vector<2x32xf32>
    %551 = arith.addf %549, %550 : vector<2x32xf32>
    %552 = math.tanh %551 : vector<2x32xf32>
    %553 = arith.mulf %548, %552 : vector<2x32xf32>
    %cst_145 = arith.constant 0.000000e+00 : f32
    %554 = vector.shape_cast %503 : vector<2x1xi1> to vector<2x1xi1>
    %555 = vector.broadcast %554 : vector<2x1xi1> to vector<2x32xi1>
    %556 = vector.broadcast %cst_145 : f32 to vector<2x32xf32>
    %557 = arith.select %555, %553, %556 : vector<2x32xi1>, vector<2x32xf32>
    %c0_146 = arith.constant 0 : index
    %c7_147 = arith.constant 7 : index
    %c0_148 = arith.constant 0 : index
    %558 = vector.load %arg7[%c0_146, %c7_147, %c0_148] : memref<2x8x64xf32, #tpu.memory_space<vmem>>, vector<2x1x32xf32>
    %559 = vector.shape_cast %558 : vector<2x1x32xf32> to vector<2x32xf32>
    %560 = vector.shape_cast %538 : vector<2x32xf32> to vector<2x1x32xf32>
    tpu.vector_store %arg7[%c0_146, %c7_147, %c0_148], %560 {strides = array<i32>} : memref<2x8x64xf32, #tpu.memory_space<vmem>>, vector<2x1x32xf32>,
    %c0_149 = arith.constant 0 : index
    %c0_150 = arith.constant 0 : index
    %c32_151 = arith.constant 32 : index
    %561 = vector.load %arg7[%c0_149, %c0_150, %c32_151] : memref<2x8x64xf32, #tpu.memory_space<vmem>>, vector<2x1x32xf32>
    %562 = vector.shape_cast %561 : vector<2x1x32xf32> to vector<2x32xf32>
    %563 = vector.shape_cast %557 : vector<2x32xf32> to vector<2x1x32xf32>
    tpu.vector_store %arg7[%c0_149, %c0_150, %c32_151], %563 {strides = array<i32>} : memref<2x8x64xf32, #tpu.memory_space<vmem>>, vector<2x1x32xf32>,
    %c0_i32_152 = arith.constant 0 : i32
    %564 = vector.broadcast %c0_i32_152 : i32 to vector<2x1xi32>
    %565 = arith.cmpi sgt, %2, %564 : vector<2x1xi32>
    %c0_153 = arith.constant 0 : index
    %c0_154 = arith.constant 0 : index
    %c0_155 = arith.constant 0 : index
    %566 = vector.load %arg1[%c0_153, %c0_154, %c0_155] : memref<2x8x128xf32, #tpu.memory_space<vmem>>, vector<2x1x128xf32>
    %567 = vector.shape_cast %566 : vector<2x1x128xf32> to vector<2x128xf32>
    %568 = arith.truncf %531 : vector<2x32xf32> to vector<2x32xbf16>
    %cst_156 = arith.constant dense<0.000000e+00> : vector<2x128xf32>
    %569 = tpu.matmul %568, %5, %cst_156 {dimension_numbers = #tpu.dot_dimension_numbers<[1], [0], [0], [1], [0, 0, 1, 1], [], []>} : vector<2x32xbf16>, vector<32x128xbf16>, vector<2x128xf32> -> vector<2x128xf32>
    %570 = arith.addf %567, %569 : vector<2x128xf32>
    %571 = arith.negf %570 : vector<2x128xf32>
    %572 = math.exp %571 : vector<2x128xf32>
    %cst_157 = arith.constant 1.000000e+00 : f32
    %573 = vector.broadcast %cst_157 : f32 to vector<2x128xf32>
    %574 = arith.addf %573, %572 : vector<2x128xf32>
    %575 = arith.divf %573, %574 : vector<2x128xf32>
    %576 = math.tanh %570 : vector<2x128xf32>
    %577 = vector.extract_strided_slice %575 {offsets = [0, 0], sizes = [2, 32], strides = [1, 1]} : vector<2x128xf32> to vector<2x32xf32>
    %578 = vector.extract_strided_slice %575 {offsets = [0, 32], sizes = [2, 32], strides = [1, 1]} : vector<2x128xf32> to vector<2x32xf32>
    %579 = vector.extract_strided_slice %576 {offsets = [0, 64], sizes = [2, 32], strides = [1, 1]} : vector<2x128xf32> to vector<2x32xf32>
    %580 = vector.extract_strided_slice %575 {offsets = [0, 96], sizes = [2, 32], strides = [1, 1]} : vector<2x128xf32> to vector<2x32xf32>
    %581 = arith.mulf %578, %534 : vector<2x32xf32>
    %582 = arith.mulf %577, %579 : vector<2x32xf32>
    %583 = arith.addf %581, %582 : vector<2x32xf32>
    %584 = math.tanh %583 : vector<2x32xf32>
    %585 = arith.mulf %580, %584 : vector<2x32xf32>
    %586 = vector.shape_cast %565 : vector<2x1xi1> to vector<2x1xi1>
    %587 = vector.broadcast %586 : vector<2x1xi1> to vector<2x32xi1>
    %588 = arith.select %587, %585, %531 : vector<2x32xi1>, vector<2x32xf32>
    %589 = vector.shape_cast %565 : vector<2x1xi1> to vector<2x1xi1>
    %590 = vector.broadcast %589 : vector<2x1xi1> to vector<2x32xi1>
    %591 = arith.select %590, %583, %534 : vector<2x32xi1>, vector<2x32xf32>
    %cst_158 = arith.constant 0.000000e+00 : f32
    %592 = vector.shape_cast %565 : vector<2x1xi1> to vector<2x1xi1>
    %593 = vector.broadcast %592 : vector<2x1xi1> to vector<2x32xi1>
    %594 = vector.broadcast %cst_158 : f32 to vector<2x32xf32>
    %595 = arith.select %593, %585, %594 : vector<2x32xi1>, vector<2x32xf32>
    %c0_159 = arith.constant 0 : index
    %c0_160 = arith.constant 0 : index
    %c0_161 = arith.constant 0 : index
    %596 = vector.load %arg8[%c0_159, %c0_160, %c0_161] : memref<2x8x32xf32, #tpu.memory_space<vmem>>, vector<2x1x32xf32>
    %597 = vector.shape_cast %596 : vector<2x1x32xf32> to vector<2x32xf32>
    %598 = vector.shape_cast %595 : vector<2x32xf32> to vector<2x1x32xf32>
    tpu.vector_store %arg8[%c0_159, %c0_160, %c0_161], %598 {strides = array<i32>} : memref<2x8x32xf32, #tpu.memory_space<vmem>>, vector<2x1x32xf32>,
    %c1_i32_162 = arith.constant 1 : i32
    %599 = vector.broadcast %c1_i32_162 : i32 to vector<2x1xi32>
    %600 = arith.cmpi sgt, %2, %599 : vector<2x1xi32>
    %c0_163 = arith.constant 0 : index
    %c1_164 = arith.constant 1 : index
    %c0_165 = arith.constant 0 : index
    %601 = vector.load %arg1[%c0_163, %c1_164, %c0_165] : memref<2x8x128xf32, #tpu.memory_space<vmem>>, vector<2x1x128xf32>
    %602 = vector.shape_cast %601 : vector<2x1x128xf32> to vector<2x128xf32>
    %603 = arith.truncf %588 : vector<2x32xf32> to vector<2x32xbf16>
    %cst_166 = arith.constant dense<0.000000e+00> : vector<2x128xf32>
    %604 = tpu.matmul %603, %5, %cst_166 {dimension_numbers = #tpu.dot_dimension_numbers<[1], [0], [0], [1], [0, 0, 1, 1], [], []>} : vector<2x32xbf16>, vector<32x128xbf16>, vector<2x128xf32> -> vector<2x128xf32>
    %605 = arith.addf %602, %604 : vector<2x128xf32>
    %606 = arith.negf %605 : vector<2x128xf32>
    %607 = math.exp %606 : vector<2x128xf32>
    %cst_167 = arith.constant 1.000000e+00 : f32
    %608 = vector.broadcast %cst_167 : f32 to vector<2x128xf32>
    %609 = arith.addf %608, %607 : vector<2x128xf32>
    %610 = arith.divf %608, %609 : vector<2x128xf32>
    %611 = math.tanh %605 : vector<2x128xf32>
    %612 = vector.extract_strided_slice %610 {offsets = [0, 0], sizes = [2, 32], strides = [1, 1]} : vector<2x128xf32> to vector<2x32xf32>
    %613 = vector.extract_strided_slice %610 {offsets = [0, 32], sizes = [2, 32], strides = [1, 1]} : vector<2x128xf32> to vector<2x32xf32>
    %614 = vector.extract_strided_slice %611 {offsets = [0, 64], sizes = [2, 32], strides = [1, 1]} : vector<2x128xf32> to vector<2x32xf32>
    %615 = vector.extract_strided_slice %610 {offsets = [0, 96], sizes = [2, 32], strides = [1, 1]} : vector<2x128xf32> to vector<2x32xf32>
    %616 = arith.mulf %613, %591 : vector<2x32xf32>
    %617 = arith.mulf %612, %614 : vector<2x32xf32>
    %618 = arith.addf %616, %617 : vector<2x32xf32>
    %619 = math.tanh %618 : vector<2x32xf32>
    %620 = arith.mulf %615, %619 : vector<2x32xf32>
    %621 = vector.shape_cast %600 : vector<2x1xi1> to vector<2x1xi1>
    %622 = vector.broadcast %621 : vector<2x1xi1> to vector<2x32xi1>
    %623 = arith.select %622, %620, %588 : vector<2x32xi1>, vector<2x32xf32>
    %624 = vector.shape_cast %600 : vector<2x1xi1> to vector<2x1xi1>
    %625 = vector.broadcast %624 : vector<2x1xi1> to vector<2x32xi1>
    %626 = arith.select %625, %618, %591 : vector<2x32xi1>, vector<2x32xf32>
    %cst_168 = arith.constant 0.000000e+00 : f32
    %627 = vector.shape_cast %600 : vector<2x1xi1> to vector<2x1xi1>
    %628 = vector.broadcast %627 : vector<2x1xi1> to vector<2x32xi1>
    %629 = vector.broadcast %cst_168 : f32 to vector<2x32xf32>
    %630 = arith.select %628, %620, %629 : vector<2x32xi1>, vector<2x32xf32>
    %c0_169 = arith.constant 0 : index
    %c1_170 = arith.constant 1 : index
    %c0_171 = arith.constant 0 : index
    %631 = vector.load %arg8[%c0_169, %c1_170, %c0_171] : memref<2x8x32xf32, #tpu.memory_space<vmem>>, vector<2x1x32xf32>
    %632 = vector.shape_cast %631 : vector<2x1x32xf32> to vector<2x32xf32>
    %633 = vector.shape_cast %630 : vector<2x32xf32> to vector<2x1x32xf32>
    tpu.vector_store %arg8[%c0_169, %c1_170, %c0_171], %633 {strides = array<i32>} : memref<2x8x32xf32, #tpu.memory_space<vmem>>, vector<2x1x32xf32>,
    %c2_i32_172 = arith.constant 2 : i32
    %634 = vector.broadcast %c2_i32_172 : i32 to vector<2x1xi32>
    %635 = arith.cmpi sgt, %2, %634 : vector<2x1xi32>
    %c0_173 = arith.constant 0 : index
    %c2_174 = arith.constant 2 : index
    %c0_175 = arith.constant 0 : index
    %636 = vector.load %arg1[%c0_173, %c2_174, %c0_175] : memref<2x8x128xf32, #tpu.memory_space<vmem>>, vector<2x1x128xf32>
    %637 = vector.shape_cast %636 : vector<2x1x128xf32> to vector<2x128xf32>
    %638 = arith.truncf %623 : vector<2x32xf32> to vector<2x32xbf16>
    %cst_176 = arith.constant dense<0.000000e+00> : vector<2x128xf32>
    %639 = tpu.matmul %638, %5, %cst_176 {dimension_numbers = #tpu.dot_dimension_numbers<[1], [0], [0], [1], [0, 0, 1, 1], [], []>} : vector<2x32xbf16>, vector<32x128xbf16>, vector<2x128xf32> -> vector<2x128xf32>
    %640 = arith.addf %637, %639 : vector<2x128xf32>
    %641 = arith.negf %640 : vector<2x128xf32>
    %642 = math.exp %641 : vector<2x128xf32>
    %cst_177 = arith.constant 1.000000e+00 : f32
    %643 = vector.broadcast %cst_177 : f32 to vector<2x128xf32>
    %644 = arith.addf %643, %642 : vector<2x128xf32>
    %645 = arith.divf %643, %644 : vector<2x128xf32>
    %646 = math.tanh %640 : vector<2x128xf32>
    %647 = vector.extract_strided_slice %645 {offsets = [0, 0], sizes = [2, 32], strides = [1, 1]} : vector<2x128xf32> to vector<2x32xf32>
    %648 = vector.extract_strided_slice %645 {offsets = [0, 32], sizes = [2, 32], strides = [1, 1]} : vector<2x128xf32> to vector<2x32xf32>
    %649 = vector.extract_strided_slice %646 {offsets = [0, 64], sizes = [2, 32], strides = [1, 1]} : vector<2x128xf32> to vector<2x32xf32>
    %650 = vector.extract_strided_slice %645 {offsets = [0, 96], sizes = [2, 32], strides = [1, 1]} : vector<2x128xf32> to vector<2x32xf32>
    %651 = arith.mulf %648, %626 : vector<2x32xf32>
    %652 = arith.mulf %647, %649 : vector<2x32xf32>
    %653 = arith.addf %651, %652 : vector<2x32xf32>
    %654 = math.tanh %653 : vector<2x32xf32>
    %655 = arith.mulf %650, %654 : vector<2x32xf32>
    %656 = vector.shape_cast %635 : vector<2x1xi1> to vector<2x1xi1>
    %657 = vector.broadcast %656 : vector<2x1xi1> to vector<2x32xi1>
    %658 = arith.select %657, %655, %623 : vector<2x32xi1>, vector<2x32xf32>
    %659 = vector.shape_cast %635 : vector<2x1xi1> to vector<2x1xi1>
    %660 = vector.broadcast %659 : vector<2x1xi1> to vector<2x32xi1>
    %661 = arith.select %660, %653, %626 : vector<2x32xi1>, vector<2x32xf32>
    %cst_178 = arith.constant 0.000000e+00 : f32
    %662 = vector.shape_cast %635 : vector<2x1xi1> to vector<2x1xi1>
    %663 = vector.broadcast %662 : vector<2x1xi1> to vector<2x32xi1>
    %664 = vector.broadcast %cst_178 : f32 to vector<2x32xf32>
    %665 = arith.select %663, %655, %664 : vector<2x32xi1>, vector<2x32xf32>
    %c0_179 = arith.constant 0 : index
    %c2_180 = arith.constant 2 : index
    %c0_181 = arith.constant 0 : index
    %666 = vector.load %arg8[%c0_179, %c2_180, %c0_181] : memref<2x8x32xf32, #tpu.memory_space<vmem>>, vector<2x1x32xf32>
    %667 = vector.shape_cast %666 : vector<2x1x32xf32> to vector<2x32xf32>
    %668 = vector.shape_cast %665 : vector<2x32xf32> to vector<2x1x32xf32>
    tpu.vector_store %arg8[%c0_179, %c2_180, %c0_181], %668 {strides = array<i32>} : memref<2x8x32xf32, #tpu.memory_space<vmem>>, vector<2x1x32xf32>,
    %c3_i32_182 = arith.constant 3 : i32
    %669 = vector.broadcast %c3_i32_182 : i32 to vector<2x1xi32>
    %670 = arith.cmpi sgt, %2, %669 : vector<2x1xi32>
    %c0_183 = arith.constant 0 : index
    %c3_184 = arith.constant 3 : index
    %c0_185 = arith.constant 0 : index
    %671 = vector.load %arg1[%c0_183, %c3_184, %c0_185] : memref<2x8x128xf32, #tpu.memory_space<vmem>>, vector<2x1x128xf32>
    %672 = vector.shape_cast %671 : vector<2x1x128xf32> to vector<2x128xf32>
    %673 = arith.truncf %658 : vector<2x32xf32> to vector<2x32xbf16>
    %cst_186 = arith.constant dense<0.000000e+00> : vector<2x128xf32>
    %674 = tpu.matmul %673, %5, %cst_186 {dimension_numbers = #tpu.dot_dimension_numbers<[1], [0], [0], [1], [0, 0, 1, 1], [], []>} : vector<2x32xbf16>, vector<32x128xbf16>, vector<2x128xf32> -> vector<2x128xf32>
    %675 = arith.addf %672, %674 : vector<2x128xf32>
    %676 = arith.negf %675 : vector<2x128xf32>
    %677 = math.exp %676 : vector<2x128xf32>
    %cst_187 = arith.constant 1.000000e+00 : f32
    %678 = vector.broadcast %cst_187 : f32 to vector<2x128xf32>
    %679 = arith.addf %678, %677 : vector<2x128xf32>
    %680 = arith.divf %678, %679 : vector<2x128xf32>
    %681 = math.tanh %675 : vector<2x128xf32>
    %682 = vector.extract_strided_slice %680 {offsets = [0, 0], sizes = [2, 32], strides = [1, 1]} : vector<2x128xf32> to vector<2x32xf32>
    %683 = vector.extract_strided_slice %680 {offsets = [0, 32], sizes = [2, 32], strides = [1, 1]} : vector<2x128xf32> to vector<2x32xf32>
    %684 = vector.extract_strided_slice %681 {offsets = [0, 64], sizes = [2, 32], strides = [1, 1]} : vector<2x128xf32> to vector<2x32xf32>
    %685 = vector.extract_strided_slice %680 {offsets = [0, 96], sizes = [2, 32], strides = [1, 1]} : vector<2x128xf32> to vector<2x32xf32>
    %686 = arith.mulf %683, %661 : vector<2x32xf32>
    %687 = arith.mulf %682, %684 : vector<2x32xf32>
    %688 = arith.addf %686, %687 : vector<2x32xf32>
    %689 = math.tanh %688 : vector<2x32xf32>
    %690 = arith.mulf %685, %689 : vector<2x32xf32>
    %691 = vector.shape_cast %670 : vector<2x1xi1> to vector<2x1xi1>
    %692 = vector.broadcast %691 : vector<2x1xi1> to vector<2x32xi1>
    %693 = arith.select %692, %690, %658 : vector<2x32xi1>, vector<2x32xf32>
    %694 = vector.shape_cast %670 : vector<2x1xi1> to vector<2x1xi1>
    %695 = vector.broadcast %694 : vector<2x1xi1> to vector<2x32xi1>
    %696 = arith.select %695, %688, %661 : vector<2x32xi1>, vector<2x32xf32>
    %cst_188 = arith.constant 0.000000e+00 : f32
    %697 = vector.shape_cast %670 : vector<2x1xi1> to vector<2x1xi1>
    %698 = vector.broadcast %697 : vector<2x1xi1> to vector<2x32xi1>
    %699 = vector.broadcast %cst_188 : f32 to vector<2x32xf32>
    %700 = arith.select %698, %690, %699 : vector<2x32xi1>, vector<2x32xf32>
    %c0_189 = arith.constant 0 : index
    %c3_190 = arith.constant 3 : index
    %c0_191 = arith.constant 0 : index
    %701 = vector.load %arg8[%c0_189, %c3_190, %c0_191] : memref<2x8x32xf32, #tpu.memory_space<vmem>>, vector<2x1x32xf32>
    %702 = vector.shape_cast %701 : vector<2x1x32xf32> to vector<2x32xf32>
    %703 = vector.shape_cast %700 : vector<2x32xf32> to vector<2x1x32xf32>
    tpu.vector_store %arg8[%c0_189, %c3_190, %c0_191], %703 {strides = array<i32>} : memref<2x8x32xf32, #tpu.memory_space<vmem>>, vector<2x1x32xf32>,
    %c4_i32_192 = arith.constant 4 : i32
    %704 = vector.broadcast %c4_i32_192 : i32 to vector<2x1xi32>
    %705 = arith.cmpi sgt, %2, %704 : vector<2x1xi32>
    %c0_193 = arith.constant 0 : index
    %c4_194 = arith.constant 4 : index
    %c0_195 = arith.constant 0 : index
    %706 = vector.load %arg1[%c0_193, %c4_194, %c0_195] : memref<2x8x128xf32, #tpu.memory_space<vmem>>, vector<2x1x128xf32>
    %707 = vector.shape_cast %706 : vector<2x1x128xf32> to vector<2x128xf32>
    %708 = arith.truncf %693 : vector<2x32xf32> to vector<2x32xbf16>
    %cst_196 = arith.constant dense<0.000000e+00> : vector<2x128xf32>
    %709 = tpu.matmul %708, %5, %cst_196 {dimension_numbers = #tpu.dot_dimension_numbers<[1], [0], [0], [1], [0, 0, 1, 1], [], []>} : vector<2x32xbf16>, vector<32x128xbf16>, vector<2x128xf32> -> vector<2x128xf32>
    %710 = arith.addf %707, %709 : vector<2x128xf32>
    %711 = arith.negf %710 : vector<2x128xf32>
    %712 = math.exp %711 : vector<2x128xf32>
    %cst_197 = arith.constant 1.000000e+00 : f32
    %713 = vector.broadcast %cst_197 : f32 to vector<2x128xf32>
    %714 = arith.addf %713, %712 : vector<2x128xf32>
    %715 = arith.divf %713, %714 : vector<2x128xf32>
    %716 = math.tanh %710 : vector<2x128xf32>
    %717 = vector.extract_strided_slice %715 {offsets = [0, 0], sizes = [2, 32], strides = [1, 1]} : vector<2x128xf32> to vector<2x32xf32>
    %718 = vector.extract_strided_slice %715 {offsets = [0, 32], sizes = [2, 32], strides = [1, 1]} : vector<2x128xf32> to vector<2x32xf32>
    %719 = vector.extract_strided_slice %716 {offsets = [0, 64], sizes = [2, 32], strides = [1, 1]} : vector<2x128xf32> to vector<2x32xf32>
    %720 = vector.extract_strided_slice %715 {offsets = [0, 96], sizes = [2, 32], strides = [1, 1]} : vector<2x128xf32> to vector<2x32xf32>
    %721 = arith.mulf %718, %696 : vector<2x32xf32>
    %722 = arith.mulf %717, %719 : vector<2x32xf32>
    %723 = arith.addf %721, %722 : vector<2x32xf32>
    %724 = math.tanh %723 : vector<2x32xf32>
    %725 = arith.mulf %720, %724 : vector<2x32xf32>
    %726 = vector.shape_cast %705 : vector<2x1xi1> to vector<2x1xi1>
    %727 = vector.broadcast %726 : vector<2x1xi1> to vector<2x32xi1>
    %728 = arith.select %727, %725, %693 : vector<2x32xi1>, vector<2x32xf32>
    %729 = vector.shape_cast %705 : vector<2x1xi1> to vector<2x1xi1>
    %730 = vector.broadcast %729 : vector<2x1xi1> to vector<2x32xi1>
    %731 = arith.select %730, %723, %696 : vector<2x32xi1>, vector<2x32xf32>
    %cst_198 = arith.constant 0.000000e+00 : f32
    %732 = vector.shape_cast %705 : vector<2x1xi1> to vector<2x1xi1>
    %733 = vector.broadcast %732 : vector<2x1xi1> to vector<2x32xi1>
    %734 = vector.broadcast %cst_198 : f32 to vector<2x32xf32>
    %735 = arith.select %733, %725, %734 : vector<2x32xi1>, vector<2x32xf32>
    %c0_199 = arith.constant 0 : index
    %c4_200 = arith.constant 4 : index
    %c0_201 = arith.constant 0 : index
    %736 = vector.load %arg8[%c0_199, %c4_200, %c0_201] : memref<2x8x32xf32, #tpu.memory_space<vmem>>, vector<2x1x32xf32>
    %737 = vector.shape_cast %736 : vector<2x1x32xf32> to vector<2x32xf32>
    %738 = vector.shape_cast %735 : vector<2x32xf32> to vector<2x1x32xf32>
    tpu.vector_store %arg8[%c0_199, %c4_200, %c0_201], %738 {strides = array<i32>} : memref<2x8x32xf32, #tpu.memory_space<vmem>>, vector<2x1x32xf32>,
    %c5_i32_202 = arith.constant 5 : i32
    %739 = vector.broadcast %c5_i32_202 : i32 to vector<2x1xi32>
    %740 = arith.cmpi sgt, %2, %739 : vector<2x1xi32>
    %c0_203 = arith.constant 0 : index
    %c5_204 = arith.constant 5 : index
    %c0_205 = arith.constant 0 : index
    %741 = vector.load %arg1[%c0_203, %c5_204, %c0_205] : memref<2x8x128xf32, #tpu.memory_space<vmem>>, vector<2x1x128xf32>
    %742 = vector.shape_cast %741 : vector<2x1x128xf32> to vector<2x128xf32>
    %743 = arith.truncf %728 : vector<2x32xf32> to vector<2x32xbf16>
    %cst_206 = arith.constant dense<0.000000e+00> : vector<2x128xf32>
    %744 = tpu.matmul %743, %5, %cst_206 {dimension_numbers = #tpu.dot_dimension_numbers<[1], [0], [0], [1], [0, 0, 1, 1], [], []>} : vector<2x32xbf16>, vector<32x128xbf16>, vector<2x128xf32> -> vector<2x128xf32>
    %745 = arith.addf %742, %744 : vector<2x128xf32>
    %746 = arith.negf %745 : vector<2x128xf32>
    %747 = math.exp %746 : vector<2x128xf32>
    %cst_207 = arith.constant 1.000000e+00 : f32
    %748 = vector.broadcast %cst_207 : f32 to vector<2x128xf32>
    %749 = arith.addf %748, %747 : vector<2x128xf32>
    %750 = arith.divf %748, %749 : vector<2x128xf32>
    %751 = math.tanh %745 : vector<2x128xf32>
    %752 = vector.extract_strided_slice %750 {offsets = [0, 0], sizes = [2, 32], strides = [1, 1]} : vector<2x128xf32> to vector<2x32xf32>
    %753 = vector.extract_strided_slice %750 {offsets = [0, 32], sizes = [2, 32], strides = [1, 1]} : vector<2x128xf32> to vector<2x32xf32>
    %754 = vector.extract_strided_slice %751 {offsets = [0, 64], sizes = [2, 32], strides = [1, 1]} : vector<2x128xf32> to vector<2x32xf32>
    %755 = vector.extract_strided_slice %750 {offsets = [0, 96], sizes = [2, 32], strides = [1, 1]} : vector<2x128xf32> to vector<2x32xf32>
    %756 = arith.mulf %753, %731 : vector<2x32xf32>
    %757 = arith.mulf %752, %754 : vector<2x32xf32>
    %758 = arith.addf %756, %757 : vector<2x32xf32>
    %759 = math.tanh %758 : vector<2x32xf32>
    %760 = arith.mulf %755, %759 : vector<2x32xf32>
    %761 = vector.shape_cast %740 : vector<2x1xi1> to vector<2x1xi1>
    %762 = vector.broadcast %761 : vector<2x1xi1> to vector<2x32xi1>
    %763 = arith.select %762, %760, %728 : vector<2x32xi1>, vector<2x32xf32>
    %764 = vector.shape_cast %740 : vector<2x1xi1> to vector<2x1xi1>
    %765 = vector.broadcast %764 : vector<2x1xi1> to vector<2x32xi1>
    %766 = arith.select %765, %758, %731 : vector<2x32xi1>, vector<2x32xf32>
    %cst_208 = arith.constant 0.000000e+00 : f32
    %767 = vector.shape_cast %740 : vector<2x1xi1> to vector<2x1xi1>
    %768 = vector.broadcast %767 : vector<2x1xi1> to vector<2x32xi1>
    %769 = vector.broadcast %cst_208 : f32 to vector<2x32xf32>
    %770 = arith.select %768, %760, %769 : vector<2x32xi1>, vector<2x32xf32>
    %c0_209 = arith.constant 0 : index
    %c5_210 = arith.constant 5 : index
    %c0_211 = arith.constant 0 : index
    %771 = vector.load %arg8[%c0_209, %c5_210, %c0_211] : memref<2x8x32xf32, #tpu.memory_space<vmem>>, vector<2x1x32xf32>
    %772 = vector.shape_cast %771 : vector<2x1x32xf32> to vector<2x32xf32>
    %773 = vector.shape_cast %770 : vector<2x32xf32> to vector<2x1x32xf32>
    tpu.vector_store %arg8[%c0_209, %c5_210, %c0_211], %773 {strides = array<i32>} : memref<2x8x32xf32, #tpu.memory_space<vmem>>, vector<2x1x32xf32>,
    %c6_i32_212 = arith.constant 6 : i32
    %774 = vector.broadcast %c6_i32_212 : i32 to vector<2x1xi32>
    %775 = arith.cmpi sgt, %2, %774 : vector<2x1xi32>
    %c0_213 = arith.constant 0 : index
    %c6_214 = arith.constant 6 : index
    %c0_215 = arith.constant 0 : index
    %776 = vector.load %arg1[%c0_213, %c6_214, %c0_215] : memref<2x8x128xf32, #tpu.memory_space<vmem>>, vector<2x1x128xf32>
    %777 = vector.shape_cast %776 : vector<2x1x128xf32> to vector<2x128xf32>
    %778 = arith.truncf %763 : vector<2x32xf32> to vector<2x32xbf16>
    %cst_216 = arith.constant dense<0.000000e+00> : vector<2x128xf32>
    %779 = tpu.matmul %778, %5, %cst_216 {dimension_numbers = #tpu.dot_dimension_numbers<[1], [0], [0], [1], [0, 0, 1, 1], [], []>} : vector<2x32xbf16>, vector<32x128xbf16>, vector<2x128xf32> -> vector<2x128xf32>
    %780 = arith.addf %777, %779 : vector<2x128xf32>
    %781 = arith.negf %780 : vector<2x128xf32>
    %782 = math.exp %781 : vector<2x128xf32>
    %cst_217 = arith.constant 1.000000e+00 : f32
    %783 = vector.broadcast %cst_217 : f32 to vector<2x128xf32>
    %784 = arith.addf %783, %782 : vector<2x128xf32>
    %785 = arith.divf %783, %784 : vector<2x128xf32>
    %786 = math.tanh %780 : vector<2x128xf32>
    %787 = vector.extract_strided_slice %785 {offsets = [0, 0], sizes = [2, 32], strides = [1, 1]} : vector<2x128xf32> to vector<2x32xf32>
    %788 = vector.extract_strided_slice %785 {offsets = [0, 32], sizes = [2, 32], strides = [1, 1]} : vector<2x128xf32> to vector<2x32xf32>
    %789 = vector.extract_strided_slice %786 {offsets = [0, 64], sizes = [2, 32], strides = [1, 1]} : vector<2x128xf32> to vector<2x32xf32>
    %790 = vector.extract_strided_slice %785 {offsets = [0, 96], sizes = [2, 32], strides = [1, 1]} : vector<2x128xf32> to vector<2x32xf32>
    %791 = arith.mulf %788, %766 : vector<2x32xf32>
    %792 = arith.mulf %787, %789 : vector<2x32xf32>
    %793 = arith.addf %791, %792 : vector<2x32xf32>
    %794 = math.tanh %793 : vector<2x32xf32>
    %795 = arith.mulf %790, %794 : vector<2x32xf32>
    %796 = vector.shape_cast %775 : vector<2x1xi1> to vector<2x1xi1>
    %797 = vector.broadcast %796 : vector<2x1xi1> to vector<2x32xi1>
    %798 = arith.select %797, %795, %763 : vector<2x32xi1>, vector<2x32xf32>
    %799 = vector.shape_cast %775 : vector<2x1xi1> to vector<2x1xi1>
    %800 = vector.broadcast %799 : vector<2x1xi1> to vector<2x32xi1>
    %801 = arith.select %800, %793, %766 : vector<2x32xi1>, vector<2x32xf32>
    %cst_218 = arith.constant 0.000000e+00 : f32
    %802 = vector.shape_cast %775 : vector<2x1xi1> to vector<2x1xi1>
    %803 = vector.broadcast %802 : vector<2x1xi1> to vector<2x32xi1>
    %804 = vector.broadcast %cst_218 : f32 to vector<2x32xf32>
    %805 = arith.select %803, %795, %804 : vector<2x32xi1>, vector<2x32xf32>
    %c0_219 = arith.constant 0 : index
    %c6_220 = arith.constant 6 : index
    %c0_221 = arith.constant 0 : index
    %806 = vector.load %arg8[%c0_219, %c6_220, %c0_221] : memref<2x8x32xf32, #tpu.memory_space<vmem>>, vector<2x1x32xf32>
    %807 = vector.shape_cast %806 : vector<2x1x32xf32> to vector<2x32xf32>
    %808 = vector.shape_cast %805 : vector<2x32xf32> to vector<2x1x32xf32>
    tpu.vector_store %arg8[%c0_219, %c6_220, %c0_221], %808 {strides = array<i32>} : memref<2x8x32xf32, #tpu.memory_space<vmem>>, vector<2x1x32xf32>,
    %c7_i32_222 = arith.constant 7 : i32
    %809 = vector.broadcast %c7_i32_222 : i32 to vector<2x1xi32>
    %810 = arith.cmpi sgt, %2, %809 : vector<2x1xi32>
    %c0_223 = arith.constant 0 : index
    %c7_224 = arith.constant 7 : index
    %c0_225 = arith.constant 0 : index
    %811 = vector.load %arg1[%c0_223, %c7_224, %c0_225] : memref<2x8x128xf32, #tpu.memory_space<vmem>>, vector<2x1x128xf32>
    %812 = vector.shape_cast %811 : vector<2x1x128xf32> to vector<2x128xf32>
    %813 = arith.truncf %798 : vector<2x32xf32> to vector<2x32xbf16>
    %cst_226 = arith.constant dense<0.000000e+00> : vector<2x128xf32>
    %814 = tpu.matmul %813, %5, %cst_226 {dimension_numbers = #tpu.dot_dimension_numbers<[1], [0], [0], [1], [0, 0, 1, 1], [], []>} : vector<2x32xbf16>, vector<32x128xbf16>, vector<2x128xf32> -> vector<2x128xf32>
    %815 = arith.addf %812, %814 : vector<2x128xf32>
    %816 = arith.negf %815 : vector<2x128xf32>
    %817 = math.exp %816 : vector<2x128xf32>
    %cst_227 = arith.constant 1.000000e+00 : f32
    %818 = vector.broadcast %cst_227 : f32 to vector<2x128xf32>
    %819 = arith.addf %818, %817 : vector<2x128xf32>
    %820 = arith.divf %818, %819 : vector<2x128xf32>
    %821 = math.tanh %815 : vector<2x128xf32>
    %822 = vector.extract_strided_slice %820 {offsets = [0, 0], sizes = [2, 32], strides = [1, 1]} : vector<2x128xf32> to vector<2x32xf32>
    %823 = vector.extract_strided_slice %820 {offsets = [0, 32], sizes = [2, 32], strides = [1, 1]} : vector<2x128xf32> to vector<2x32xf32>
    %824 = vector.extract_strided_slice %821 {offsets = [0, 64], sizes = [2, 32], strides = [1, 1]} : vector<2x128xf32> to vector<2x32xf32>
    %825 = vector.extract_strided_slice %820 {offsets = [0, 96], sizes = [2, 32], strides = [1, 1]} : vector<2x128xf32> to vector<2x32xf32>
    %826 = arith.mulf %823, %801 : vector<2x32xf32>
    %827 = arith.mulf %822, %824 : vector<2x32xf32>
    %828 = arith.addf %826, %827 : vector<2x32xf32>
    %829 = math.tanh %828 : vector<2x32xf32>
    %830 = arith.mulf %825, %829 : vector<2x32xf32>
    %cst_228 = arith.constant 0.000000e+00 : f32
    %831 = vector.shape_cast %810 : vector<2x1xi1> to vector<2x1xi1>
    %832 = vector.broadcast %831 : vector<2x1xi1> to vector<2x32xi1>
    %833 = vector.broadcast %cst_228 : f32 to vector<2x32xf32>
    %834 = arith.select %832, %830, %833 : vector<2x32xi1>, vector<2x32xf32>
    %c0_229 = arith.constant 0 : index
    %c7_230 = arith.constant 7 : index
    %c0_231 = arith.constant 0 : index
    %835 = vector.load %arg8[%c0_229, %c7_230, %c0_231] : memref<2x8x32xf32, #tpu.memory_space<vmem>>, vector<2x1x32xf32>
    %836 = vector.shape_cast %835 : vector<2x1x32xf32> to vector<2x32xf32>
    %837 = vector.shape_cast %834 : vector<2x32xf32> to vector<2x1x32xf32>
    tpu.vector_store %arg8[%c0_229, %c7_230, %c0_231], %837 {strides = array<i32>} : memref<2x8x32xf32, #tpu.memory_space<vmem>>, vector<2x1x32xf32>,
    %c0_232 = arith.constant 0 : index
    %c0_233 = arith.constant 0 : index
    %c0_234 = arith.constant 0 : index
    %838 = vector.load %arg7[%c0_232, %c0_233, %c0_234] : memref<2x8x64xf32, #tpu.memory_space<vmem>>, vector<2x8x64xf32>
    %839 = vector.shape_cast %838 : vector<2x8x64xf32> to vector<16x64xf32>
    %840 = arith.truncf %839 : vector<16x64xf32> to vector<16x64xbf16>
    %c0_235 = arith.constant 0 : index
    %c0_236 = arith.constant 0 : index
    %c0_237 = arith.constant 0 : index
    %841 = vector.load %arg8[%c0_235, %c0_236, %c0_237] : memref<2x8x32xf32, #tpu.memory_space<vmem>>, vector<2x8x32xf32>
    %842 = vector.shape_cast %841 : vector<2x8x32xf32> to vector<16x32xf32>
    %843 = arith.truncf %842 : vector<16x32xf32> to vector<16x32xbf16>
    %c0_238 = arith.constant 0 : index
    %c0_239 = arith.constant 0 : index
    %844 = vector.load %arg5[%c0_238, %c0_239] : memref<1x128xf32, #tpu.memory_space<vmem>>, vector<1x64xf32>
    %c0_240 = arith.constant 0 : index
    %c64 = arith.constant 64 : index
    %845 = vector.load %arg5[%c0_240, %c64] : memref<1x128xf32, #tpu.memory_space<vmem>>, vector<1x64xf32>
    %c0_241 = arith.constant 0 : index
    %c0_242 = arith.constant 0 : index
    %846 = vector.load %arg4[%c0_241, %c0_242] : memref<64x64xbf16, #tpu.memory_space<vmem>>, vector<64x64xbf16>
    %cst_243 = arith.constant dense<0.000000e+00> : vector<16x64xf32>
    %847 = tpu.matmul %840, %846, %cst_243 {dimension_numbers = #tpu.dot_dimension_numbers<[1], [0], [0], [1], [0, 0, 1, 1], [], []>} : vector<16x64xbf16>, vector<64x64xbf16>, vector<16x64xf32> -> vector<16x64xf32>
    %848 = vector.broadcast %845 : vector<1x64xf32> to vector<16x64xf32>
    %849 = arith.addf %847, %848 : vector<16x64xf32>
    %850 = vector.extract_strided_slice %849 {offsets = [0, 0], sizes = [16, 32], strides = [1, 1]} : vector<16x64xf32> to vector<16x32xf32>
    %851 = vector.shape_cast %850 : vector<16x32xf32> to vector<2x8x32xf32>
    %852 = vector.extract_strided_slice %849 {offsets = [0, 32], sizes = [16, 32], strides = [1, 1]} : vector<16x64xf32> to vector<16x32xf32>
    %853 = vector.shape_cast %852 : vector<16x32xf32> to vector<2x8x32xf32>
    %cst_244 = arith.constant dense<0.000000e+00> : vector<16x64xf32>
    %854 = tpu.matmul %843, %7, %cst_244 {dimension_numbers = #tpu.dot_dimension_numbers<[1], [0], [0], [1], [0, 0, 1, 1], [], []>} : vector<16x32xbf16>, vector<32x64xbf16>, vector<16x64xf32> -> vector<16x64xf32>
    %855 = vector.broadcast %844 : vector<1x64xf32> to vector<16x64xf32>
    %856 = arith.addf %854, %855 : vector<16x64xf32>
    %857 = vector.extract_strided_slice %856 {offsets = [0, 0], sizes = [16, 32], strides = [1, 1]} : vector<16x64xf32> to vector<16x32xf32>
    %858 = vector.shape_cast %857 : vector<16x32xf32> to vector<2x8x32xf32>
    %859 = vector.extract_strided_slice %856 {offsets = [0, 32], sizes = [16, 32], strides = [1, 1]} : vector<16x64xf32> to vector<16x32xf32>
    %860 = arith.truncf %858 : vector<2x8x32xf32> to vector<2x8x32xbf16>
    %861 = arith.truncf %851 : vector<2x8x32xf32> to vector<2x8x32xbf16>
    "tpu.trace_start"() <{level = 10 : i32, message = "btd,bsd->bts"}> : () -> ()
    %cst_245 = arith.constant dense<0.000000e+00> : vector<2x8x8xf32>
    %862 = tpu.matmul %860, %861, %cst_245 {dimension_numbers = #tpu.dot_dimension_numbers<[2], [2], [1], [1], [0, 0, 0, 1, 1, 1], [0], [0]>} : vector<2x8x32xbf16>, vector<2x8x32xbf16>, vector<2x8x8xf32> -> vector<2x8x8xf32>
    "tpu.trace_stop"() : () -> ()
    %cst_246 = arith.constant dense<0xFF800000> : vector<2x8xf32>
    %863 = vector.multi_reduction <maximumf>, %862, %cst_246 [2] : vector<2x8x8xf32> to vector<2x8xf32>
    %864 = vector.shape_cast %863 : vector<2x8xf32> to vector<2x8x1xf32>
    %865 = vector.broadcast %864 : vector<2x8x1xf32> to vector<2x8x8xf32>
    %866 = arith.subf %862, %865 : vector<2x8x8xf32>
    %867 = math.exp %866 : vector<2x8x8xf32>
    %cst_247 = arith.constant dense<0.000000e+00> : vector<2x8xf32>
    %868 = vector.multi_reduction <add>, %867, %cst_247 [2] : vector<2x8x8xf32> to vector<2x8xf32>
    %869 = vector.shape_cast %868 : vector<2x8xf32> to vector<2x8x1xf32>
    %870 = vector.broadcast %869 : vector<2x8x1xf32> to vector<2x8x8xf32>
    %871 = arith.divf %867, %870 : vector<2x8x8xf32>
    %872 = arith.truncf %871 : vector<2x8x8xf32> to vector<2x8x8xbf16>
    %873 = arith.truncf %853 : vector<2x8x32xf32> to vector<2x8x32xbf16>
    "tpu.trace_start"() <{level = 10 : i32, message = "bts,bsd->btd"}> : () -> ()
    %cst_248 = arith.constant dense<0.000000e+00> : vector<2x8x32xf32>
    %874 = tpu.matmul %872, %873, %cst_248 {dimension_numbers = #tpu.dot_dimension_numbers<[2], [1], [1], [2], [0, 0, 0, 1, 1, 2], [0], [0]>} : vector<2x8x8xbf16>, vector<2x8x32xbf16>, vector<2x8x32xf32> -> vector<2x8x32xf32>
    "tpu.trace_stop"() : () -> ()
    %875 = vector.shape_cast %874 : vector<2x8x32xf32> to vector<16x32xf32>
    %876 = arith.truncf %875 : vector<16x32xf32> to vector<16x32xbf16>
    %cst_249 = arith.constant dense<0.000000e+00> : vector<16x32xf32>
    %877 = tpu.matmul %876, %8, %cst_249 {dimension_numbers = #tpu.dot_dimension_numbers<[1], [0], [0], [1], [0, 0, 1, 1], [], []>} : vector<16x32xbf16>, vector<32x32xbf16>, vector<16x32xf32> -> vector<16x32xf32>
    %878 = arith.addf %859, %877 : vector<16x32xf32>
    %879 = arith.truncf %878 : vector<16x32xf32> to vector<16x32xbf16>
    %cst_250 = arith.constant dense<0.000000e+00> : vector<16x128xf32>
    %880 = tpu.matmul %879, %6, %cst_250 {dimension_numbers = #tpu.dot_dimension_numbers<[1], [0], [0], [1], [0, 0, 1, 1], [], []>} : vector<16x32xbf16>, vector<32x128xbf16>, vector<16x128xf32> -> vector<16x128xf32>
    %881 = vector.shape_cast %880 : vector<16x128xf32> to vector<2x8x128xf32>
    %c0_251 = arith.constant 0 : index
    %c0_252 = arith.constant 0 : index
    %c0_253 = arith.constant 0 : index
    %882 = vector.load %arg6[%c0_251, %c0_252, %c0_253] : memref<2x8x128xf32, #tpu.memory_space<vmem>>, vector<2x8x128xf32>
    tpu.vector_store %arg6[%c0_251, %c0_252, %c0_253], %881 {strides = array<i32>} : memref<2x8x128xf32, #tpu.memory_space<vmem>>, vector<2x8x128xf32>,
    return
  }
}

</mosaic_0001>

<bundles_post_ra>
// kernel: forward.1
= control target key start
LH: loop header
LB: loop body
LE: loop exit
PB: predicated region body
PF: predicated region fallthrough
CT: control target
= control target key end

     0   :  { %v5266_v0 = vmov 0.0   ;;  %vm5267_vm0 = vmmov 0   ;;  %v5268_v3 = vmov 0   ;;  %s6749_s0 = inlined_call_operand.vmem [shape: f32[2,8,256], index: 0, kind: input, shape index: {}]   ;;  %s6750_s1 = inlined_call_operand.vmem [shape: f32[2,8,128], index: 1, kind: input, shape index: {}]   ;;  %s6751_s2 = inlined_call_operand.vmem [shape: s32[2,2], index: 2, kind: input, shape index: {}]   ;;  %s6752_s3 = inlined_call_operand.vmem [shape: bf16[32,608], index: 3, kind: input, shape index: {}]   ;;  %s6753_s4 = inlined_call_operand.vmem [shape: bf16[64,64], index: 4, kind: input, shape index: {}]   ;;  %s6754_s5 = inlined_call_operand.vmem [shape: f32[1,128], index: 5, kind: input, shape index: {}]   ;;  %s6755_s6 = inlined_call_operand.hbm [shape: f32[2,8,128], index: 6, kind: output, shape index: {}]  }
   0x1   :  { %4564 = vmatprep.subr.bf16.mxu0 %v5266_v0  ;;  %v5316_v1 = vld [vmem:[%s6752_s3 + $0x28] ss:$20 sps:$4 sm:$0xff]   ;;  %4568 = vmatprep.mubr.msk.bf16.mxu0 %vm5267_vm0, %v5266_v0  ;;  %v5327_v2 = vld [vmem:[%s6752_s3] ss:$20 sps:$4 sm:$0xff]  }
   0x2   :  { %4572 = vmatprep.subr.bf16.mxu1 %v5266_v0  ;;  %4576 = vmatprep.mubr.msk.bf16.mxu1 %vm5267_vm0, %v5266_v0 }
   0x3   :  { %4565 = vmatpush3.bf16.msra.mxu0 %v5316_v1  ;;  %4827 = vset.pattern.permute.xlu0 %v5268_v3 }
   0x4   :  { %4566 = vmatprep.subr.bf16.mxu0 %v5266_v0  ;;  %4828 = vset.pattern.permute.xlu1 %v5268_v3 }
   0x7   :  { %4567 = vmatpush3.bf16.msra.mxu0 %v5327_v2 }
   0x8   :  { %4580 = vmatprep.subr.bf16.mxu0 %v5266_v0 }
   0xa   :  { %4569 = vmatmul.mubr.bf16.vlgmr.msra.gmra.mxu0 %v5268_v3 }
   0xb   :  { %4581 = vmatpush3.bf16.msra.mxu0 %v5316_v1  ;;  %4584 = vmatprep.mubr.msk.bf16.mxu0 %vm5267_vm0, %v5266_v0 }
   0xc   :  { %11 = vsyncpa [#allocation5], 0  ;;  %4582 = vmatprep.subr.bf16.mxu0 %v5266_v0  ;;  %v49_v4 = vld [vmem:[%s6749_s0 + $0x10] ss:$0 sm:$0xff]  ;;  %v48_v8 = vld [vmem:[%s6749_s0] ss:$0 sm:$0xff]  ;;  %v315_v47 = vlaneseq }
   0xd   :  { %s5269_s29 = smov 64   ;;  %s5270_s30 = smov 32   ;;  %vm228_vm1 = vcmask 1041409   ;;  %v5355_v35 = vld [vmem:[%s6751_s2] sm:$0x3]  ;;  %vm62_vm4 = vcmask 261120  }
   0xe   :  { %vm46_vm2 = vcmp.gt.s32.totalorder %v5355_v35, 0  ;;  %s5271_s9 = smov 96   ;;  %v5272_v45 = vmov 1966171168   ;;  %v5367_v49 = vshrl.u32 %v315_v47, 7  ;;  %vm336_vm5 = vcmask 253952  }
   0xf   :  { %4583 = vmatpush3.bf16.msra.mxu0 %v5327_v2  ;;  %v5360_v37 = vsel %vm46_vm2, 1, %v5268_v3  ;;  %v313_v46 = vunpack.c.l.s4 %v5272_v45  ;;  %v5397_v59 = vld [vmem:[%s6752_s3 + $0x2c] ss:$20 sps:$4 sm:$0xff]   ;;  %v5403_v60 = vld [vmem:[%s6752_s3 + $0x4] ss:$20 sps:$4 sm:$0xff]   ;;  %vm379_vm6 = vcmp.gt.s32.totalorder %v5355_v35, 1 }
  0x10   :  { %4596 = vmatprep.subr.bf16.mxu0 %v5266_v0  ;;  %4573 = vmatpush3.bf16.msra.mxu1 %v5397_v59  ;;  %v381_v61 = vld [vmem:[%s6749_s0 + $0x1] ss:$0 sm:$0xff]  ;;  %v382_v62 = vld [vmem:[%s6749_s0 + $0x11] ss:$0 sm:$0xff]  ;;  %vm47_vm8 = vcmp.gt.s32.totalorder %v5355_v35, 7  ;;  %vm707_vm9 = vcmp.gt.s32.totalorder %v5355_v35, 2 }
  0x11   :  { %v314_v48 = vunpack.c.0.s8 %v313_v46  ;;  %4574 = vmatprep.subr.bf16.mxu1 %v5266_v0  ;;  %v5440_v46 = vsel %vm379_vm6, 1, %v5268_v3  ;;  %vm380_vm12 = vcmp.gt.s32.totalorder %v5355_v35, 6  ;;  %vm1035_vm13 = vcmp.gt.s32.totalorder %v5355_v35, 3 }
  0x13   :  { %v5373_v51 = vsub.s32 %v314_v48, %v5367_v49 }
  0x14   :  { %4575 = vmatpush3.bf16.msra.mxu1 %v5403_v60 }
  0x15   :  { %4588 = vmatprep.subr.bf16.mxu1 %v5266_v0 }
  0x17   :  { %4577 = vmatmul.mubr.bf16.vlgmr.msra.gmra.mxu1 %v5268_v3 }
  0x18   :  { %4589 = vmatpush3.bf16.msra.mxu1 %v5397_v59  ;;  %4592 = vmatprep.mubr.msk.bf16.mxu1 %vm5267_vm0, %v5266_v0 }
  0x19   :  { %4590 = vmatprep.subr.bf16.mxu1 %v5266_v0 }
  0x1c   :  { %4591 = vmatpush3.bf16.msra.mxu1 %v5403_v60 }
  0x1d   :  { %4604 = vmatprep.subr.bf16.mxu1 %v5266_v0 }
  0xca   :  { %v100_v5 = vpop.f32.mrf.mxu0 }
  0xcb   :  { %v107_v6 = vrot.slane %v100_v5, 1  ;;  %v110_v11 = vadd.f32 %v100_v5, %v48_v8 }
  0xcc   :  { %v4570_v7 = vpop.f32.mrf.mxu0 }
  0xcd   :  { %v111_v9 = vadd.f32 %v107_v6, %v49_v4  ;;  %v4381_v16 = vmul.f32 -1.442695, %v110_v11 }
  0xce   :  { %v103_v10 = vpop.f32.mrf.mxu0 }
  0xcf   :  { %4845 = vtanh.f32 %v111_v9  ;;  %v4382_v15 = vmul.f32 -1.442695, %v111_v9 }
  0xd0   :  { %v4571_v12 = vpop.f32.mrf.mxu0  ;;  %4847 = vtanh.f32 %v110_v11 }
  0xd1   :  { %4849 = vpow2.f32 %v4382_v15 }
  0xd2   :  { %4851 = vpow2.f32 %v4381_v16 }
  0xdc   :  { %v4846_v13 = vpop.eup %4845 }
  0xdd   :  { %192 = vrot.lane.b32.xlu0 %v4846_v13, %s5269_s29  ;;  %v4848_v14 = vpop.eup %4847 }
  0xde   :  { %v4850_v17 = vpop.eup %4849 }
  0xdf   :  { %v179_v18 = vadd.f32 1.0, %v4850_v17  ;;  %v4852_v19 = vpop.eup %4851 }
  0xe0   :  { %v178_v20 = vadd.f32 1.0, %v4852_v19 }
  0xe1   :  { %190 = vrot.lane.b32.xlu0 %v4848_v14, %s5269_s29  ;;  %4853 = vrcp.f32 %v179_v18 }
  0xe2   :  { %4855 = vrcp.f32 %v178_v20 }
  0xee   :  { %v4854_v21 = vpop.eup %4853 }
  0xef   :  { %v4856_v24 = vpop.eup %4855  ;;  %v187_v27 = vmul.f32 0.0, %v4854_v21 }
  0xf0   :  { %v186_v30 = vmul.f32 0.0, %v4856_v24 }
 0x14f   :  { %v193_v22 = vpop.permute.xlu0 %192 }
 0x150   :  { %v197_v23 = vmul.f32 %v4854_v21, %v193_v22 }
 0x152   :  { %202 = vrot.lane.b32.xlu1 %v197_v23, %s5270_s30 }
 0x153   :  { %v191_v25 = vpop.permute.xlu0 %190 }
 0x154   :  { %v196_v26 = vmul.f32 %v4856_v24, %v191_v25 }
 0x156   :  { %200 = vrot.lane.b32.xlu1 %v196_v26, %s5270_s30 }
 0x1c4   :  { %v203_v28 = vpop.permute.xlu1 %202 }
 0x1c5   :  { %v207_v29 = vadd.f32 %v203_v28, %v187_v27 }
 0x1c7   :  { %4857 = vtanh.f32 %v207_v29  ;;  %v236_v32 = vrot.slane %v207_v29, 7 }
 0x1c8   :  { %v201_v31 = vpop.permute.xlu1 %200 }
 0x1c9   :  { %v206_v33 = vadd.f32 %v201_v31, %v186_v30 }
 0x1cb   :  { %4859 = vtanh.f32 %v206_v33  ;;  %v237_v34 = vsel %vm228_vm1, %v236_v32, %v206_v33 }
 0x1d4   :  { %v4858_v36 = vpop.eup %4857 }
 0x1d5   :  { %214 = vrot.lane.b32.xlu0 %v4858_v36, %s5269_s29 }
 0x1d8   :  { %v4860_v38 = vpop.eup %4859 }
 0x1d9   :  { %212 = vrot.lane.b32.xlu1 %v4860_v38, %s5269_s29  ;;  %222 = vperm.xlu0 %4827, %v5360_v37  }
 0x247   :  { %v215_v39 = vpop.permute.xlu0 %214 }
 0x248   :  { %v219_v40 = vmul.f32 %v4854_v21, %v215_v39  ;;  %v160_v21 = vpop.f32.mrf.mxu1 }
 0x24a   :  { %v227_v42 = vrot.slane %v219_v40, 7  ;;  %v4578_v22 = vpop.f32.mrf.mxu1 }
 0x24b   :  { %v213_v41 = vpop.permute.xlu1 %212 }
 0x24c   :  { %v218_v43 = vmul.f32 %v4856_v24, %v213_v41  ;;  %v163_v23 = vpop.f32.mrf.mxu1  ;;  %v167_v41 = vrot.slane %v160_v21, 1 }
 0x24e   :  { %v229_v44 = vsel %vm228_vm1, %v227_v42, %v218_v43  ;;  %v4579_v27 = vpop.f32.mrf.mxu1  ;;  %v113_v42 = vld [vmem:[%s6749_s0 + $0x1f] ss:$0 sm:$0xff] }
 0x24f   :  { %230 = vrot.lane.b32.xlu1 %v229_v44, %s5270_s30  ;;  %v171_v43 = vadd.f32 %v167_v41, %v113_v42 }
 0x253   :  { %238 = vrot.lane.b32.xlu1 %v237_v34, %s5271_s9 }
 0x254   :  { %v5369_v50 = vpop.permute.xlu0 %222 }
 0x255   :  { %vm224_vm3 = vcmp.eq.s32.totalorder %v5369_v50, 1 }
 0x2c1   :  { %v231_v52 = vpop.permute.xlu1 %230 }
 0x2c2   :  { %v5377_v53 = vsel %vm224_vm3, %v231_v52, 0.0 }
 0x2c3   :  { %v318_v54 = vrot.slane %v5377_v53, %v5373_v51  ;;  %v383_v55 = vpack.c.bf16 %v5377_v53, %v5377_v53 }
 0x2c5   :  { %v319_v56 = vcombine.high %v318_v54, %v318_v54  ;;  %4585 = vmatmul.mubr.msk.bf16.vlgmr.msra.gmra.mxu0 %vm62_vm4, %v383_v55  ;;  %v326_v57 = vrot.slane %v318_v54, %v5373_v51  ;;  %v239_v11 = vpop.permute.xlu1 %238  ;;  %v112_v54 = vld [vmem:[%s6749_s0 + $0xf] ss:$0 sm:$0xff] }
 0x2c6   :  { %4597 = vmatpush3.bf16.msra.mxu0 %v5316_v1  ;;  %4600 = vmatprep.mubr.msk.bf16.mxu0 %vm5267_vm0, %v5266_v0  ;;  %v5424_v13 = vsel %vm224_vm3, %v239_v11, 0.0  ;;  %v170_v55 = vadd.f32 %v160_v21, %v112_v54  ;;  %v710_v21 = vld [vmem:[%s6749_s0 + $0x12] ss:$0 sm:$0xff] }
 0x2c7   :  { %4598 = vmatprep.subr.bf16.mxu0 %v5266_v0  ;;  %337 = vst.msk [vmem:[#allocation2] sm:$0x1] %vm336_vm5, %v326_v57  ;;  %v333_v58 = vrot.slane %v319_v56, %v5373_v51  ;;  %v500_v14 = vrot.slane %v5424_v13, 1 }
 0x2c9   :  { %338 = vst.msk [vmem:[#allocation2 + $0x8] sm:$0x1] %vm336_vm5, %v333_v58 }
 0x2ca   :  { %4599 = vmatpush3.bf16.msra.mxu0 %v5327_v2 }
 0x2cb   :  { %4612 = vmatprep.subr.bf16.mxu0 %v5266_v0 }
 0x385   :  { %v421_v63 = vpop.f32.mrf.mxu0 }
 0x386   :  { %v428_v4 = vrot.slane %v421_v63, 1  ;;  %v431_v5 = vadd.f32 %v421_v63, %v381_v61 }
 0x387   :  { %v4586_v6 = vpop.f32.mrf.mxu0 }
 0x388   :  { %v432_v7 = vadd.f32 %v428_v4, %v382_v62  ;;  %4861 = vtanh.f32 %v431_v5  ;;  %v4387_v15 = vmul.f32 -1.442695, %v431_v5 }
 0x389   :  { %v424_v8 = vpop.f32.mrf.mxu0 }
 0x38a   :  { %4863 = vtanh.f32 %v432_v7  ;;  %v4388_v16 = vmul.f32 -1.442695, %v432_v7 }
 0x38b   :  { %v4587_v9 = vpop.f32.mrf.mxu0  ;;  %4865 = vpow2.f32 %v4387_v15  ;;  %v4384_v15 = vmul.f32 -1.442695, %v171_v43 }
 0x38c   :  { %4867 = vpow2.f32 %v4388_v16 }
 0x395   :  { %v4862_v10 = vpop.eup %4861 }
 0x396   :  { %511 = vrot.lane.b32.xlu1 %v4862_v10, %s5269_s29 }
 0x397   :  { %v4864_v12 = vpop.eup %4863 }
 0x398   :  { %513 = vrot.lane.b32.xlu0 %v4864_v12, %s5269_s29  ;;  %v4866_v17 = vpop.eup %4865 }
 0x399   :  { %v4868_v18 = vpop.eup %4867  ;;  %v491_v19 = vadd.f32 1.0, %v4866_v17 }
 0x39a   :  { %501 = vrot.lane.b32.xlu1 %v5424_v13, %s5270_s30  ;;  %v492_v20 = vadd.f32 1.0, %v4868_v18 }
 0x39b   :  { %4869 = vrcp.f32 %v491_v19  ;;  %v709_v19 = vld [vmem:[%s6749_s0 + $0x2] ss:$0 sm:$0xff] }
 0x39c   :  { %503 = vrot.lane.b32.xlu0 %v500_v14, %s5270_s30  ;;  %4871 = vrcp.f32 %v492_v20  ;;  %v4383_v14 = vmul.f32 -1.442695, %v170_v55 }
 0x3a8   :  { %v4870_v24 = vpop.eup %4869 }
 0x3a9   :  { %v4872_v28 = vpop.eup %4871 }
 0x408   :  { %v512_v25 = vpop.permute.xlu1 %511 }
 0x409   :  { %v517_v26 = vmul.f32 %v4870_v24, %v512_v25 }
 0x40a   :  { %v514_v29 = vpop.permute.xlu0 %513 }
 0x40b   :  { %521 = vrot.lane.b32.xlu1 %v517_v26, %s5270_s30  ;;  %v518_v30 = vmul.f32 %v4872_v28, %v514_v29 }
 0x40c   :  { %v502_v31 = vpop.permute.xlu1 %501 }
 0x40d   :  { %523 = vrot.lane.b32.xlu0 %v518_v30, %s5270_s30  ;;  %v507_v32 = vmul.f32 %v4870_v24, %v502_v31 }
 0x40e   :  { %v504_v33 = vpop.permute.xlu0 %503 }
 0x40f   :  { %v508_v38 = vmul.f32 %v4872_v28, %v504_v33 }
 0x47d   :  { %v522_v34 = vpop.permute.xlu1 %521 }
 0x47e   :  { %v527_v36 = vadd.f32 %v522_v34, %v507_v32 }
 0x47f   :  { %v524_v39 = vpop.permute.xlu0 %523 }
 0x480   :  { %4873 = vtanh.f32 %v527_v36  ;;  %v528_v40 = vadd.f32 %v524_v39, %v508_v38 }
 0x482   :  { %4875 = vtanh.f32 %v528_v40  ;;  %v556_v48 = vrot.slane %v528_v40, 7 }
 0x483   :  { %4877 = vtanh.f32 %v171_v43 }
 0x484   :  { %v557_v52 = vsel %vm228_vm1, %v556_v48, %v527_v36  ;;  %4879 = vtanh.f32 %v170_v55 }
 0x485   :  { %4881 = vpow2.f32 %v4383_v14 }
 0x486   :  { %4883 = vpow2.f32 %v4384_v15 }
 0x48d   :  { %v4874_v44 = vpop.eup %4873 }
 0x48e   :  { %533 = vrot.lane.b32.xlu1 %v4874_v44, %s5269_s29 }
 0x48f   :  { %v4876_v45 = vpop.eup %4875 }
 0x490   :  { %535 = vrot.lane.b32.xlu0 %v4876_v45, %s5269_s29  ;;  %v4878_v47 = vpop.eup %4877 }
 0x491   :  { %v4880_v4 = vpop.eup %4879 }
 0x492   :  { %v4882_v16 = vpop.eup %4881 }
 0x493   :  { %v4884_v17 = vpop.eup %4883  ;;  %v248_v18 = vadd.f32 1.0, %v4882_v16 }
 0x494   :  { %543 = vperm.xlu0 %4827, %v5440_v46   ;;  %v249_v20 = vadd.f32 1.0, %v4884_v17 }
 0x495   :  { %4885 = vrcp.f32 %v248_v18 }
 0x498   :  { %262 = vrot.lane.b32.xlu0 %v4878_v47, %s5269_s29 }
 0x49c   :  { %558 = vrot.lane.b32.xlu0 %v557_v52, %s5271_s9 }
 0x4a2   :  { %v5482_v29 = vpop.eup %4885 }
 0x500   :  { %v534_v56 = vpop.permute.xlu1 %533 }
 0x501   :  { %v539_v61 = vmul.f32 %v4870_v24, %v534_v56 }
 0x502   :  { %v536_v57 = vpop.permute.xlu0 %535 }
 0x503   :  { %v540_v58 = vmul.f32 %v4872_v28, %v536_v57  ;;  %v256_v57 = vmul.f32 0.0, %v5482_v29 }
 0x505   :  { %v548_v62 = vrot.slane %v540_v58, 7 }
 0x507   :  { %v549_v63 = vsel %vm228_vm1, %v548_v62, %v539_v61 }
 0x508   :  { %550 = vrot.lane.b32.xlu1 %v549_v63, %s5270_s30 }
 0x50c   :  { %260 = vrot.lane.b32.xlu1 %v4880_v4, %s5269_s29 }
 0x50f   :  { %v5452_v5 = vpop.permute.xlu0 %543 }
 0x510   :  { %vm545_vm7 = vcmp.eq.s32.totalorder %v5452_v5, 1 }
 0x513   :  { %v263_v30 = vpop.permute.xlu0 %262 }
 0x517   :  { %v559_v39 = vpop.permute.xlu0 %558 }
 0x518   :  { %v5494_v40 = vsel %vm545_vm7, %v559_v39, %v5424_v13 }
 0x519   :  { %v828_v41 = vrot.slane %v5494_v40, 1 }
 0x57a   :  { %v551_v6 = vpop.permute.xlu1 %550 }
 0x57b   :  { %v5458_v7 = vsel %vm545_vm7, %v551_v6, %v5377_v53  ;;  %v562_v8 = vsel %vm545_vm7, %v551_v6, 0.0 }
 0x57c   :  { %v648_v9 = vrot.slane %v562_v8, %v5373_v51  ;;  %v711_v10 = vpack.c.bf16 %v5458_v7, %v5458_v7 }
 0x57e   :  { %v649_v11 = vcombine.high %v648_v9, %v648_v9  ;;  %4601 = vmatmul.mubr.msk.bf16.vlgmr.msra.gmra.mxu0 %vm62_vm4, %v711_v10  ;;  %v656_v12 = vrot.slane %v648_v9, %v5373_v51  ;;  %v261_v31 = vpop.permute.xlu1 %260 }
 0x57f   :  { %4613 = vmatpush3.bf16.msra.mxu0 %v5316_v1  ;;  %4616 = vmatprep.mubr.msk.bf16.mxu0 %vm5267_vm0, %v5266_v0  ;;  %v266_v34 = vmul.f32 %v5482_v29, %v261_v31  ;;  %v5522_v31 = vsel %vm707_vm9, 1, %v5268_v3 }
 0x580   :  { %4614 = vmatprep.subr.bf16.mxu0 %v5266_v0  ;;  %666 = vst.msk [vmem:[#allocation2 + $0x1] sm:$0x1] %vm336_vm5, %v656_v12  ;;  %v663_v53 = vrot.slane %v649_v11, %v5373_v51 }
 0x582   :  { %667 = vst.msk [vmem:[#allocation2 + $0x9] sm:$0x1] %vm336_vm5, %v663_v53 }
 0x583   :  { %4615 = vmatpush3.bf16.msra.mxu0 %v5327_v2 }
 0x584   :  { %4628 = vmatprep.subr.bf16.mxu0 %v5266_v0 }
 0x63e   :  { %v749_v22 = vpop.f32.mrf.mxu0 }
 0x63f   :  { %v756_v23 = vrot.slane %v749_v22, 1  ;;  %v759_v24 = vadd.f32 %v749_v22, %v709_v19 }
 0x640   :  { %v4602_v25 = vpop.f32.mrf.mxu0 }
 0x641   :  { %v760_v26 = vadd.f32 %v756_v23, %v710_v21  ;;  %4887 = vtanh.f32 %v759_v24  ;;  %v4393_v42 = vmul.f32 -1.442695, %v759_v24 }
 0x642   :  { %4889 = vrcp.f32 %v249_v20  ;;  %v752_v27 = vpop.f32.mrf.mxu0 }
 0x643   :  { %4891 = vtanh.f32 %v760_v26  ;;  %v4394_v43 = vmul.f32 -1.442695, %v760_v26  ;;  %v5515_v26 = vsel %vm47_vm8, 1, %v5268_v3 }
 0x644   :  { %v4603_v28 = vpop.f32.mrf.mxu0  ;;  %4893 = vpow2.f32 %v4393_v42 }
 0x645   :  { %4895 = vpow2.f32 %v4394_v43 }
 0x64e   :  { %v4888_v32 = vpop.eup %4887 }
 0x64f   :  { %v5484_v33 = vpop.eup %4889  ;;  %839 = vrot.lane.b32.xlu0 %v4888_v32, %s5269_s29 }
 0x650   :  { %v4892_v36 = vpop.eup %4891  ;;  %v267_v38 = vmul.f32 %v5484_v33, %v263_v30  ;;  %v257_v63 = vmul.f32 0.0, %v5484_v33 }
 0x651   :  { %841 = vrot.lane.b32.xlu1 %v4892_v36, %s5269_s29  ;;  %v4894_v44 = vpop.eup %4893 }
 0x652   :  { %v4896_v45 = vpop.eup %4895  ;;  %v819_v47 = vadd.f32 1.0, %v4894_v44 }
 0x653   :  { %270 = vrot.lane.b32.xlu0 %v266_v34, %s5270_s30  ;;  %v820_v48 = vadd.f32 1.0, %v4896_v45 }
 0x654   :  { %4897 = vrcp.f32 %v819_v47 }
 0x655   :  { %272 = vrot.lane.b32.xlu1 %v267_v38, %s5270_s30  ;;  %4899 = vrcp.f32 %v820_v48 }
 0x657   :  { %829 = vrot.lane.b32.xlu0 %v5494_v40, %s5270_s30 }
 0x659   :  { %831 = vrot.lane.b32.xlu1 %v828_v41, %s5270_s30 }
 0x661   :  { %v4898_v13 = vpop.eup %4897 }
 0x662   :  { %v4900_v55 = vpop.eup %4899 }
 0x6c1   :  { %v840_v52 = vpop.permute.xlu0 %839 }
 0x6c2   :  { %v845_v54 = vmul.f32 %v4898_v13, %v840_v52 }
 0x6c3   :  { %v842_v56 = vpop.permute.xlu1 %841 }
 0x6c4   :  { %849 = vrot.lane.b32.xlu0 %v845_v54, %s5270_s30  ;;  %v846_v58 = vmul.f32 %v4900_v55, %v842_v56 }
 0x6c5   :  { %v271_v61 = vpop.permute.xlu0 %270 }
 0x6c6   :  { %v276_v62 = vadd.f32 %v271_v61, %v256_v57  ;;  %851 = vrot.lane.b32.xlu1 %v846_v58, %s5270_s30  ;;  %v433_v57 = vld [vmem:[%s6749_s0 + $0xe] ss:$0 sm:$0xff] }
 0x6c7   :  { %v273_v4 = vpop.permute.xlu1 %272 }
 0x6c8   :  { %4901 = vtanh.f32 %v276_v62  ;;  %v277_v6 = vadd.f32 %v273_v4, %v257_v63 }
 0x6c9   :  { %v830_v12 = vpop.permute.xlu0 %829 }
 0x6ca   :  { %4903 = vtanh.f32 %v277_v6  ;;  %v305_v8 = vrot.slane %v277_v6, 7  ;;  %v835_v53 = vmul.f32 %v4898_v13, %v830_v12  ;;  %v1037_v12 = vld [vmem:[%s6749_s0 + $0x3] ss:$0 sm:$0xff] }
 0x6cb   :  { %v832_v14 = vpop.permute.xlu1 %831 }
 0x6cc   :  { %v306_v9 = vsel %vm228_vm1, %v305_v8, %v276_v62  ;;  %v836_v17 = vmul.f32 %v4900_v55, %v832_v14 }
 0x6d5   :  { %v4902_v10 = vpop.eup %4901 }
 0x6d6   :  { %282 = vrot.lane.b32.xlu0 %v4902_v10, %s5269_s29 }
 0x6d7   :  { %v4904_v11 = vpop.eup %4903 }
 0x6d8   :  { %284 = vrot.lane.b32.xlu1 %v4904_v11, %s5269_s29 }
 0x736   :  { %v850_v15 = vpop.permute.xlu0 %849 }
 0x737   :  { %v855_v16 = vadd.f32 %v850_v15, %v835_v53  ;;  %v1038_v53 = vld [vmem:[%s6749_s0 + $0x13] ss:$0 sm:$0xff] }
 0x738   :  { %v852_v18 = vpop.permute.xlu1 %851 }
 0x739   :  { %4905 = vtanh.f32 %v855_v16  ;;  %v856_v19 = vadd.f32 %v852_v18, %v836_v17 }
 0x73b   :  { %4907 = vtanh.f32 %v856_v19  ;;  %v884_v20 = vrot.slane %v856_v19, 7 }
 0x73d   :  { %v5509_v21 = vsel %vm228_vm1, %v884_v20, %v855_v16 }
 0x746   :  { %v4906_v22 = vpop.eup %4905 }
 0x747   :  { %861 = vrot.lane.b32.xlu0 %v4906_v22, %s5269_s29 }
 0x748   :  { %v4908_v23 = vpop.eup %4907  ;;  %v283_v24 = vpop.permute.xlu0 %282 }
 0x749   :  { %863 = vrot.lane.b32.xlu1 %v4908_v23, %s5269_s29  ;;  %v288_v28 = vmul.f32 %v5482_v29, %v283_v24 }
 0x74a   :  { %v285_v25 = vpop.permute.xlu1 %284 }
 0x74b   :  { %v289_v27 = vmul.f32 %v5484_v33, %v285_v25 }
 0x74d   :  { %v297_v30 = vrot.slane %v289_v27, 7  ;;  %292 = vperm.xlu1 %4828, %v5515_v26  }
 0x74f   :  { %v298_v32 = vsel %vm228_vm1, %v297_v30, %v288_v28 }
 0x750   :  { %299 = vrot.lane.b32.xlu0 %v298_v32, %s5270_s30 }
 0x751   :  { %871 = vperm.xlu1 %4828, %v5522_v31  }
 0x755   :  { %307 = vrot.lane.b32.xlu1 %v306_v9, %s5271_s9 }
 0x7b9   :  { %v862_v34 = vpop.permute.xlu0 %861 }
 0x7ba   :  { %v867_v38 = vmul.f32 %v4898_v13, %v862_v34 }
 0x7bb   :  { %v864_v33 = vpop.permute.xlu1 %863 }
 0x7bc   :  { %v868_v36 = vmul.f32 %v4900_v55, %v864_v33 }
 0x7be   :  { %v876_v39 = vrot.slane %v868_v36, 7 }
 0x7c0   :  { %v877_v29 = vsel %vm228_vm1, %v876_v39, %v867_v38 }
 0x7c1   :  { %878 = vrot.lane.b32.xlu0 %v877_v29, %s5270_s30 }
 0x7c2   :  { %v300_v42 = vpop.permute.xlu0 %299 }
 0x7c8   :  { %v5530_v41 = vpop.permute.xlu1 %292 }
 0x7c9   :  { %vm294_vm10 = vcmp.eq.s32.totalorder %v5530_v41, 1 }
 0x7ca   :  { %v5535_v43 = vsel %vm294_vm10, %v300_v42, 0.0 }
 0x7cb   :  { %v435_v44 = vpack.c.bf16 %v5535_v43, %v5535_v43 }
 0x7cc   :  { %v5546_v45 = vpop.permute.xlu1 %871 }
 0x7cd   :  { %4593 = vmatmul.mubr.msk.bf16.vlgmr.msra.gmra.mxu1 %vm62_vm4, %v435_v44  ;;  %vm873_vm11 = vcmp.eq.s32.totalorder %v5546_v45, 1 }
 0x7ce   :  { %4605 = vmatpush3.bf16.msra.mxu1 %v5397_v59  ;;  %4608 = vmatprep.mubr.msk.bf16.mxu1 %vm5267_vm0, %v5266_v0 }
 0x7cf   :  { %4606 = vmatprep.subr.bf16.mxu1 %v5266_v0 }
 0x7d0   :  { %v308_v27 = vpop.permute.xlu1 %307 }
 0x7d1   :  { %v5589_v30 = vsel %vm294_vm10, %v308_v27, 0.0 }
 0x7d2   :  { %4607 = vmatpush3.bf16.msra.mxu1 %v5403_v60  ;;  %v578_v32 = vrot.slane %v5589_v30, 1 }
 0x7d3   :  { %4620 = vmatprep.subr.bf16.mxu1 %v5266_v0 }
 0x833   :  { %v879_v47 = vpop.permute.xlu0 %878 }
 0x834   :  { %v5552_v48 = vsel %vm873_vm11, %v879_v47, %v5458_v7  ;;  %v890_v13 = vsel %vm873_vm11, %v879_v47, 0.0 }
 0x835   :  { %v976_v52 = vrot.slane %v890_v13, %v5373_v51  ;;  %v1039_v54 = vpack.c.bf16 %v5552_v48, %v5552_v48 }
 0x837   :  { %v977_v55 = vcombine.high %v976_v52, %v976_v52  ;;  %4617 = vmatmul.mubr.msk.bf16.vlgmr.msra.gmra.mxu0 %vm62_vm4, %v1039_v54  ;;  %v984_v56 = vrot.slane %v976_v52, %v5373_v51 }
 0x838   :  { %4629 = vmatpush3.bf16.msra.mxu0 %v5316_v1  ;;  %4632 = vmatprep.mubr.msk.bf16.mxu0 %vm5267_vm0, %v5266_v0  ;;  %v434_v1 = vld [vmem:[%s6749_s0 + $0x1e] ss:$0 sm:$0xff] }
 0x839   :  { %4630 = vmatprep.subr.bf16.mxu0 %v5266_v0  ;;  %994 = vst.msk [vmem:[#allocation2 + $0x2] sm:$0x1] %vm336_vm5, %v984_v56  ;;  %v991_v7 = vrot.slane %v977_v55, %v5373_v51 }
 0x83b   :  { %995 = vst.msk [vmem:[#allocation2 + $0xa] sm:$0x1] %vm336_vm5, %v991_v7 }
 0x83c   :  { %4631 = vmatpush3.bf16.msra.mxu0 %v5327_v2 }
 0x83d   :  { %4644 = vmatprep.subr.bf16.mxu0 %v5266_v0 }
 0x88d   :  { %v473_v58 = vpop.f32.mrf.mxu1 }
 0x88e   :  { %v480_v61 = vrot.slane %v473_v58, 1  ;;  %v483_v62 = vadd.f32 %v473_v58, %v433_v57 }
 0x88f   :  { %v4594_v63 = vpop.f32.mrf.mxu1 }
 0x890   :  { %v484_v4 = vadd.f32 %v480_v61, %v434_v1  ;;  %4909 = vtanh.f32 %v483_v62  ;;  %v4389_v10 = vmul.f32 -1.442695, %v483_v62 }
 0x891   :  { %v476_v6 = vpop.f32.mrf.mxu1 }
 0x892   :  { %4911 = vtanh.f32 %v484_v4  ;;  %v4390_v11 = vmul.f32 -1.442695, %v484_v4 }
 0x893   :  { %v4595_v8 = vpop.f32.mrf.mxu1  ;;  %4913 = vpow2.f32 %v4389_v10 }
 0x894   :  { %4915 = vpow2.f32 %v4390_v11 }
 0x89d   :  { %v4910_v2 = vpop.eup %4909 }
 0x89e   :  { %589 = vrot.lane.b32.xlu1 %v4910_v2, %s5269_s29 }
 0x89f   :  { %v4912_v9 = vpop.eup %4911 }
 0x8a0   :  { %591 = vrot.lane.b32.xlu0 %v4912_v9, %s5269_s29  ;;  %v4914_v20 = vpop.eup %4913 }
 0x8a1   :  { %v4916_v22 = vpop.eup %4915  ;;  %v569_v23 = vadd.f32 1.0, %v4914_v20 }
 0x8a2   :  { %v570_v24 = vadd.f32 1.0, %v4916_v22 }
 0x8a4   :  { %886 = vrot.lane.b32.xlu0 %v5509_v21, %s5271_s9 }
 0x8f7   :  { %v1077_v14 = vpop.f32.mrf.mxu0 }
 0x8f8   :  { %v1084_v15 = vrot.slane %v1077_v14, 1  ;;  %v1087_v16 = vadd.f32 %v1077_v14, %v1037_v12 }
 0x8f9   :  { %v4618_v17 = vpop.f32.mrf.mxu0 }
 0x8fa   :  { %v1088_v18 = vadd.f32 %v1084_v15, %v1038_v53  ;;  %4917 = vtanh.f32 %v1087_v16  ;;  %v4399_v13 = vmul.f32 -1.442695, %v1087_v16 }
 0x8fb   :  { %v1080_v19 = vpop.f32.mrf.mxu0 }
 0x8fc   :  { %4919 = vtanh.f32 %v1088_v18  ;;  %v4400_v52 = vmul.f32 -1.442695, %v1088_v18 }
 0x8fd   :  { %v4619_v21 = vpop.f32.mrf.mxu0  ;;  %4921 = vrcp.f32 %v569_v23 }
 0x8fe   :  { %4923 = vrcp.f32 %v570_v24 }
 0x8ff   :  { %4925 = vpow2.f32 %v4399_v13 }
 0x900   :  { %4927 = vpow2.f32 %v4400_v52 }
 0x907   :  { %v4918_v25 = vpop.eup %4917 }
 0x908   :  { %1167 = vrot.lane.b32.xlu0 %v4918_v25, %s5269_s29 }
 0x909   :  { %v4920_v28 = vpop.eup %4919 }
 0x90a   :  { %1169 = vrot.lane.b32.xlu1 %v4920_v28, %s5269_s29  ;;  %v5596_v34 = vpop.eup %4921 }
 0x90b   :  { %v5599_v38 = vpop.eup %4923 }
 0x90c   :  { %579 = vrot.lane.b32.xlu0 %v5589_v30, %s5270_s30  ;;  %v4926_v54 = vpop.eup %4925 }
 0x90d   :  { %v4928_v55 = vpop.eup %4927  ;;  %v1147_v56 = vadd.f32 1.0, %v4926_v54 }
 0x90e   :  { %581 = vrot.lane.b32.xlu1 %v578_v32, %s5270_s30  ;;  %v1148_v7 = vadd.f32 1.0, %v4928_v55  ;;  %v5627_v32 = vsel %vm380_vm12, 1, %v5268_v3 }
 0x90f   :  { %4929 = vrcp.f32 %v1147_v56 }
 0x910   :  { %v590_v33 = vpop.permute.xlu1 %589  ;;  %4931 = vrcp.f32 %v1148_v7 }
 0x911   :  { %v595_v36 = vmul.f32 %v5596_v34, %v590_v33  ;;  %v5632_v33 = vsel %vm1035_vm13, 1, %v5268_v3 }
 0x912   :  { %v592_v39 = vpop.permute.xlu0 %591 }
 0x913   :  { %599 = vrot.lane.b32.xlu0 %v595_v36, %s5270_s30  ;;  %v596_v29 = vmul.f32 %v5599_v38, %v592_v39 }
 0x915   :  { %601 = vrot.lane.b32.xlu1 %v596_v29, %s5270_s30 }
 0x916   :  { %v887_v42 = vpop.permute.xlu0 %886 }
 0x917   :  { %v5607_v44 = vsel %vm873_vm11, %v887_v42, %v5494_v40 }
 0x918   :  { %1157 = vrot.lane.b32.xlu0 %v5607_v44, %s5270_s30  ;;  %v1156_v47 = vrot.slane %v5607_v44, 1 }
 0x91a   :  { %1159 = vrot.lane.b32.xlu1 %v1156_v47, %s5270_s30 }
 0x91c   :  { %v4930_v57 = vpop.eup %4929 }
 0x91d   :  { %v4932_v58 = vpop.eup %4931 }
 0x97a   :  { %v1168_v40 = vpop.permute.xlu0 %1167 }
 0x97b   :  { %v1173_v1 = vmul.f32 %v4930_v57, %v1168_v40 }
 0x97c   :  { %v1170_v61 = vpop.permute.xlu1 %1169 }
 0x97d   :  { %1177 = vrot.lane.b32.xlu0 %v1173_v1, %s5270_s30  ;;  %v1174_v62 = vmul.f32 %v4932_v58, %v1170_v61 }
 0x97e   :  { %v580_v63 = vpop.permute.xlu0 %579 }
 0x97f   :  { %1179 = vrot.lane.b32.xlu1 %v1174_v62, %s5270_s30  ;;  %v585_v4 = vmul.f32 %v5596_v34, %v580_v63 }
 0x980   :  { %v582_v6 = vpop.permute.xlu1 %581 }
 0x981   :  { %v586_v9 = vmul.f32 %v5599_v38, %v582_v6  ;;  %v5680_v6 = vld [vmem:[%s6752_s3 + $0x28] ss:$20 sps:$4 sm:$0xff]  }
 0x985   :  { %v600_v8 = vpop.permute.xlu0 %599 }
 0x986   :  { %v605_v2 = vadd.f32 %v600_v8, %v585_v4  ;;  %v5692_v8 = vld [vmem:[%s6752_s3] ss:$20 sps:$4 sm:$0xff]  }
 0x987   :  { %v602_v10 = vpop.permute.xlu1 %601 }
 0x988   :  { %4933 = vtanh.f32 %v605_v2  ;;  %v606_v11 = vadd.f32 %v602_v10, %v586_v9  ;;  %v762_v9 = vld [vmem:[%s6749_s0 + $0x1d] ss:$0 sm:$0xff] }
 0x98a   :  { %4935 = vtanh.f32 %v606_v11  ;;  %v634_v12 = vrot.slane %v606_v11, 7  ;;  %v1158_v16 = vpop.permute.xlu0 %1157 }
 0x98b   :  { %v1163_v17 = vmul.f32 %v4930_v57, %v1158_v16 }
 0x98c   :  { %v635_v53 = vsel %vm228_vm1, %v634_v12, %v605_v2  ;;  %v1160_v18 = vpop.permute.xlu1 %1159  ;;  %v761_v2 = vld [vmem:[%s6749_s0 + $0xd] ss:$0 sm:$0xff] }
 0x98d   :  { %v1164_v21 = vmul.f32 %v4932_v58, %v1160_v18 }
 0x995   :  { %v4934_v14 = vpop.eup %4933 }
 0x996   :  { %611 = vrot.lane.b32.xlu0 %v4934_v14, %s5269_s29 }
 0x997   :  { %v4936_v15 = vpop.eup %4935 }
 0x998   :  { %613 = vrot.lane.b32.xlu1 %v4936_v15, %s5269_s29 }
 0x9ef   :  { %v1178_v19 = vpop.permute.xlu0 %1177 }
 0x9f0   :  { %v1183_v20 = vadd.f32 %v1178_v19, %v1163_v17 }
 0x9f1   :  { %v1180_v22 = vpop.permute.xlu1 %1179 }
 0x9f2   :  { %4937 = vtanh.f32 %v1183_v20  ;;  %v1184_v23 = vadd.f32 %v1180_v22, %v1164_v21  ;;  %v1363_v21 = vld [vmem:[%s6749_s0 + $0x4] ss:$0 sm:$0xff]  ;;  %v1364_v22 = vld [vmem:[%s6749_s0 + $0x14] ss:$0 sm:$0xff] }
 0x9f4   :  { %4939 = vtanh.f32 %v1184_v23  ;;  %v1212_v24 = vrot.slane %v1184_v23, 7 }
 0x9f6   :  { %v5621_v25 = vsel %vm228_vm1, %v1212_v24, %v1183_v20 }
 0x9ff   :  { %v4938_v27 = vpop.eup %4937 }
 0xa00   :  { %1189 = vrot.lane.b32.xlu0 %v4938_v27, %s5269_s29 }
 0xa01   :  { %v4940_v28 = vpop.eup %4939 }
 0xa02   :  { %1191 = vrot.lane.b32.xlu1 %v4940_v28, %s5269_s29 }
 0xa06   :  { %621 = vperm.xlu1 %4828, %v5627_v32  }
 0xa08   :  { %v612_v36 = vpop.permute.xlu0 %611 }
 0xa09   :  { %v617_v42 = vmul.f32 %v5596_v34, %v612_v36 }
 0xa0a   :  { %v614_v39 = vpop.permute.xlu1 %613  ;;  %1199 = vperm.xlu1 %4828, %v5632_v33  }
 0xa0b   :  { %v618_v29 = vmul.f32 %v5599_v38, %v614_v39 }
 0xa0d   :  { %v626_v47 = vrot.slane %v618_v29, 7 }
 0xa0e   :  { %636 = vrot.lane.b32.xlu1 %v635_v53, %s5271_s9 }
 0xa0f   :  { %v627_v13 = vsel %vm228_vm1, %v626_v47, %v617_v42 }
 0xa10   :  { %628 = vrot.lane.b32.xlu0 %v627_v13, %s5270_s30 }
 0xa72   :  { %v1190_v35 = vpop.permute.xlu0 %1189 }
 0xa73   :  { %v1195_v55 = vmul.f32 %v4930_v57, %v1190_v35 }
 0xa74   :  { %v1192_v52 = vpop.permute.xlu1 %1191 }
 0xa75   :  { %v1196_v54 = vmul.f32 %v4932_v58, %v1192_v52 }
 0xa77   :  { %v1204_v56 = vrot.slane %v1196_v54, 7 }
 0xa79   :  { %v1205_v7 = vsel %vm228_vm1, %v1204_v56, %v1195_v55 }
 0xa7a   :  { %1206 = vrot.lane.b32.xlu0 %v1205_v7, %s5270_s30 }
 0xa81   :  { %v5642_v40 = vpop.permute.xlu1 %621 }
 0xa82   :  { %vm623_vm14 = vcmp.eq.s32.totalorder %v5642_v40, 1  ;;  %v5645_v34 = vpop.permute.xlu0 %628 }
 0xa83   :  { %v5651_v38 = vsel %vm623_vm14, %v5645_v34, %v5535_v43 }
 0xa84   :  { %v763_v57 = vpack.c.bf16 %v5651_v38, %v5651_v38 }
 0xa85   :  { %v5662_v1 = vpop.permute.xlu1 %1199 }
 0xa86   :  { %4609 = vmatmul.mubr.msk.bf16.vlgmr.msra.gmra.mxu1 %vm62_vm4, %v763_v57  ;;  %vm1201_vm15 = vcmp.eq.s32.totalorder %v5662_v1, 1 }
 0xa87   :  { %4621 = vmatpush3.bf16.msra.mxu1 %v5397_v59  ;;  %4624 = vmatprep.mubr.msk.bf16.mxu1 %vm5267_vm0, %v5266_v0 }
 0xa88   :  { %4622 = vmatprep.subr.bf16.mxu1 %v5266_v0 }
 0xa89   :  { %v637_v52 = vpop.permute.xlu1 %636 }
 0xa8a   :  { %v5716_v55 = vsel %vm623_vm14, %v637_v52, %v5589_v30 }
 0xa8b   :  { %4623 = vmatpush3.bf16.msra.mxu1 %v5403_v60  ;;  %v906_v56 = vrot.slane %v5716_v55, 1 }
 0xa8c   :  { %4636 = vmatprep.subr.bf16.mxu1 %v5266_v0 }
 0xaec   :  { %v1207_v58 = vpop.permute.xlu0 %1206 }
 0xaed   :  { %v5668_v61 = vsel %vm1201_vm15, %v1207_v58, %v5552_v48  ;;  %v1218_v59 = vsel %vm1201_vm15, %v1207_v58, 0.0 }
 0xaee   :  { %v1304_v62 = vrot.slane %v1218_v59, %v5373_v51  ;;  %v1365_v60 = vpack.c.bf16 %v5668_v61, %v5668_v61 }
 0xaf0   :  { %v1305_v63 = vcombine.high %v1304_v62, %v1304_v62  ;;  %4633 = vmatmul.mubr.msk.bf16.vlgmr.msra.gmra.mxu0 %vm62_vm4, %v1365_v60  ;;  %v1312_v4 = vrot.slane %v1304_v62, %v5373_v51 }
 0xaf1   :  { %4645 = vmatpush3.bf16.msra.mxu0 %v5680_v6  ;;  %4648 = vmatprep.mubr.msk.bf16.mxu0 %vm5267_vm0, %v5266_v0 }
 0xaf2   :  { %4646 = vmatprep.subr.bf16.mxu0 %v5266_v0  ;;  %1322 = vst.msk [vmem:[#allocation2 + $0x3] sm:$0x1] %vm336_vm5, %v1312_v4  ;;  %v1319_v48 = vrot.slane %v1305_v63, %v5373_v51 }
 0xaf4   :  { %1323 = vst.msk [vmem:[#allocation2 + $0xb] sm:$0x1] %vm336_vm5, %v1319_v48 }
 0xaf5   :  { %4647 = vmatpush3.bf16.msra.mxu0 %v5692_v8 }
 0xaf6   :  { %4660 = vmatprep.subr.bf16.mxu0 %v5266_v0 }
 0xb46   :  { %v801_v10 = vpop.f32.mrf.mxu1 }
 0xb47   :  { %v808_v11 = vrot.slane %v801_v10, 1  ;;  %v811_v12 = vadd.f32 %v801_v10, %v761_v2 }
 0xb48   :  { %v4610_v53 = vpop.f32.mrf.mxu1 }
 0xb49   :  { %v812_v14 = vadd.f32 %v808_v11, %v762_v9  ;;  %4941 = vtanh.f32 %v811_v12  ;;  %v4395_v19 = vmul.f32 -1.442695, %v811_v12 }
 0xb4a   :  { %v804_v15 = vpop.f32.mrf.mxu1 }
 0xb4b   :  { %4943 = vtanh.f32 %v812_v14  ;;  %v4396_v20 = vmul.f32 -1.442695, %v812_v14 }
 0xb4c   :  { %v4611_v16 = vpop.f32.mrf.mxu1  ;;  %4945 = vpow2.f32 %v4395_v19 }
 0xb4d   :  { %4947 = vpow2.f32 %v4396_v20 }
 0xb56   :  { %v4942_v17 = vpop.eup %4941 }
 0xb57   :  { %917 = vrot.lane.b32.xlu1 %v4942_v17, %s5269_s29 }
 0xb58   :  { %v4944_v18 = vpop.eup %4943 }
 0xb59   :  { %919 = vrot.lane.b32.xlu0 %v4944_v18, %s5269_s29 }
 0xb5d   :  { %1214 = vrot.lane.b32.xlu0 %v5621_v25, %s5271_s9  ;;  %v4946_v25 = vpop.eup %4945 }
 0xb5e   :  { %v4948_v42 = vpop.eup %4947  ;;  %v897_v47 = vadd.f32 1.0, %v4946_v25 }
 0xb5f   :  { %v898_v13 = vadd.f32 1.0, %v4948_v42 }
 0xbb0   :  { %v1403_v23 = vpop.f32.mrf.mxu0 }
 0xbb1   :  { %v1410_v24 = vrot.slane %v1403_v23, 1  ;;  %v1413_v27 = vadd.f32 %v1403_v23, %v1363_v21 }
 0xbb2   :  { %v4634_v28 = vpop.f32.mrf.mxu0 }
 0xbb3   :  { %v1414_v36 = vadd.f32 %v1410_v24, %v1364_v22  ;;  %4949 = vtanh.f32 %v1413_v27  ;;  %v4405_v48 = vmul.f32 -1.442695, %v1413_v27 }
 0xbb4   :  { %v1406_v39 = vpop.f32.mrf.mxu0 }
 0xbb5   :  { %4951 = vtanh.f32 %v1414_v36  ;;  %v4406_v2 = vmul.f32 -1.442695, %v1414_v36 }
 0xbb6   :  { %v4635_v29 = vpop.f32.mrf.mxu0  ;;  %4953 = vrcp.f32 %v897_v47 }
 0xbb7   :  { %4955 = vrcp.f32 %v898_v13 }
 0xbb8   :  { %4957 = vpow2.f32 %v4405_v48 }
 0xbb9   :  { %4959 = vpow2.f32 %v4406_v2 }
 0xbc0   :  { %v4950_v35 = vpop.eup %4949 }
 0xbc1   :  { %1493 = vrot.lane.b32.xlu0 %v4950_v35, %s5269_s29 }
 0xbc2   :  { %v4952_v54 = vpop.eup %4951 }
 0xbc3   :  { %1495 = vrot.lane.b32.xlu1 %v4952_v54, %s5269_s29  ;;  %v5723_v7 = vpop.eup %4953 }
 0xbc4   :  { %v5726_v59 = vpop.eup %4955 }
 0xbc5   :  { %907 = vrot.lane.b32.xlu0 %v5716_v55, %s5270_s30  ;;  %v4958_v9 = vpop.eup %4957 }
 0xbc6   :  { %v4960_v10 = vpop.eup %4959  ;;  %v1473_v11 = vadd.f32 1.0, %v4958_v9 }
 0xbc7   :  { %909 = vrot.lane.b32.xlu1 %v906_v56, %s5270_s30  ;;  %v1474_v12 = vadd.f32 1.0, %v4960_v10 }
 0xbc8   :  { %4961 = vrcp.f32 %v1473_v11 }
 0xbc9   :  { %v918_v57 = vpop.permute.xlu1 %917  ;;  %4963 = vrcp.f32 %v1474_v12 }
 0xbca   :  { %v923_v58 = vmul.f32 %v5723_v7, %v918_v57 }
 0xbcb   :  { %v920_v62 = vpop.permute.xlu0 %919 }
 0xbcc   :  { %927 = vrot.lane.b32.xlu0 %v923_v58, %s5270_s30  ;;  %v924_v30 = vmul.f32 %v5726_v59, %v920_v62 }
 0xbce   :  { %929 = vrot.lane.b32.xlu1 %v924_v30, %s5270_s30  ;;  %v5239_v30 = vld [vmem:[%s6751_s2] sm:$0x3] }
 0xbcf   :  { %v1215_v60 = vpop.permute.xlu0 %1214  ;;  %vm708_vm2 = vcmp.gt.s32.totalorder %v5239_v30, 5  ;;  %vm1036_vm6 = vcmp.gt.s32.totalorder %v5239_v30, 4 }
 0xbd0   :  { %v5734_v63 = vsel %vm1201_vm15, %v1215_v60, %v5607_v44  ;;  %v5760_v48 = vsel %vm1036_vm6, 1, %v5268_v3 }
 0xbd1   :  { %1483 = vrot.lane.b32.xlu0 %v5734_v63, %s5270_s30  ;;  %v1482_v4 = vrot.slane %v5734_v63, 1 }
 0xbd3   :  { %1485 = vrot.lane.b32.xlu1 %v1482_v4, %s5270_s30  ;;  %v5756_v4 = vsel %vm708_vm2, 1, %v5268_v3 }
 0xbd5   :  { %v4962_v53 = vpop.eup %4961 }
 0xbd6   :  { %v4964_v15 = vpop.eup %4963 }
 0xc33   :  { %v1494_v44 = vpop.permute.xlu0 %1493 }
 0xc34   :  { %v1499_v14 = vmul.f32 %v4962_v53, %v1494_v44 }
 0xc35   :  { %v1496_v16 = vpop.permute.xlu1 %1495 }
 0xc36   :  { %1503 = vrot.lane.b32.xlu0 %v1499_v14, %s5270_s30  ;;  %v1500_v17 = vmul.f32 %v4964_v15, %v1496_v16 }
 0xc37   :  { %v908_v18 = vpop.permute.xlu0 %907 }
 0xc38   :  { %1505 = vrot.lane.b32.xlu1 %v1500_v17, %s5270_s30  ;;  %v913_v19 = vmul.f32 %v5723_v7, %v908_v18 }
 0xc39   :  { %v910_v20 = vpop.permute.xlu1 %909 }
 0xc3a   :  { %v914_v23 = vmul.f32 %v5726_v59, %v910_v20 }
 0xc3e   :  { %v928_v21 = vpop.permute.xlu0 %927 }
 0xc3f   :  { %v933_v22 = vadd.f32 %v928_v21, %v913_v19 }
 0xc40   :  { %v930_v24 = vpop.permute.xlu1 %929 }
 0xc41   :  { %4965 = vtanh.f32 %v933_v22  ;;  %v934_v27 = vadd.f32 %v930_v24, %v914_v23 }
 0xc43   :  { %4967 = vtanh.f32 %v934_v27  ;;  %v962_v28 = vrot.slane %v934_v27, 7  ;;  %v1484_v29 = vpop.permute.xlu0 %1483  ;;  %v1090_v27 = vld [vmem:[%s6749_s0 + $0x1c] ss:$0 sm:$0xff] }
 0xc44   :  { %v1489_v42 = vmul.f32 %v4962_v53, %v1484_v29 }
 0xc45   :  { %v963_v36 = vsel %vm228_vm1, %v962_v28, %v933_v22  ;;  %v1486_v47 = vpop.permute.xlu1 %1485 }
 0xc46   :  { %v1490_v52 = vmul.f32 %v4964_v15, %v1486_v47 }
 0xc4e   :  { %v4966_v39 = vpop.eup %4965 }
 0xc4f   :  { %939 = vrot.lane.b32.xlu0 %v4966_v39, %s5269_s29 }
 0xc50   :  { %v4968_v25 = vpop.eup %4967 }
 0xc51   :  { %941 = vrot.lane.b32.xlu1 %v4968_v25, %s5269_s29 }
 0xca8   :  { %v1504_v13 = vpop.permute.xlu0 %1503 }
 0xca9   :  { %v1509_v35 = vadd.f32 %v1504_v13, %v1489_v42 }
 0xcaa   :  { %v1506_v54 = vpop.permute.xlu1 %1505 }
 0xcab   :  { %4969 = vtanh.f32 %v1509_v35  ;;  %v1510_v56 = vadd.f32 %v1506_v54, %v1490_v52 }
 0xcad   :  { %4971 = vtanh.f32 %v1510_v56  ;;  %v1533_v57 = vrot.slane %v1510_v56, 7  ;;  %v1679_v56 = vld [vmem:[%s6749_s0 + $0x5] ss:$0 sm:$0xff] }
 0xcaf   :  { %v5748_v58 = vsel %vm228_vm1, %v1533_v57, %v1509_v35  ;;  %v1680_v57 = vld [vmem:[%s6749_s0 + $0x15] ss:$0 sm:$0xff] }
 0xcb8   :  { %v4970_v62 = vpop.eup %4969 }
 0xcb9   :  { %1515 = vrot.lane.b32.xlu0 %v4970_v62, %s5269_s29 }
 0xcba   :  { %v4972_v60 = vpop.eup %4971 }
 0xcbb   :  { %1517 = vrot.lane.b32.xlu1 %v4972_v60, %s5269_s29 }
 0xcbf   :  { %949 = vperm.xlu1 %4828, %v5756_v4  }
 0xcc1   :  { %v940_v2 = vpop.permute.xlu0 %939 }
 0xcc2   :  { %v945_v11 = vmul.f32 %v5723_v7, %v940_v2 }
 0xcc3   :  { %v942_v9 = vpop.permute.xlu1 %941  ;;  %1277 = vperm.xlu1 %4828, %v5760_v48  }
 0xcc4   :  { %v946_v10 = vmul.f32 %v5726_v59, %v942_v9 }
 0xcc6   :  { %v954_v12 = vrot.slane %v946_v10, 7 }
 0xcc7   :  { %964 = vrot.lane.b32.xlu1 %v963_v36, %s5271_s9 }
 0xcc8   :  { %v955_v44 = vsel %vm228_vm1, %v954_v12, %v945_v11 }
 0xcc9   :  { %956 = vrot.lane.b32.xlu0 %v955_v44, %s5270_s30 }
 0xd2b   :  { %v1516_v14 = vpop.permute.xlu0 %1515 }
 0xd2c   :  { %v1521_v3 = vmul.f32 %v4962_v53, %v1516_v14 }
 0xd2d   :  { %v1518_v16 = vpop.permute.xlu1 %1517 }
 0xd2e   :  { %v1522_v17 = vmul.f32 %v4964_v15, %v1518_v16  ;;  %v5787_v15 = vld [vmem:[%s6752_s3 + $0x2c] ss:$20 sps:$4 sm:$0xff]  }
 0xd30   :  { %v1525_v18 = vrot.slane %v1522_v17, 7 }
 0xd32   :  { %v1526_v19 = vsel %vm228_vm1, %v1525_v18, %v1521_v3 }
 0xd33   :  { %1527 = vrot.lane.b32.xlu0 %v1526_v19, %s5270_s30 }
 0xd3a   :  { %v5770_v20 = vpop.permute.xlu1 %949 }
 0xd3b   :  { %vm951_vm8 = vcmp.eq.s32.totalorder %v5770_v20, 1  ;;  %v5773_v7 = vpop.permute.xlu0 %956 }
 0xd3c   :  { %v5779_v59 = vsel %vm951_vm8, %v5773_v7, %v5651_v38  ;;  %v5796_v38 = vld [vmem:[%s6752_s3 + $0x4] ss:$20 sps:$4 sm:$0xff]  }
 0xd3d   :  { %v1091_v53 = vpack.c.bf16 %v5779_v59, %v5779_v59 }
 0xd3e   :  { %v5800_v21 = vpop.permute.xlu1 %1277 }
 0xd3f   :  { %4625 = vmatmul.mubr.msk.bf16.vlgmr.msra.gmra.mxu1 %vm62_vm4, %v1091_v53  ;;  %vm1279_vm9 = vcmp.eq.s32.totalorder %v5800_v21, 1  ;;  %v6655_v21 = vld [vmem:[%s6754_s5] ss:$0 sm:$0xff] }
 0xd40   :  { %4637 = vmatpush3.bf16.msra.mxu1 %v5787_v15  ;;  %4640 = vmatprep.mubr.msk.bf16.mxu1 %vm5267_vm0, %v5266_v0 }
 0xd41   :  { %4638 = vmatprep.subr.bf16.mxu1 %v5266_v0 }
 0xd42   :  { %v965_v17 = vpop.permute.xlu1 %964 }
 0xd43   :  { %v5840_v18 = vsel %vm951_vm8, %v965_v17, %v5716_v55 }
 0xd44   :  { %4639 = vmatpush3.bf16.msra.mxu1 %v5796_v38  ;;  %v1234_v19 = vrot.slane %v5840_v18, 1 }
 0xd45   :  { %4652 = vmatprep.subr.bf16.mxu1 %v5266_v0 }
 0xda5   :  { %v5803_v22 = vpop.permute.xlu0 %1527 }
 0xda6   :  { %v5809_v23 = vsel %vm1279_vm9, %v5803_v22, %v5668_v61  ;;  %v1089_v61 = vld [vmem:[%s6749_s0 + $0xc] ss:$0 sm:$0xff] }
 0xda7   :  { %v1681_v24 = vpack.c.bf16 %v5809_v23, %v5809_v23 }
 0xda9   :  { %4649 = vmatmul.mubr.msk.bf16.vlgmr.msra.gmra.mxu0 %vm62_vm4, %v1681_v24 }
 0xdaa   :  { %4661 = vmatpush3.bf16.msra.mxu0 %v5680_v6  ;;  %4664 = vmatprep.mubr.msk.bf16.mxu0 %vm5267_vm0, %v5266_v0 }
 0xdab   :  { %4662 = vmatprep.subr.bf16.mxu0 %v5266_v0 }
 0xdae   :  { %4663 = vmatpush3.bf16.msra.mxu0 %v5692_v8 }
 0xdaf   :  { %4676 = vmatprep.subr.bf16.mxu0 %v5266_v0 }
 0xdff   :  { %v1129_v28 = vpop.f32.mrf.mxu1 }
 0xe00   :  { %v1136_v36 = vrot.slane %v1129_v28, 1  ;;  %v1139_v39 = vadd.f32 %v1129_v28, %v1089_v61 }
 0xe01   :  { %v4626_v25 = vpop.f32.mrf.mxu1 }
 0xe02   :  { %v1140_v29 = vadd.f32 %v1136_v36, %v1090_v27  ;;  %4973 = vtanh.f32 %v1139_v39  ;;  %v4401_v52 = vmul.f32 -1.442695, %v1139_v39 }
 0xe03   :  { %v1132_v42 = vpop.f32.mrf.mxu1 }
 0xe04   :  { %4975 = vtanh.f32 %v1140_v29  ;;  %v4402_v54 = vmul.f32 -1.442695, %v1140_v29 }
 0xe05   :  { %v4627_v47 = vpop.f32.mrf.mxu1  ;;  %4977 = vpow2.f32 %v4401_v52 }
 0xe06   :  { %4979 = vpow2.f32 %v4402_v54 }
 0xe0f   :  { %v4974_v13 = vpop.eup %4973 }
 0xe10   :  { %1245 = vrot.lane.b32.xlu1 %v4974_v13, %s5269_s29 }
 0xe11   :  { %v4976_v35 = vpop.eup %4975 }
 0xe12   :  { %1247 = vrot.lane.b32.xlu0 %v4976_v35, %s5269_s29 }
 0xe16   :  { %1535 = vrot.lane.b32.xlu0 %v5748_v58, %s5271_s9  ;;  %v4978_v58 = vpop.eup %4977 }
 0xe17   :  { %v4980_v12 = vpop.eup %4979  ;;  %v1225_v44 = vadd.f32 1.0, %v4978_v58 }
 0xe18   :  { %v1226_v14 = vadd.f32 1.0, %v4980_v12 }
 0xe69   :  { %v1719_v62 = vpop.f32.mrf.mxu0 }
 0xe6a   :  { %v1726_v30 = vrot.slane %v1719_v62, 1  ;;  %v1729_v60 = vadd.f32 %v1719_v62, %v1679_v56 }
 0xe6b   :  { %v4650_v2 = vpop.f32.mrf.mxu0 }
 0xe6c   :  { %v1730_v9 = vadd.f32 %v1726_v30, %v1680_v57  ;;  %4981 = vtanh.f32 %v1729_v60  ;;  %v4411_v29 = vmul.f32 -1.442695, %v1729_v60 }
 0xe6d   :  { %v1722_v10 = vpop.f32.mrf.mxu0 }
 0xe6e   :  { %4983 = vtanh.f32 %v1730_v9  ;;  %v4412_v42 = vmul.f32 -1.442695, %v1730_v9 }
 0xe6f   :  { %v4651_v11 = vpop.f32.mrf.mxu0  ;;  %4985 = vrcp.f32 %v1225_v44 }
 0xe70   :  { %4987 = vrcp.f32 %v1226_v14 }
 0xe71   :  { %4989 = vpow2.f32 %v4411_v29 }
 0xe72   :  { %4991 = vpow2.f32 %v4412_v42 }
 0xe79   :  { %v4982_v16 = vpop.eup %4981 }
 0xe7a   :  { %1809 = vrot.lane.b32.xlu0 %v4982_v16, %s5269_s29 }
 0xe7b   :  { %v4984_v3 = vpop.eup %4983 }
 0xe7c   :  { %1811 = vrot.lane.b32.xlu1 %v4984_v3, %s5269_s29  ;;  %v5847_v53 = vpop.eup %4985 }
 0xe7d   :  { %v4988_v27 = vpop.eup %4987 }
 0xe7e   :  { %1235 = vrot.lane.b32.xlu0 %v5840_v18, %s5270_s30  ;;  %v4990_v47 = vpop.eup %4989 }
 0xe7f   :  { %v4992_v13 = vpop.eup %4991  ;;  %v1789_v35 = vadd.f32 1.0, %v4990_v47 }
 0xe80   :  { %1237 = vrot.lane.b32.xlu1 %v1234_v19, %s5270_s30  ;;  %v1790_v52 = vadd.f32 1.0, %v4992_v13 }
 0xe81   :  { %4993 = vrcp.f32 %v1789_v35 }
 0xe82   :  { %v1246_v24 = vpop.permute.xlu1 %1245  ;;  %4995 = vrcp.f32 %v1790_v52 }
 0xe83   :  { %v1251_v61 = vmul.f32 %v5847_v53, %v1246_v24 }
 0xe84   :  { %v1248_v28 = vpop.permute.xlu0 %1247 }
 0xe85   :  { %1255 = vrot.lane.b32.xlu0 %v1251_v61, %s5270_s30  ;;  %v1252_v55 = vmul.f32 %v4988_v27, %v1248_v28 }
 0xe87   :  { %1257 = vrot.lane.b32.xlu1 %v1252_v55, %s5270_s30 }
 0xe88   :  { %v1536_v36 = vpop.permute.xlu0 %1535 }
 0xe89   :  { %v5855_v39 = vsel %vm1279_vm9, %v1536_v36, %v5734_v63 }
 0xe8a   :  { %1799 = vrot.lane.b32.xlu0 %v5855_v39, %s5270_s30  ;;  %v1798_v25 = vrot.slane %v5855_v39, 1 }
 0xe8c   :  { %1801 = vrot.lane.b32.xlu1 %v1798_v25, %s5270_s30 }
 0xe8e   :  { %v4994_v54 = vpop.eup %4993 }
 0xe8f   :  { %v4996_v57 = vpop.eup %4995 }
 0xeec   :  { %v1810_v63 = vpop.permute.xlu0 %1809 }
 0xeed   :  { %v1815_v56 = vmul.f32 %v4994_v54, %v1810_v63 }
 0xeee   :  { %v1812_v62 = vpop.permute.xlu1 %1811 }
 0xeef   :  { %1819 = vrot.lane.b32.xlu0 %v1815_v56, %s5270_s30  ;;  %v1816_v30 = vmul.f32 %v4996_v57, %v1812_v62 }
 0xef0   :  { %v1236_v60 = vpop.permute.xlu0 %1235 }
 0xef1   :  { %1821 = vrot.lane.b32.xlu1 %v1816_v30, %s5270_s30  ;;  %v1241_v2 = vmul.f32 %v5847_v53, %v1236_v60 }
 0xef2   :  { %v1238_v9 = vpop.permute.xlu1 %1237 }
 0xef3   :  { %v1242_v11 = vmul.f32 %v4988_v27, %v1238_v9 }
 0xef7   :  { %v1256_v10 = vpop.permute.xlu0 %1255 }
 0xef8   :  { %v1261_v58 = vadd.f32 %v1256_v10, %v1241_v2 }
 0xef9   :  { %v1258_v12 = vpop.permute.xlu1 %1257 }
 0xefa   :  { %4997 = vtanh.f32 %v1261_v58  ;;  %v1262_v44 = vadd.f32 %v1258_v12, %v1242_v11 }
 0xefc   :  { %4999 = vtanh.f32 %v1262_v44  ;;  %v1290_v14 = vrot.slane %v1262_v44, 7  ;;  %v1800_v19 = vpop.permute.xlu0 %1799 }
 0xefd   :  { %v1805_v24 = vmul.f32 %v4994_v54, %v1800_v19 }
 0xefe   :  { %v1291_v16 = vsel %vm228_vm1, %v1290_v14, %v1261_v58  ;;  %v1802_v61 = vpop.permute.xlu1 %1801  ;;  %v1416_v14 = vld [vmem:[%s6749_s0 + $0x1b] ss:$0 sm:$0xff] }
 0xeff   :  { %v1806_v36 = vmul.f32 %v4996_v57, %v1802_v61 }
 0xf07   :  { %v4998_v17 = vpop.eup %4997 }
 0xf08   :  { %1267 = vrot.lane.b32.xlu0 %v4998_v17, %s5269_s29 }
 0xf09   :  { %v5000_v3 = vpop.eup %4999 }
 0xf0a   :  { %1269 = vrot.lane.b32.xlu1 %v5000_v3, %s5269_s29 }
 0xf61   :  { %v1820_v28 = vpop.permute.xlu0 %1819 }
 0xf62   :  { %v1825_v55 = vadd.f32 %v1820_v28, %v1805_v24 }
 0xf63   :  { %v1822_v25 = vpop.permute.xlu1 %1821 }
 0xf64   :  { %5001 = vtanh.f32 %v1825_v55  ;;  %v1826_v29 = vadd.f32 %v1822_v25, %v1806_v36  ;;  %v1995_v25 = vld [vmem:[%s6749_s0 + $0x6] ss:$0 sm:$0xff] }
 0xf66   :  { %5003 = vtanh.f32 %v1826_v29  ;;  %v1849_v42 = vrot.slane %v1826_v29, 7  ;;  %v1996_v29 = vld [vmem:[%s6749_s0 + $0x16] ss:$0 sm:$0xff] }
 0xf68   :  { %v1850_v47 = vsel %vm228_vm1, %v1849_v42, %v1825_v55 }
 0xf71   :  { %v5002_v13 = vpop.eup %5001 }
 0xf72   :  { %1831 = vrot.lane.b32.xlu0 %v5002_v13, %s5269_s29 }
 0xf73   :  { %v5004_v35 = vpop.eup %5003 }
 0xf74   :  { %1833 = vrot.lane.b32.xlu1 %v5004_v35, %s5269_s29 }
 0xf7a   :  { %v1268_v52 = vpop.permute.xlu0 %1267 }
 0xf7b   :  { %v1273_v62 = vmul.f32 %v5847_v53, %v1268_v52 }
 0xf7c   :  { %v1270_v63 = vpop.permute.xlu1 %1269 }
 0xf7d   :  { %v1274_v56 = vmul.f32 %v4988_v27, %v1270_v63 }
 0xf7f   :  { %v1282_v30 = vrot.slane %v1274_v56, 7 }
 0xf81   :  { %v1283_v60 = vsel %vm228_vm1, %v1282_v30, %v1273_v62 }
 0xf82   :  { %1284 = vrot.lane.b32.xlu1 %v1283_v60, %s5270_s30 }
 0xf86   :  { %1292 = vrot.lane.b32.xlu1 %v1291_v16, %s5271_s9 }
 0xfe4   :  { %v1832_v2 = vpop.permute.xlu0 %1831 }
 0xfe5   :  { %v1837_v58 = vmul.f32 %v4994_v54, %v1832_v2 }
 0xfe6   :  { %v1834_v9 = vpop.permute.xlu1 %1833 }
 0xfe7   :  { %v1838_v10 = vmul.f32 %v4996_v57, %v1834_v9 }
 0xfe9   :  { %v1841_v11 = vrot.slane %v1838_v10, 7 }
 0xfeb   :  { %v1842_v12 = vsel %vm228_vm1, %v1841_v11, %v1837_v58 }
 0xfec   :  { %1843 = vrot.lane.b32.xlu0 %v1842_v12, %s5270_s30 }
 0xff4   :  { %v5876_v44 = vpop.permute.xlu1 %1284 }
 0xff5   :  { %v5882_v53 = vsel %vm1279_vm9, %v5876_v44, %v5779_v59 }
 0xff6   :  { %v1417_v27 = vpack.c.bf16 %v5882_v53, %v5882_v53 }
 0xff8   :  { %4641 = vmatmul.mubr.msk.bf16.vlgmr.msra.gmra.mxu1 %vm62_vm4, %v1417_v27  ;;  %v1293_v10 = vpop.permute.xlu1 %1292 }
 0xff9   :  { %4653 = vmatpush3.bf16.msra.mxu1 %v5787_v15  ;;  %4656 = vmatprep.mubr.msk.bf16.mxu1 %vm5267_vm0, %v5266_v0  ;;  %v5929_v11 = vsel %vm1279_vm9, %v1293_v10, %v5840_v18 }
 0xffa   :  { %4654 = vmatprep.subr.bf16.mxu1 %v5266_v0  ;;  %v1555_v12 = vrot.slane %v5929_v11, 1 }
 0xffd   :  { %4655 = vmatpush3.bf16.msra.mxu1 %v5796_v38 }
 0xffe   :  { %4668 = vmatprep.subr.bf16.mxu1 %v5266_v0 }
0x105e   :  { %v5893_v54 = vpop.permute.xlu0 %1843 }
0x105f   :  { %v5899_v59 = vsel %vm951_vm8, %v5893_v54, %v5809_v23  ;;  %v1415_v23 = vld [vmem:[%s6749_s0 + $0xb] ss:$0 sm:$0xff] }
0x1060   :  { %v1997_v57 = vpack.c.bf16 %v5899_v59, %v5899_v59 }
0x1062   :  { %4665 = vmatmul.mubr.msk.bf16.vlgmr.msra.gmra.mxu0 %vm62_vm4, %v1997_v57 }
0x1063   :  { %4677 = vmatpush3.bf16.msra.mxu0 %v5680_v6  ;;  %4680 = vmatprep.mubr.msk.bf16.mxu0 %vm5267_vm0, %v5266_v0 }
0x1064   :  { %4678 = vmatprep.subr.bf16.mxu0 %v5266_v0 }
0x1067   :  { %4679 = vmatpush3.bf16.msra.mxu0 %v5692_v8 }
0x1068   :  { %4692 = vmatprep.subr.bf16.mxu0 %v5266_v0 }
0x10b8   :  { %v1455_v16 = vpop.f32.mrf.mxu1 }
0x10b9   :  { %v1462_v17 = vrot.slane %v1455_v16, 1  ;;  %v1465_v6 = vadd.f32 %v1455_v16, %v1415_v23 }
0x10ba   :  { %v4642_v3 = vpop.f32.mrf.mxu1 }
0x10bb   :  { %v1466_v19 = vadd.f32 %v1462_v17, %v1416_v14  ;;  %5005 = vtanh.f32 %v1465_v6  ;;  %v4407_v55 = vmul.f32 -1.442695, %v1465_v6 }
0x10bc   :  { %v1458_v24 = vpop.f32.mrf.mxu1 }
0x10bd   :  { %5007 = vtanh.f32 %v1466_v19  ;;  %v4408_v36 = vmul.f32 -1.442695, %v1466_v19 }
0x10be   :  { %v4643_v61 = vpop.f32.mrf.mxu1  ;;  %5009 = vpow2.f32 %v4407_v55 }
0x10bf   :  { %5011 = vpow2.f32 %v4408_v36 }
0x10c8   :  { %v5006_v8 = vpop.eup %5005 }
0x10c9   :  { %1566 = vrot.lane.b32.xlu1 %v5006_v8, %s5269_s29 }
0x10ca   :  { %v5008_v28 = vpop.eup %5007 }
0x10cb   :  { %1568 = vrot.lane.b32.xlu0 %v5008_v28, %s5269_s29 }
0x10cf   :  { %1851 = vrot.lane.b32.xlu0 %v1850_v47, %s5271_s9  ;;  %v5010_v47 = vpop.eup %5009 }
0x10d0   :  { %v5012_v30 = vpop.eup %5011  ;;  %v1546_v60 = vadd.f32 1.0, %v5010_v47 }
0x10d1   :  { %v1547_v2 = vadd.f32 1.0, %v5012_v30 }
0x1122   :  { %v2035_v42 = vpop.f32.mrf.mxu0 }
0x1123   :  { %v2042_v13 = vrot.slane %v2035_v42, 1  ;;  %v2045_v35 = vadd.f32 %v2035_v42, %v1995_v25 }
0x1124   :  { %v4666_v52 = vpop.f32.mrf.mxu0 }
0x1125   :  { %v2046_v63 = vadd.f32 %v2042_v13, %v1996_v29  ;;  %5013 = vtanh.f32 %v2045_v35  ;;  %v4417_v19 = vmul.f32 -1.442695, %v2045_v35 }
0x1126   :  { %v2038_v56 = vpop.f32.mrf.mxu0 }
0x1127   :  { %5015 = vtanh.f32 %v2046_v63  ;;  %v4418_v24 = vmul.f32 -1.442695, %v2046_v63 }
0x1128   :  { %v4667_v62 = vpop.f32.mrf.mxu0  ;;  %5017 = vrcp.f32 %v1546_v60 }
0x1129   :  { %5019 = vrcp.f32 %v1547_v2 }
0x112a   :  { %5021 = vpow2.f32 %v4417_v19 }
0x112b   :  { %5023 = vpow2.f32 %v4418_v24 }
0x1132   :  { %v5014_v9 = vpop.eup %5013 }
0x1133   :  { %2125 = vrot.lane.b32.xlu0 %v5014_v9, %s5269_s29 }
0x1134   :  { %v5016_v58 = vpop.eup %5015 }
0x1135   :  { %2127 = vrot.lane.b32.xlu1 %v5016_v58, %s5269_s29  ;;  %v5936_v27 = vpop.eup %5017 }
0x1136   :  { %v5020_v14 = vpop.eup %5019 }
0x1137   :  { %1556 = vrot.lane.b32.xlu0 %v5929_v11, %s5270_s30  ;;  %v5022_v61 = vpop.eup %5021 }
0x1138   :  { %v5024_v8 = vpop.eup %5023  ;;  %v2105_v28 = vadd.f32 1.0, %v5022_v61 }
0x1139   :  { %1558 = vrot.lane.b32.xlu1 %v1555_v12, %s5270_s30  ;;  %v2106_v55 = vadd.f32 1.0, %v5024_v8 }
0x113a   :  { %5025 = vrcp.f32 %v2105_v28 }
0x113b   :  { %v1567_v57 = vpop.permute.xlu1 %1566  ;;  %5027 = vrcp.f32 %v2106_v55 }
0x113c   :  { %v1572_v23 = vmul.f32 %v5936_v27, %v1567_v57 }
0x113d   :  { %v1569_v16 = vpop.permute.xlu0 %1568 }
0x113e   :  { %1576 = vrot.lane.b32.xlu0 %v1572_v23, %s5270_s30  ;;  %v1573_v18 = vmul.f32 %v5020_v14, %v1569_v16 }
0x1140   :  { %1578 = vrot.lane.b32.xlu1 %v1573_v18, %s5270_s30 }
0x1141   :  { %v1852_v17 = vpop.permute.xlu0 %1851 }
0x1142   :  { %v5944_v6 = vsel %vm951_vm8, %v1852_v17, %v5855_v39 }
0x1143   :  { %v2114_v3 = vrot.slane %v5944_v6, 1  ;;  %2115 = vrot.lane.b32.xlu0 %v5944_v6, %s5270_s30 }
0x1145   :  { %2117 = vrot.lane.b32.xlu1 %v2114_v3, %s5270_s30 }
0x1147   :  { %v5026_v36 = vpop.eup %5025 }
0x1148   :  { %v5028_v29 = vpop.eup %5027 }
0x11a5   :  { %v2126_v39 = vpop.permute.xlu0 %2125 }
0x11a6   :  { %v2131_v25 = vmul.f32 %v5026_v36, %v2126_v39 }
0x11a7   :  { %v2128_v42 = vpop.permute.xlu1 %2127 }
0x11a8   :  { %2135 = vrot.lane.b32.xlu0 %v2131_v25, %s5270_s30  ;;  %v2132_v13 = vmul.f32 %v5028_v29, %v2128_v42 }
0x11a9   :  { %v1557_v35 = vpop.permute.xlu0 %1556 }
0x11aa   :  { %2137 = vrot.lane.b32.xlu1 %v2132_v13, %s5270_s30  ;;  %v1562_v52 = vmul.f32 %v5936_v27, %v1557_v35 }
0x11ab   :  { %v1559_v63 = vpop.permute.xlu1 %1558 }
0x11ac   :  { %v1563_v62 = vmul.f32 %v5020_v14, %v1559_v63 }
0x11b0   :  { %v1577_v56 = vpop.permute.xlu0 %1576 }
0x11b1   :  { %v1582_v47 = vadd.f32 %v1577_v56, %v1562_v52 }
0x11b2   :  { %v1579_v30 = vpop.permute.xlu1 %1578 }
0x11b3   :  { %5029 = vtanh.f32 %v1582_v47  ;;  %v1583_v60 = vadd.f32 %v1579_v30, %v1563_v62 }
0x11b5   :  { %5031 = vtanh.f32 %v1583_v60  ;;  %v1606_v2 = vrot.slane %v1583_v60, 7  ;;  %v2116_v12 = vpop.permute.xlu0 %2115 }
0x11b6   :  { %v2121_v57 = vmul.f32 %v5026_v36, %v2116_v12 }
0x11b7   :  { %v1607_v9 = vsel %vm228_vm1, %v1606_v2, %v1582_v47  ;;  %v2118_v23 = vpop.permute.xlu1 %2117  ;;  %v1731_v2 = vld [vmem:[%s6749_s0 + $0xa] ss:$0 sm:$0xff] }
0x11b8   :  { %v2122_v17 = vmul.f32 %v5028_v29, %v2118_v23 }
0x11c0   :  { %v5030_v10 = vpop.eup %5029 }
0x11c1   :  { %1588 = vrot.lane.b32.xlu0 %v5030_v10, %s5269_s29 }
0x11c2   :  { %v5032_v58 = vpop.eup %5031 }
0x11c3   :  { %1590 = vrot.lane.b32.xlu1 %v5032_v58, %s5269_s29 }
0x121a   :  { %v2136_v16 = vpop.permute.xlu0 %2135 }
0x121b   :  { %v2141_v18 = vadd.f32 %v2136_v16, %v2121_v57 }
0x121c   :  { %v2138_v3 = vpop.permute.xlu1 %2137 }
0x121d   :  { %5033 = vtanh.f32 %v2141_v18  ;;  %v2142_v19 = vadd.f32 %v2138_v3, %v2122_v17 }
0x121f   :  { %5035 = vtanh.f32 %v2142_v19  ;;  %v2165_v24 = vrot.slane %v2142_v19, 7 }
0x1221   :  { %v2166_v61 = vsel %vm228_vm1, %v2165_v24, %v2141_v18  ;;  %v2311_v24 = vld [vmem:[%s6749_s0 + $0x7] ss:$0 sm:$0xff] }
0x122a   :  { %v5034_v8 = vpop.eup %5033 }
0x122b   :  { %2147 = vrot.lane.b32.xlu0 %v5034_v8, %s5269_s29  ;;  %v2312_v8 = vld [vmem:[%s6749_s0 + $0x17] ss:$0 sm:$0xff] }
0x122c   :  { %v5036_v28 = vpop.eup %5035 }
0x122d   :  { %2149 = vrot.lane.b32.xlu1 %v5036_v28, %s5269_s29 }
0x1233   :  { %v1589_v55 = vpop.permute.xlu0 %1588 }
0x1234   :  { %v1594_v42 = vmul.f32 %v5936_v27, %v1589_v55 }
0x1235   :  { %v1591_v39 = vpop.permute.xlu1 %1590 }
0x1236   :  { %v1595_v25 = vmul.f32 %v5020_v14, %v1591_v39 }
0x1238   :  { %v1598_v13 = vrot.slane %v1595_v25, 7 }
0x123a   :  { %v1599_v35 = vsel %vm228_vm1, %v1598_v13, %v1594_v42 }
0x123b   :  { %1600 = vrot.lane.b32.xlu1 %v1599_v35, %s5270_s30 }
0x123f   :  { %1608 = vrot.lane.b32.xlu1 %v1607_v9, %s5271_s9  ;;  %v1732_v9 = vld [vmem:[%s6749_s0 + $0x1a] ss:$0 sm:$0xff] }
0x129d   :  { %v2148_v52 = vpop.permute.xlu0 %2147 }
0x129e   :  { %v2153_v47 = vmul.f32 %v5026_v36, %v2148_v52 }
0x129f   :  { %v2150_v63 = vpop.permute.xlu1 %2149 }
0x12a0   :  { %v2154_v56 = vmul.f32 %v5028_v29, %v2150_v63 }
0x12a2   :  { %v2157_v62 = vrot.slane %v2154_v56, 7 }
0x12a4   :  { %v2158_v30 = vsel %vm228_vm1, %v2157_v62, %v2153_v47 }
0x12a5   :  { %2159 = vrot.lane.b32.xlu0 %v2158_v30, %s5270_s30 }
0x12ad   :  { %v5965_v60 = vpop.permute.xlu1 %1600 }
0x12ae   :  { %v5971_v27 = vsel %vm1201_vm15, %v5965_v60, %v5882_v53 }
0x12af   :  { %v1733_v14 = vpack.c.bf16 %v5971_v27, %v5971_v27 }
0x12b1   :  { %4657 = vmatmul.mubr.msk.bf16.vlgmr.msra.gmra.mxu1 %vm62_vm4, %v1733_v14  ;;  %v1609_v62 = vpop.permute.xlu1 %1608 }
0x12b2   :  { %4669 = vmatpush3.bf16.msra.mxu1 %v5787_v15  ;;  %4672 = vmatprep.mubr.msk.bf16.mxu1 %vm5267_vm0, %v5266_v0  ;;  %v6014_v14 = vsel %vm1201_vm15, %v1609_v62, %v5929_v11 }
0x12b3   :  { %4670 = vmatprep.subr.bf16.mxu1 %v5266_v0 }
0x12b6   :  { %4671 = vmatpush3.bf16.msra.mxu1 %v5796_v38 }
0x12b7   :  { %4684 = vmatprep.subr.bf16.mxu1 %v5266_v0 }
0x1317   :  { %v5982_v36 = vpop.permute.xlu0 %2159 }
0x1318   :  { %v5988_v53 = vsel %vm623_vm14, %v5982_v36, %v5899_v59  ;;  %v2171_v50 = vsel %vm623_vm14, %v5982_v36, 0.0 }
0x1319   :  { %v2313_v29 = vpack.c.bf16 %v5988_v53, %v5988_v53 }
0x131b   :  { %4681 = vmatmul.mubr.msk.bf16.vlgmr.msra.gmra.mxu0 %vm62_vm4, %v2313_v29  ;;  %v1871_v29 = vrot.slane %v6014_v14, 1 }
0x131c   :  { %4696 = vmatprep.mubr.msk.bf16.mxu0 %vm5267_vm0, %v5266_v0 }
0x1371   :  { %v1771_v10 = vpop.f32.mrf.mxu1 }
0x1372   :  { %v1778_v58 = vrot.slane %v1771_v10, 1  ;;  %v1781_v59 = vadd.f32 %v1771_v10, %v1731_v2 }
0x1373   :  { %v4658_v12 = vpop.f32.mrf.mxu1 }
0x1374   :  { %v1782_v57 = vadd.f32 %v1778_v58, %v1732_v9  ;;  %5037 = vtanh.f32 %v1781_v59  ;;  %v4413_v3 = vmul.f32 -1.442695, %v1781_v59 }
0x1375   :  { %v1774_v23 = vpop.f32.mrf.mxu1 }
0x1376   :  { %5039 = vtanh.f32 %v1782_v57  ;;  %v4414_v19 = vmul.f32 -1.442695, %v1782_v57 }
0x1377   :  { %v4659_v16 = vpop.f32.mrf.mxu1  ;;  %5041 = vpow2.f32 %v4413_v3 }
0x1378   :  { %5043 = vpow2.f32 %v4414_v19 }
0x1381   :  { %v5038_v18 = vpop.eup %5037 }
0x1382   :  { %1882 = vrot.lane.b32.xlu1 %v5038_v18, %s5269_s29 }
0x1383   :  { %v5040_v17 = vpop.eup %5039 }
0x1384   :  { %1884 = vrot.lane.b32.xlu0 %v5040_v17, %s5269_s29 }
0x1388   :  { %2167 = vrot.lane.b32.xlu0 %v2166_v61, %s5271_s9  ;;  %v5042_v61 = vpop.eup %5041 }
0x1389   :  { %v5044_v52 = vpop.eup %5043  ;;  %v1862_v63 = vadd.f32 1.0, %v5042_v61 }
0x138a   :  { %v1863_v56 = vadd.f32 1.0, %v5044_v52 }
0x13db   :  { %v2351_v28 = vpop.f32.mrf.mxu0 }
0x13dc   :  { %v2358_v55 = vrot.slane %v2351_v28, 1  ;;  %v2361_v39 = vadd.f32 %v2351_v28, %v2311_v24 }
0x13dd   :  { %v4682_v25 = vpop.f32.mrf.mxu0 }
0x13de   :  { %v2362_v42 = vadd.f32 %v2358_v55, %v2312_v8  ;;  %5045 = vtanh.f32 %v2361_v39  ;;  %v4423_v16 = vmul.f32 -1.442695, %v2361_v39 }
0x13df   :  { %v2354_v13 = vpop.f32.mrf.mxu0 }
0x13e0   :  { %5047 = vtanh.f32 %v2362_v42  ;;  %v4424_v18 = vmul.f32 -1.442695, %v2362_v42 }
0x13e1   :  { %v4683_v35 = vpop.f32.mrf.mxu0  ;;  %5049 = vrcp.f32 %v1862_v63 }
0x13e2   :  { %5051 = vrcp.f32 %v1863_v56 }
0x13e3   :  { %5053 = vpow2.f32 %v4423_v16 }
0x13e4   :  { %5055 = vpow2.f32 %v4424_v18 }
0x13eb   :  { %v5046_v47 = vpop.eup %5045 }
0x13ec   :  { %2441 = vrot.lane.b32.xlu0 %v5046_v47, %s5269_s29 }
0x13ed   :  { %v5048_v30 = vpop.eup %5047 }
0x13ee   :  { %2443 = vrot.lane.b32.xlu1 %v5048_v30, %s5269_s29  ;;  %v6021_v2 = vpop.eup %5049 }
0x13ef   :  { %v6024_v58 = vpop.eup %5051 }
0x13f0   :  { %1872 = vrot.lane.b32.xlu0 %v6014_v14, %s5270_s30  ;;  %v5054_v17 = vpop.eup %5053 }
0x13f1   :  { %v5056_v3 = vpop.eup %5055  ;;  %v2421_v19 = vadd.f32 1.0, %v5054_v17 }
0x13f2   :  { %1874 = vrot.lane.b32.xlu1 %v1871_v29, %s5270_s30  ;;  %v2422_v24 = vadd.f32 1.0, %v5056_v3 }
0x13f3   :  { %5057 = vrcp.f32 %v2421_v19 }
0x13f4   :  { %v1883_v9 = vpop.permute.xlu1 %1882  ;;  %5059 = vrcp.f32 %v2422_v24 }
0x13f5   :  { %v1888_v10 = vmul.f32 %v6021_v2, %v1883_v9 }
0x13f6   :  { %v1885_v59 = vpop.permute.xlu0 %1884 }
0x13f7   :  { %1892 = vrot.lane.b32.xlu0 %v1888_v10, %s5270_s30  ;;  %v1889_v11 = vmul.f32 %v6024_v58, %v1885_v59 }
0x13f9   :  { %1894 = vrot.lane.b32.xlu1 %v1889_v11, %s5270_s30 }
0x13fa   :  { %v2168_v12 = vpop.permute.xlu0 %2167 }
0x13fb   :  { %v6032_v57 = vsel %vm623_vm14, %v2168_v12, %v5944_v6 }
0x13fc   :  { %v2430_v23 = vrot.slane %v6032_v57, 1  ;;  %2431 = vrot.lane.b32.xlu0 %v6032_v57, %s5270_s30 }
0x13fe   :  { %2433 = vrot.lane.b32.xlu1 %v2430_v23, %s5270_s30 }
0x1400   :  { %v5058_v8 = vpop.eup %5057 }
0x1401   :  { %v5060_v55 = vpop.eup %5059 }
0x145e   :  { %v2442_v6 = vpop.permute.xlu0 %2441 }
0x145f   :  { %v2447_v28 = vmul.f32 %v5058_v8, %v2442_v6 }
0x1460   :  { %v2444_v25 = vpop.permute.xlu1 %2443 }
0x1461   :  { %2451 = vrot.lane.b32.xlu0 %v2447_v28, %s5270_s30  ;;  %v2448_v13 = vmul.f32 %v5060_v55, %v2444_v25  ;;  %v6051_v28 = vld [vmem:[%s6752_s3 + $0x30] ss:$20 sps:$4 sm:$0xff]  }
0x1462   :  { %v1873_v39 = vpop.permute.xlu0 %1872  ;;  %4693 = vmatpush3.bf16.msra.mxu0 %v6051_v28 }
0x1463   :  { %2453 = vrot.lane.b32.xlu1 %v2448_v13, %s5270_s30  ;;  %v1878_v42 = vmul.f32 %v6021_v2, %v1873_v39  ;;  %v6057_v39 = vld [vmem:[%s6752_s3 + $0x8] ss:$20 sps:$4 sm:$0xff]   ;;  %4694 = vmatprep.subr.bf16.mxu0 %v5266_v0 }
0x1464   :  { %v1875_v61 = vpop.permute.xlu1 %1874 }
0x1465   :  { %v1879_v63 = vmul.f32 %v6024_v58, %v1875_v61 }
0x1466   :  { %4695 = vmatpush3.bf16.msra.mxu0 %v6057_v39 }
0x1467   :  { %4708 = vmatprep.subr.bf16.mxu0 %v5266_v0 }
0x1469   :  { %v1893_v35 = vpop.permute.xlu0 %1892 }
0x146a   :  { %v1898_v52 = vadd.f32 %v1893_v35, %v1878_v42 }
0x146b   :  { %v1895_v56 = vpop.permute.xlu1 %1894 }
0x146c   :  { %5061 = vtanh.f32 %v1898_v52  ;;  %v1899_v47 = vadd.f32 %v1895_v56, %v1879_v63 }
0x146e   :  { %5063 = vtanh.f32 %v1899_v47  ;;  %v1922_v62 = vrot.slane %v1899_v47, 7  ;;  %v2432_v10 = vpop.permute.xlu0 %2431 }
0x146f   :  { %v2437_v59 = vmul.f32 %v5058_v8, %v2432_v10 }
0x1470   :  { %v1923_v30 = vsel %vm228_vm1, %v1922_v62, %v1898_v52  ;;  %v2434_v11 = vpop.permute.xlu1 %2433 }
0x1471   :  { %v2438_v16 = vmul.f32 %v5060_v55, %v2434_v11 }
0x1479   :  { %v5062_v29 = vpop.eup %5061 }
0x147a   :  { %1904 = vrot.lane.b32.xlu0 %v5062_v29, %s5269_s29 }
0x147b   :  { %v5064_v9 = vpop.eup %5063 }
0x147c   :  { %1906 = vrot.lane.b32.xlu1 %v5064_v9, %s5269_s29 }
0x14d3   :  { %v2452_v12 = vpop.permute.xlu0 %2451 }
0x14d4   :  { %v2457_v23 = vadd.f32 %v2452_v12, %v2437_v59 }
0x14d5   :  { %v2454_v18 = vpop.permute.xlu1 %2453 }
0x14d6   :  { %5065 = vtanh.f32 %v2457_v23  ;;  %v2458_v17 = vadd.f32 %v2454_v18, %v2438_v16 }
0x14d8   :  { %5067 = vtanh.f32 %v2458_v17  ;;  %v2481_v3 = vrot.slane %v2458_v17, 7 }
0x14da   :  { %v2482_v19 = vsel %vm228_vm1, %v2481_v3, %v2457_v23 }
0x14e3   :  { %v5066_v24 = vpop.eup %5065 }
0x14e4   :  { %2463 = vrot.lane.b32.xlu0 %v5066_v24, %s5269_s29 }
0x14e5   :  { %v5068_v6 = vpop.eup %5067 }
0x14e6   :  { %2465 = vrot.lane.b32.xlu1 %v5068_v6, %s5269_s29  ;;  %v2618_v6 = vld [vmem:[%s6750_s1] sm:$0x1] }
0x14ec   :  { %v1905_v25 = vpop.permute.xlu0 %1904 }
0x14ed   :  { %v1910_v61 = vmul.f32 %v6021_v2, %v1905_v25  ;;  %v2619_v25 = vld [vmem:[%s6750_s1 + $0x8] sm:$0x1] }
0x14ee   :  { %v1907_v13 = vpop.permute.xlu1 %1906 }
0x14ef   :  { %v1911_v42 = vmul.f32 %v6024_v58, %v1907_v13 }
0x14f1   :  { %v1914_v35 = vrot.slane %v1911_v42, 7 }
0x14f3   :  { %v1915_v52 = vsel %vm228_vm1, %v1914_v35, %v1910_v61 }
0x14f4   :  { %1916 = vrot.lane.b32.xlu1 %v1915_v52, %s5270_s30 }
0x14f8   :  { %1924 = vrot.lane.b32.xlu1 %v1923_v30, %s5271_s9 }
0x1556   :  { %v2464_v63 = vpop.permute.xlu0 %2463 }
0x1557   :  { %v2469_v62 = vmul.f32 %v5058_v8, %v2464_v63 }
0x1558   :  { %v2466_v56 = vpop.permute.xlu1 %2465 }
0x1559   :  { %v2470_v47 = vmul.f32 %v5060_v55, %v2466_v56 }
0x155b   :  { %v2473_v58 = vrot.slane %v2470_v47, 7 }
0x155d   :  { %v2474_v29 = vsel %vm228_vm1, %v2473_v58, %v2469_v62 }
0x155e   :  { %2475 = vrot.lane.b32.xlu0 %v2474_v29, %s5270_s30 }
0x1566   :  { %v6069_v2 = vpop.permute.xlu1 %1916 }
0x1567   :  { %v6075_v9 = vsel %vm873_vm11, %v6069_v2, %v5971_v27  ;;  %v1928_v1 = vsel %vm873_vm11, %v6069_v2, 0.0 }
0x1568   :  { %v2049_v30 = vpack.c.bf16 %v6075_v9, %v6075_v9 }
0x156a   :  { %4673 = vmatmul.mubr.msk.bf16.vlgmr.msra.gmra.mxu1 %vm62_vm4, %v2049_v30  ;;  %v1925_v30 = vpop.permute.xlu1 %1924 }
0x156b   :  { %4685 = vmatpush3.bf16.msra.mxu1 %v5787_v15  ;;  %4688 = vmatprep.mubr.msk.bf16.mxu1 %vm5267_vm0, %v5266_v0 }
0x156c   :  { %4686 = vmatprep.subr.bf16.mxu1 %v5266_v0 }
0x156f   :  { %4687 = vmatpush3.bf16.msra.mxu1 %v5796_v38  ;;  %v2047_v38 = vld [vmem:[%s6749_s0 + $0x9] ss:$0 sm:$0xff] }
0x1570   :  { %4700 = vmatprep.subr.bf16.mxu1 %v5266_v0 }
0x15d0   :  { %v6086_v8 = vpop.permute.xlu0 %2475 }
0x15d1   :  { %v6092_v27 = vsel %vm294_vm10, %v6086_v8, %v5988_v53  ;;  %v2048_v53 = vld [vmem:[%s6749_s0 + $0x19] ss:$0 sm:$0xff] }
0x15d2   :  { %v2620_v15 = vpack.c.bf16 %v6092_v27, %v6092_v27 }
0x15d4   :  { %4697 = vmatmul.mubr.msk.bf16.vlgmr.msra.gmra.mxu0 %vm62_vm4, %v2620_v15 }
0x15d5   :  { %4709 = vmatpush3.bf16.msra.mxu0 %v6051_v28  ;;  %4712 = vmatprep.mubr.msk.bf16.mxu0 %vm5267_vm0, %v5266_v0 }
0x15d6   :  { %4710 = vmatprep.subr.bf16.mxu0 %v5266_v0 }
0x15d9   :  { %4711 = vmatpush3.bf16.msra.mxu0 %v6057_v39 }
0x15da   :  { %4724 = vmatprep.subr.bf16.mxu0 %v5266_v0 }
0x162a   :  { %v2087_v55 = vpop.f32.mrf.mxu1 }
0x162b   :  { %v2094_v10 = vrot.slane %v2087_v55, 1  ;;  %v2097_v59 = vadd.f32 %v2087_v55, %v2047_v38  ;;  %v6122_v38 = vsel %vm873_vm11, %v1925_v30, %v6014_v14 }
0x162c   :  { %v4674_v11 = vpop.f32.mrf.mxu1 }
0x162d   :  { %v2098_v12 = vadd.f32 %v2094_v10, %v2048_v53  ;;  %5069 = vtanh.f32 %v2097_v59  ;;  %v4419_v3 = vmul.f32 -1.442695, %v2097_v59  ;;  %v2187_v53 = vrot.slane %v6122_v38, 1 }
0x162e   :  { %v2090_v23 = vpop.f32.mrf.mxu1 }
0x162f   :  { %5071 = vtanh.f32 %v2098_v12  ;;  %v4420_v24 = vmul.f32 -1.442695, %v2098_v12 }
0x1630   :  { %v4675_v16 = vpop.f32.mrf.mxu1  ;;  %5073 = vpow2.f32 %v4419_v3 }
0x1631   :  { %5075 = vpow2.f32 %v4420_v24 }
0x163a   :  { %v5070_v18 = vpop.eup %5069 }
0x163b   :  { %2198 = vrot.lane.b32.xlu1 %v5070_v18, %s5269_s29 }
0x163c   :  { %v5072_v17 = vpop.eup %5071 }
0x163d   :  { %2200 = vrot.lane.b32.xlu0 %v5072_v17, %s5269_s29 }
0x1641   :  { %2483 = vrot.lane.b32.xlu0 %v2482_v19, %s5271_s9  ;;  %v5074_v19 = vpop.eup %5073 }
0x1642   :  { %v5076_v47 = vpop.eup %5075  ;;  %v2178_v62 = vadd.f32 1.0, %v5074_v19 }
0x1643   :  { %v2179_v58 = vadd.f32 1.0, %v5076_v47 }
0x1694   :  { %v2670_v13 = vpop.f32.mrf.mxu0 }
0x1695   :  { %v2677_v42 = vrot.slane %v2670_v13, 1  ;;  %v2680_v61 = vadd.f32 %v2670_v13, %v2618_v6 }
0x1696   :  { %v4698_v35 = vpop.f32.mrf.mxu0 }
0x1697   :  { %v2681_v52 = vadd.f32 %v2677_v42, %v2619_v25  ;;  %5077 = vtanh.f32 %v2680_v61  ;;  %v4430_v17 = vmul.f32 -1.442695, %v2680_v61 }
0x1698   :  { %v2673_v63 = vpop.f32.mrf.mxu0 }
0x1699   :  { %5079 = vtanh.f32 %v2681_v52  ;;  %v4431_v3 = vmul.f32 -1.442695, %v2681_v52 }
0x169a   :  { %v4699_v56 = vpop.f32.mrf.mxu0  ;;  %5081 = vrcp.f32 %v2178_v62 }
0x169b   :  { %5083 = vrcp.f32 %v2179_v58 }
0x169c   :  { %5085 = vpow2.f32 %v4430_v17 }
0x169d   :  { %5087 = vpow2.f32 %v4431_v3 }
0x16a4   :  { %v5078_v29 = vpop.eup %5077 }
0x16a5   :  { %2708 = vrot.lane.b32.xlu0 %v5078_v29, %s5269_s29 }
0x16a6   :  { %v5080_v15 = vpop.eup %5079 }
0x16a7   :  { %2710 = vrot.lane.b32.xlu1 %v5080_v15, %s5269_s29  ;;  %v6129_v55 = vpop.eup %5081 }
0x16a8   :  { %v6132_v11 = vpop.eup %5083 }
0x16a9   :  { %2188 = vrot.lane.b32.xlu0 %v6122_v38, %s5270_s30  ;;  %v5086_v24 = vpop.eup %5085 }
0x16aa   :  { %v5088_v6 = vpop.eup %5087  ;;  %v2688_v25 = vadd.f32 1.0, %v5086_v24 }
0x16ab   :  { %2190 = vrot.lane.b32.xlu1 %v2187_v53, %s5270_s30  ;;  %v2689_v13 = vadd.f32 1.0, %v5088_v6 }
0x16ac   :  { %5089 = vrcp.f32 %v2688_v25 }
0x16ad   :  { %v2199_v10 = vpop.permute.xlu1 %2198  ;;  %5091 = vrcp.f32 %v2689_v13 }
0x16ae   :  { %v2204_v59 = vmul.f32 %v6129_v55, %v2199_v10 }
0x16af   :  { %v2201_v12 = vpop.permute.xlu0 %2200 }
0x16b0   :  { %2208 = vrot.lane.b32.xlu0 %v2204_v59, %s5270_s30  ;;  %v2205_v14 = vmul.f32 %v6132_v11, %v2201_v12  ;;  %v5273_v59 = vmov 1  }
0x16b1   :  { %4829 = vset.pattern.permute.xlu0 %v5273_v59  ;;  %4830 = vset.pattern.permute.xlu1 %v5273_v59 }
0x16b2   :  { %2210 = vrot.lane.b32.xlu1 %v2205_v14, %s5270_s30 }
0x16b3   :  { %v2484_v23 = vpop.permute.xlu0 %2483 }
0x16b4   :  { %v6140_v16 = vsel %vm294_vm10, %v2484_v23, %v6032_v57 }
0x16b5   :  { %v2697_v18 = vrot.slane %v6140_v16, 1  ;;  %2698 = vrot.lane.b32.xlu0 %v6140_v16, %s5270_s30 }
0x16b7   :  { %2700 = vrot.lane.b32.xlu1 %v2697_v18, %s5270_s30 }
0x16b9   :  { %v5090_v42 = vpop.eup %5089 }
0x16ba   :  { %v5092_v63 = vpop.eup %5091 }
0x1717   :  { %v2709_v57 = vpop.permute.xlu0 %2708 }
0x1718   :  { %v2714_v35 = vmul.f32 %v5090_v42, %v2709_v57 }
0x1719   :  { %v2711_v19 = vpop.permute.xlu1 %2710 }
0x171a   :  { %2718 = vrot.lane.b32.xlu0 %v2714_v35, %s5270_s30  ;;  %v2715_v56 = vmul.f32 %v5092_v63, %v2711_v19 }
0x171b   :  { %v2189_v61 = vpop.permute.xlu0 %2188 }
0x171c   :  { %2720 = vrot.lane.b32.xlu1 %v2715_v56, %s5270_s30  ;;  %v2194_v52 = vmul.f32 %v6129_v55, %v2189_v61 }
0x171d   :  { %v2191_v47 = vpop.permute.xlu1 %2190 }
0x171e   :  { %v2195_v29 = vmul.f32 %v6132_v11, %v2191_v47 }
0x1722   :  { %v2209_v62 = vpop.permute.xlu0 %2208 }
0x1723   :  { %v2214_v58 = vadd.f32 %v2209_v62, %v2194_v52 }
0x1724   :  { %v2211_v30 = vpop.permute.xlu1 %2210 }
0x1725   :  { %5093 = vtanh.f32 %v2214_v58  ;;  %v2215_v15 = vadd.f32 %v2211_v30, %v2195_v29 }
0x1727   :  { %5095 = vtanh.f32 %v2215_v15  ;;  %v2238_v53 = vrot.slane %v2215_v15, 7  ;;  %v2699_v23 = vpop.permute.xlu0 %2698 }
0x1728   :  { %v2704_v18 = vmul.f32 %v5090_v42, %v2699_v23 }
0x1729   :  { %v6151_v10 = vsel %vm228_vm1, %v2238_v53, %v2214_v58  ;;  %v2701_v17 = vpop.permute.xlu1 %2700 }
0x172a   :  { %v2705_v6 = vmul.f32 %v5092_v63, %v2701_v17 }
0x1732   :  { %v5094_v12 = vpop.eup %5093 }
0x1733   :  { %2220 = vrot.lane.b32.xlu0 %v5094_v12, %s5269_s29 }
0x1734   :  { %v5096_v14 = vpop.eup %5095 }
0x1735   :  { %2222 = vrot.lane.b32.xlu1 %v5096_v14, %s5269_s29 }
0x178c   :  { %v2719_v3 = vpop.permute.xlu0 %2718 }
0x178d   :  { %v2724_v24 = vadd.f32 %v2719_v3, %v2704_v18 }
0x178e   :  { %v2721_v25 = vpop.permute.xlu1 %2720 }
0x178f   :  { %5097 = vtanh.f32 %v2724_v24  ;;  %v2725_v13 = vadd.f32 %v2721_v25, %v2705_v6 }
0x1791   :  { %5099 = vtanh.f32 %v2725_v13  ;;  %v2752_v57 = vrot.slane %v2725_v13, 7 }
0x1793   :  { %v2753_v35 = vsel %vm228_vm1, %v2752_v57, %v2724_v24 }
0x179c   :  { %v5098_v19 = vpop.eup %5097 }
0x179d   :  { %2730 = vrot.lane.b32.xlu0 %v5098_v19, %s5269_s29  ;;  %v2787_v19 = vld [vmem:[%s6750_s1 + $0x9] sm:$0x1] }
0x179e   :  { %v5100_v56 = vpop.eup %5099 }
0x179f   :  { %2732 = vrot.lane.b32.xlu1 %v5100_v56, %s5269_s29 }
0x17a1   :  { %2739 = vperm.xlu0 %4829, %v5360_v37  }
0x17a5   :  { %v2221_v61 = vpop.permute.xlu0 %2220 }
0x17a6   :  { %v2226_v62 = vmul.f32 %v6129_v55, %v2221_v61 }
0x17a7   :  { %v2223_v52 = vpop.permute.xlu1 %2222 }
0x17a8   :  { %v2227_v47 = vmul.f32 %v6132_v11, %v2223_v52 }
0x17aa   :  { %v2230_v58 = vrot.slane %v2227_v47, 7 }
0x17ac   :  { %v2231_v29 = vsel %vm228_vm1, %v2230_v58, %v2226_v62 }
0x17ad   :  { %2232 = vrot.lane.b32.xlu1 %v2231_v29, %s5270_s30 }
0x180f   :  { %v2731_v30 = vpop.permute.xlu0 %2730 }
0x1810   :  { %v2736_v59 = vmul.f32 %v5090_v42, %v2731_v30 }
0x1811   :  { %v2733_v15 = vpop.permute.xlu1 %2732 }
0x1812   :  { %v2737_v53 = vmul.f32 %v5092_v63, %v2733_v15 }
0x1814   :  { %v2744_v12 = vrot.slane %v2737_v53, 7 }
0x1816   :  { %v2745_v14 = vsel %vm228_vm1, %v2744_v12, %v2736_v59 }
0x1817   :  { %2746 = vrot.lane.b32.xlu1 %v2745_v14, %s5270_s30 }
0x181b   :  { %2754 = vrot.lane.b32.xlu1 %v2753_v35, %s5271_s9  ;;  %v2786_v35 = vld [vmem:[%s6750_s1 + $0x1] sm:$0x1] }
0x181c   :  { %v2740_v42 = vpop.permute.xlu0 %2739 }
0x181d   :  { %vm2741_vm12 = vcmp.eq.s32.totalorder %v2740_v42, 1 }
0x181f   :  { %v6166_v37 = vpop.permute.xlu1 %2232 }
0x1820   :  { %v2235_v55 = vsel %vm545_vm7, %v6166_v37, %v6075_v9  ;;  %v2244_v45 = vsel %vm545_vm7, %v6166_v37, 0.0 }
0x1821   :  { %v2365_v11 = vpack.c.bf16 %v2235_v55, %v2235_v55 }
0x1823   :  { %4689 = vmatmul.mubr.msk.bf16.vlgmr.msra.gmra.mxu1 %vm62_vm4, %v2365_v11 }
0x1824   :  { %4701 = vmatpush3.bf16.msra.mxu1 %v6051_v28  ;;  %4704 = vmatprep.mubr.msk.bf16.mxu1 %vm5267_vm0, %v5266_v0 }
0x1825   :  { %4702 = vmatprep.subr.bf16.mxu1 %v5266_v0 }
0x1828   :  { %4703 = vmatpush3.bf16.msra.mxu1 %v6057_v39 }
0x1829   :  { %4716 = vmatprep.subr.bf16.mxu1 %v5266_v0 }
0x1889   :  { %v2747_v63 = vpop.permute.xlu1 %2746 }
0x188a   :  { %v6181_v9 = vsel %vm2741_vm12, %v2747_v63, %v6092_v27  ;;  %v2758_v23 = vsel %vm2741_vm12, %v2747_v63, 0.0 }
0x188b   :  { %v2766_v18 = vrot.slane %v2758_v23, %v5373_v51  ;;  %v2788_v17 = vpack.c.bf16 %v6181_v9, %v6181_v9 }
0x188d   :  { %v2767_v3 = vcombine.high %v2766_v18, %v2766_v18  ;;  %v2774_v24 = vrot.slane %v2766_v18, %v5373_v51  ;;  %4705 = vmatmul.mubr.msk.bf16.vlgmr.msra.gmra.mxu1 %vm62_vm4, %v2788_v17  ;;  %v2755_v15 = vpop.permute.xlu1 %2754 }
0x188e   :  { %4717 = vmatpush3.bf16.msra.mxu1 %v6051_v28  ;;  %4720 = vmatprep.mubr.msk.bf16.mxu1 %vm5267_vm0, %v5266_v0  ;;  %v6209_v59 = vsel %vm2741_vm12, %v2755_v15, %v6140_v16 }
0x188f   :  { %v2781_v27 = vrot.slane %v2767_v3, %v5373_v51  ;;  %2784 = vst.msk [vmem:[#allocation3] sm:$0x1] %vm336_vm5, %v2774_v24  ;;  %4718 = vmatprep.subr.bf16.mxu1 %v5266_v0  ;;  %v2853_v12 = vrot.slane %v6209_v59, 1 }
0x1891   :  { %2785 = vst.msk [vmem:[#allocation3 + $0x8] sm:$0x1] %vm336_vm5, %v2781_v27 }
0x1892   :  { %4719 = vmatpush3.bf16.msra.mxu1 %v6057_v39 }
0x1893   :  { %4732 = vmatprep.subr.bf16.mxu1 %v5266_v0 }
0x18e3   :  { %v6198_v6 = vpop.f32.mrf.mxu1 }
0x18e5   :  { %v4690_v25 = vpop.f32.mrf.mxu1 }
0x18e7   :  { %v2406_v13 = vpop.f32.mrf.mxu1 }
0x18e9   :  { %v4691_v57 = vpop.f32.mrf.mxu1 }
0x194d   :  { %v2826_v56 = vpop.f32.mrf.mxu1 }
0x194e   :  { %v2833_v61 = vrot.slane %v2826_v56, 1  ;;  %v2836_v52 = vadd.f32 %v2826_v56, %v2786_v35 }
0x194f   :  { %v4706_v47 = vpop.f32.mrf.mxu1 }
0x1950   :  { %v2837_v62 = vadd.f32 %v2833_v61, %v2787_v19  ;;  %5101 = vtanh.f32 %v2836_v52  ;;  %v4433_v14 = vmul.f32 -1.442695, %v2836_v52 }
0x1951   :  { %v2829_v58 = vpop.f32.mrf.mxu1 }
0x1952   :  { %5103 = vtanh.f32 %v2837_v62  ;;  %v4434_v55 = vmul.f32 -1.442695, %v2837_v62 }
0x1953   :  { %v4707_v29 = vpop.f32.mrf.mxu1  ;;  %5105 = vpow2.f32 %v4433_v14 }
0x1954   :  { %5107 = vpow2.f32 %v4434_v55 }
0x195d   :  { %v5102_v30 = vpop.eup %5101 }
0x195e   :  { %2864 = vrot.lane.b32.xlu1 %v5102_v30, %s5269_s29 }
0x195f   :  { %v5104_v53 = vpop.eup %5103 }
0x1960   :  { %2866 = vrot.lane.b32.xlu0 %v5104_v53, %s5269_s29  ;;  %v5106_v11 = vpop.eup %5105 }
0x1961   :  { %v5108_v63 = vpop.eup %5107  ;;  %v2844_v23 = vadd.f32 1.0, %v5106_v11 }
0x1962   :  { %2854 = vrot.lane.b32.xlu1 %v6209_v59, %s5270_s30  ;;  %v2845_v18 = vadd.f32 1.0, %v5108_v63 }
0x1963   :  { %5109 = vrcp.f32 %v2844_v23 }
0x1964   :  { %2856 = vrot.lane.b32.xlu0 %v2853_v12, %s5270_s30  ;;  %5111 = vrcp.f32 %v2845_v18 }
0x1970   :  { %v5110_v16 = vpop.eup %5109 }
0x1971   :  { %v5112_v3 = vpop.eup %5111 }
0x19d0   :  { %v2865_v42 = vpop.permute.xlu1 %2864 }
0x19d1   :  { %v2870_v17 = vmul.f32 %v5110_v16, %v2865_v42 }
0x19d2   :  { %v2867_v24 = vpop.permute.xlu0 %2866 }
0x19d3   :  { %2874 = vrot.lane.b32.xlu1 %v2870_v17, %s5270_s30  ;;  %v2871_v27 = vmul.f32 %v5112_v3, %v2867_v24  ;;  %v2943_v24 = vld [vmem:[%s6750_s1 + $0xa] sm:$0x1] }
0x19d4   :  { %v2855_v25 = vpop.permute.xlu1 %2854 }
0x19d5   :  { %2876 = vrot.lane.b32.xlu0 %v2871_v27, %s5270_s30  ;;  %v2860_v13 = vmul.f32 %v5110_v16, %v2855_v25 }
0x19d6   :  { %v2857_v57 = vpop.permute.xlu0 %2856 }
0x19d7   :  { %v2861_v56 = vmul.f32 %v5112_v3, %v2857_v57 }
0x1a45   :  { %v2875_v35 = vpop.permute.xlu1 %2874 }
0x1a46   :  { %v2880_v19 = vadd.f32 %v2875_v35, %v2860_v13 }
0x1a47   :  { %v2877_v61 = vpop.permute.xlu0 %2876 }
0x1a48   :  { %5113 = vtanh.f32 %v2880_v19  ;;  %v2881_v52 = vadd.f32 %v2877_v61, %v2861_v56 }
0x1a4a   :  { %5115 = vtanh.f32 %v2881_v52  ;;  %v2908_v58 = vrot.slane %v2881_v52, 7 }
0x1a4c   :  { %v2909_v29 = vsel %vm228_vm1, %v2908_v58, %v2880_v19 }
0x1a55   :  { %v5114_v47 = vpop.eup %5113 }
0x1a56   :  { %2886 = vrot.lane.b32.xlu1 %v5114_v47, %s5269_s29 }
0x1a57   :  { %v5116_v62 = vpop.eup %5115 }
0x1a58   :  { %2888 = vrot.lane.b32.xlu0 %v5116_v62, %s5269_s29 }
0x1a5c   :  { %2895 = vperm.xlu0 %4829, %v5440_v46  }
0x1a60   :  { %2910 = vrot.lane.b32.xlu0 %v2909_v29, %s5271_s9 }
0x1ac8   :  { %v2887_v30 = vpop.permute.xlu1 %2886 }
0x1ac9   :  { %v2892_v12 = vmul.f32 %v5110_v16, %v2887_v30 }
0x1aca   :  { %v2889_v15 = vpop.permute.xlu0 %2888 }
0x1acb   :  { %v2893_v53 = vmul.f32 %v5112_v3, %v2889_v15  ;;  %v2942_v3 = vld [vmem:[%s6750_s1 + $0x2] sm:$0x1] }
0x1acd   :  { %v2900_v14 = vrot.slane %v2893_v53, 7 }
0x1acf   :  { %v2901_v55 = vsel %vm228_vm1, %v2900_v14, %v2892_v12 }
0x1ad0   :  { %2902 = vrot.lane.b32.xlu1 %v2901_v55, %s5270_s30 }
0x1ad7   :  { %v2896_v11 = vpop.permute.xlu0 %2895 }
0x1ad8   :  { %vm2897_vm13 = vcmp.eq.s32.totalorder %v2896_v11, 1 }
0x1adb   :  { %v2911_v52 = vpop.permute.xlu0 %2910 }
0x1adc   :  { %v6253_v62 = vsel %vm2897_vm13, %v2911_v52, %v6209_v59 }
0x1add   :  { %v3009_v58 = vrot.slane %v6253_v62, 1 }
0x1b42   :  { %v2903_v63 = vpop.permute.xlu1 %2902 }
0x1b43   :  { %v6227_v23 = vsel %vm2897_vm13, %v2903_v63, %v6181_v9  ;;  %v2914_v46 = vsel %vm2897_vm13, %v2903_v63, 0.0 }
0x1b44   :  { %v2922_v18 = vrot.slane %v2914_v46, %v5373_v51  ;;  %v2944_v42 = vpack.c.bf16 %v6227_v23, %v6227_v23 }
0x1b46   :  { %v2923_v16 = vcombine.high %v2922_v18, %v2922_v18  ;;  %v2930_v17 = vrot.slane %v2922_v18, %v5373_v51  ;;  %4713 = vmatmul.mubr.msk.bf16.vlgmr.msra.gmra.mxu0 %vm62_vm4, %v2944_v42 }
0x1b47   :  { %4725 = vmatpush3.bf16.msra.mxu0 %v6051_v28  ;;  %4728 = vmatprep.mubr.msk.bf16.mxu0 %vm5267_vm0, %v5266_v0 }
0x1b48   :  { %v2937_v9 = vrot.slane %v2923_v16, %v5373_v51  ;;  %2940 = vst.msk [vmem:[#allocation3 + $0x1] sm:$0x1] %vm336_vm5, %v2930_v17  ;;  %4726 = vmatprep.subr.bf16.mxu0 %v5266_v0 }
0x1b4a   :  { %2941 = vst.msk [vmem:[#allocation3 + $0x9] sm:$0x1] %vm336_vm5, %v2937_v9 }
0x1b4b   :  { %4727 = vmatpush3.bf16.msra.mxu0 %v6057_v39 }
0x1b4c   :  { %4740 = vmatprep.subr.bf16.mxu0 %v5266_v0 }
0x1c06   :  { %v2982_v27 = vpop.f32.mrf.mxu0 }
0x1c07   :  { %v2989_v25 = vrot.slane %v2982_v27, 1  ;;  %v2992_v13 = vadd.f32 %v2982_v27, %v2942_v3 }
0x1c08   :  { %v4714_v57 = vpop.f32.mrf.mxu0 }
0x1c09   :  { %v2993_v35 = vadd.f32 %v2989_v25, %v2943_v24  ;;  %5117 = vtanh.f32 %v2992_v13  ;;  %v4436_v29 = vmul.f32 -1.442695, %v2992_v13 }
0x1c0a   :  { %v2985_v19 = vpop.f32.mrf.mxu0 }
0x1c0b   :  { %5119 = vtanh.f32 %v2993_v35  ;;  %v4437_v30 = vmul.f32 -1.442695, %v2993_v35 }
0x1c0c   :  { %v4715_v56 = vpop.f32.mrf.mxu0  ;;  %5121 = vpow2.f32 %v4436_v29 }
0x1c0d   :  { %5123 = vpow2.f32 %v4437_v30 }
0x1c16   :  { %v5118_v61 = vpop.eup %5117 }
0x1c17   :  { %3020 = vrot.lane.b32.xlu0 %v5118_v61, %s5269_s29 }
0x1c18   :  { %v5120_v47 = vpop.eup %5119 }
0x1c19   :  { %3022 = vrot.lane.b32.xlu1 %v5120_v47, %s5269_s29  ;;  %v5122_v15 = vpop.eup %5121 }
0x1c1a   :  { %v5124_v53 = vpop.eup %5123  ;;  %v3000_v12 = vadd.f32 1.0, %v5122_v15 }
0x1c1b   :  { %3010 = vrot.lane.b32.xlu0 %v6253_v62, %s5270_s30  ;;  %v3001_v14 = vadd.f32 1.0, %v5124_v53 }
0x1c1c   :  { %5125 = vrcp.f32 %v3000_v12 }
0x1c1d   :  { %3012 = vrot.lane.b32.xlu1 %v3009_v58, %s5270_s30  ;;  %5127 = vrcp.f32 %v3001_v14 }
0x1c29   :  { %v5126_v59 = vpop.eup %5125 }
0x1c2a   :  { %v5128_v63 = vpop.eup %5127 }
0x1c89   :  { %v3021_v55 = vpop.permute.xlu0 %3020 }
0x1c8a   :  { %v3026_v11 = vmul.f32 %v5126_v59, %v3021_v55 }
0x1c8b   :  { %v3023_v46 = vpop.permute.xlu1 %3022 }
0x1c8c   :  { %3030 = vrot.lane.b32.xlu0 %v3026_v11, %s5270_s30  ;;  %v3027_v18 = vmul.f32 %v5128_v63, %v3023_v46  ;;  %v3098_v11 = vld [vmem:[%s6750_s1 + $0x3] sm:$0x1] }
0x1c8d   :  { %v3011_v42 = vpop.permute.xlu0 %3010 }
0x1c8e   :  { %3032 = vrot.lane.b32.xlu1 %v3027_v18, %s5270_s30  ;;  %v3016_v16 = vmul.f32 %v5126_v59, %v3011_v42 }
0x1c8f   :  { %v3013_v17 = vpop.permute.xlu1 %3012 }
0x1c90   :  { %v3017_v24 = vmul.f32 %v5128_v63, %v3013_v17 }
0x1cfe   :  { %v3031_v9 = vpop.permute.xlu0 %3030 }
0x1cff   :  { %v3036_v3 = vadd.f32 %v3031_v9, %v3016_v16 }
0x1d00   :  { %v3033_v27 = vpop.permute.xlu1 %3032 }
0x1d01   :  { %5129 = vtanh.f32 %v3036_v3  ;;  %v3037_v25 = vadd.f32 %v3033_v27, %v3017_v24 }
0x1d03   :  { %5131 = vtanh.f32 %v3037_v25  ;;  %v3064_v35 = vrot.slane %v3037_v25, 7 }
0x1d05   :  { %v3065_v19 = vsel %vm228_vm1, %v3064_v35, %v3036_v3 }
0x1d0e   :  { %v5130_v13 = vpop.eup %5129 }
0x1d0f   :  { %3042 = vrot.lane.b32.xlu0 %v5130_v13, %s5269_s29 }
0x1d10   :  { %v5132_v57 = vpop.eup %5131 }
0x1d11   :  { %3044 = vrot.lane.b32.xlu1 %v5132_v57, %s5269_s29 }
0x1d15   :  { %3051 = vperm.xlu1 %4830, %v5522_v31  }
0x1d19   :  { %3066 = vrot.lane.b32.xlu1 %v3065_v19, %s5271_s9 }
0x1d81   :  { %v3043_v56 = vpop.permute.xlu0 %3042 }
0x1d82   :  { %v3048_v47 = vmul.f32 %v5126_v59, %v3043_v56 }
0x1d83   :  { %v3045_v61 = vpop.permute.xlu1 %3044 }
0x1d84   :  { %v3049_v52 = vmul.f32 %v5128_v63, %v3045_v61  ;;  %v3099_v63 = vld [vmem:[%s6750_s1 + $0xb] sm:$0x1] }
0x1d86   :  { %v3056_v58 = vrot.slane %v3049_v52, 7 }
0x1d88   :  { %v3057_v29 = vsel %vm228_vm1, %v3056_v58, %v3048_v47 }
0x1d89   :  { %3058 = vrot.lane.b32.xlu0 %v3057_v29, %s5270_s30 }
0x1d90   :  { %v3052_v30 = vpop.permute.xlu1 %3051 }
0x1d91   :  { %vm3053_vm2 = vcmp.eq.s32.totalorder %v3052_v30, 1 }
0x1d94   :  { %v3067_v27 = vpop.permute.xlu1 %3066 }
0x1d95   :  { %v6297_v13 = vsel %vm3053_vm2, %v3067_v27, %v6253_v62 }
0x1d96   :  { %v3165_v57 = vrot.slane %v6297_v13, 1 }
0x1dfb   :  { %v3059_v15 = vpop.permute.xlu0 %3058 }
0x1dfc   :  { %v6271_v53 = vsel %vm3053_vm2, %v3059_v15, %v6227_v23  ;;  %v3070_v31 = vsel %vm3053_vm2, %v3059_v15, 0.0 }
0x1dfd   :  { %v3078_v12 = vrot.slane %v3070_v31, %v5373_v51  ;;  %v3100_v14 = vpack.c.bf16 %v6271_v53, %v6271_v53 }
0x1dff   :  { %v3079_v59 = vcombine.high %v3078_v12, %v3078_v12  ;;  %v3086_v55 = vrot.slane %v3078_v12, %v5373_v51  ;;  %4721 = vmatmul.mubr.msk.bf16.vlgmr.msra.gmra.mxu1 %vm62_vm4, %v3100_v14 }
0x1e00   :  { %4733 = vmatpush3.bf16.msra.mxu1 %v6051_v28  ;;  %4736 = vmatprep.mubr.msk.bf16.mxu1 %vm5267_vm0, %v5266_v0 }
0x1e01   :  { %v3093_v23 = vrot.slane %v3079_v59, %v5373_v51  ;;  %3096 = vst.msk [vmem:[#allocation3 + $0x2] sm:$0x1] %vm336_vm5, %v3086_v55  ;;  %4734 = vmatprep.subr.bf16.mxu1 %v5266_v0 }
0x1e03   :  { %3097 = vst.msk [vmem:[#allocation3 + $0xa] sm:$0x1] %vm336_vm5, %v3093_v23 }
0x1e04   :  { %4735 = vmatpush3.bf16.msra.mxu1 %v6057_v39 }
0x1e05   :  { %4748 = vmatprep.subr.bf16.mxu1 %v5266_v0 }
0x1ebf   :  { %v3138_v46 = vpop.f32.mrf.mxu1 }
0x1ec0   :  { %v3145_v18 = vrot.slane %v3138_v46, 1  ;;  %v3148_v42 = vadd.f32 %v3138_v46, %v3098_v11 }
0x1ec1   :  { %v4722_v16 = vpop.f32.mrf.mxu1 }
0x1ec2   :  { %v3149_v17 = vadd.f32 %v3145_v18, %v3099_v63  ;;  %5133 = vtanh.f32 %v3148_v42  ;;  %v4439_v35 = vmul.f32 -1.442695, %v3148_v42 }
0x1ec3   :  { %v3141_v9 = vpop.f32.mrf.mxu1 }
0x1ec4   :  { %5135 = vtanh.f32 %v3149_v17  ;;  %v4440_v19 = vmul.f32 -1.442695, %v3149_v17 }
0x1ec5   :  { %v4723_v3 = vpop.f32.mrf.mxu1  ;;  %5137 = vpow2.f32 %v4439_v35 }
0x1ec6   :  { %5139 = vpow2.f32 %v4440_v19 }
0x1ecf   :  { %v5134_v24 = vpop.eup %5133 }
0x1ed0   :  { %3176 = vrot.lane.b32.xlu1 %v5134_v24, %s5269_s29 }
0x1ed1   :  { %v5136_v25 = vpop.eup %5135 }
0x1ed2   :  { %3178 = vrot.lane.b32.xlu0 %v5136_v25, %s5269_s29  ;;  %v5138_v56 = vpop.eup %5137 }
0x1ed3   :  { %v5140_v61 = vpop.eup %5139  ;;  %v3156_v52 = vadd.f32 1.0, %v5138_v56 }
0x1ed4   :  { %3166 = vrot.lane.b32.xlu1 %v6297_v13, %s5270_s30  ;;  %v3157_v47 = vadd.f32 1.0, %v5140_v61 }
0x1ed5   :  { %5141 = vrcp.f32 %v3156_v52 }
0x1ed6   :  { %3168 = vrot.lane.b32.xlu0 %v3165_v57, %s5270_s30  ;;  %5143 = vrcp.f32 %v3157_v47 }
0x1ee2   :  { %v5142_v62 = vpop.eup %5141 }
0x1ee3   :  { %v5144_v30 = vpop.eup %5143 }
0x1f42   :  { %v3177_v58 = vpop.permute.xlu1 %3176 }
0x1f43   :  { %v3182_v29 = vmul.f32 %v5142_v62, %v3177_v58  ;;  %v3254_v58 = vld [vmem:[%s6750_s1 + $0x4] sm:$0x1] }
0x1f44   :  { %v3179_v15 = vpop.permute.xlu0 %3178 }
0x1f45   :  { %3186 = vrot.lane.b32.xlu1 %v3182_v29, %s5270_s30  ;;  %v3183_v31 = vmul.f32 %v5144_v30, %v3179_v15 }
0x1f46   :  { %v3167_v12 = vpop.permute.xlu1 %3166 }
0x1f47   :  { %3188 = vrot.lane.b32.xlu0 %v3183_v31, %s5270_s30  ;;  %v3172_v14 = vmul.f32 %v5142_v62, %v3167_v12 }
0x1f48   :  { %v3169_v59 = vpop.permute.xlu0 %3168 }
0x1f49   :  { %v3173_v11 = vmul.f32 %v5144_v30, %v3169_v59 }
0x1fb7   :  { %v3187_v55 = vpop.permute.xlu1 %3186 }
0x1fb8   :  { %v3192_v23 = vadd.f32 %v3187_v55, %v3172_v14 }
0x1fb9   :  { %v3189_v63 = vpop.permute.xlu0 %3188 }
0x1fba   :  { %5145 = vtanh.f32 %v3192_v23  ;;  %v3193_v46 = vadd.f32 %v3189_v63, %v3173_v11 }
0x1fbc   :  { %5147 = vtanh.f32 %v3193_v46  ;;  %v3220_v16 = vrot.slane %v3193_v46, 7 }
0x1fbe   :  { %v3221_v17 = vsel %vm228_vm1, %v3220_v16, %v3192_v23 }
0x1fc7   :  { %v5146_v18 = vpop.eup %5145 }
0x1fc8   :  { %3198 = vrot.lane.b32.xlu1 %v5146_v18, %s5269_s29 }
0x1fc9   :  { %v5148_v42 = vpop.eup %5147 }
0x1fca   :  { %3200 = vrot.lane.b32.xlu0 %v5148_v42, %s5269_s29 }
0x1fce   :  { %3207 = vperm.xlu0 %4829, %v5632_v33  }
0x1fd2   :  { %3222 = vrot.lane.b32.xlu0 %v3221_v17, %s5271_s9 }
0x203a   :  { %v3199_v9 = vpop.permute.xlu1 %3198 }
0x203b   :  { %v3204_v27 = vmul.f32 %v5142_v62, %v3199_v9 }
0x203c   :  { %v3201_v3 = vpop.permute.xlu0 %3200 }
0x203d   :  { %v3205_v24 = vmul.f32 %v5144_v30, %v3201_v3 }
0x203f   :  { %v3212_v25 = vrot.slane %v3205_v24, 7 }
0x2041   :  { %v3213_v57 = vsel %vm228_vm1, %v3212_v25, %v3204_v27 }
0x2042   :  { %3214 = vrot.lane.b32.xlu1 %v3213_v57, %s5270_s30 }
0x2049   :  { %v3208_v35 = vpop.permute.xlu0 %3207 }
0x204a   :  { %vm3209_vm6 = vcmp.eq.s32.totalorder %v3208_v35, 1 }
0x204d   :  { %v3223_v55 = vpop.permute.xlu0 %3222 }
0x204e   :  { %v6341_v11 = vsel %vm3209_vm6, %v3223_v55, %v6297_v13 }
0x204f   :  { %v3321_v63 = vrot.slane %v6341_v11, 1 }
0x20b4   :  { %v3215_v19 = vpop.permute.xlu1 %3214 }
0x20b5   :  { %v6315_v56 = vsel %vm3209_vm6, %v3215_v19, %v6271_v53  ;;  %v3226_v33 = vsel %vm3209_vm6, %v3215_v19, 0.0 }
0x20b6   :  { %v3234_v61 = vrot.slane %v3226_v33, %v5373_v51  ;;  %v3256_v52 = vpack.c.bf16 %v6315_v56, %v6315_v56 }
0x20b8   :  { %v3235_v47 = vcombine.high %v3234_v61, %v3234_v61  ;;  %v3242_v62 = vrot.slane %v3234_v61, %v5373_v51  ;;  %4729 = vmatmul.mubr.msk.bf16.vlgmr.msra.gmra.mxu0 %vm62_vm4, %v3256_v52 }
0x20b9   :  { %4741 = vmatpush3.bf16.msra.mxu0 %v6051_v28  ;;  %4744 = vmatprep.mubr.msk.bf16.mxu0 %vm5267_vm0, %v5266_v0  ;;  %v3255_v28 = vld [vmem:[%s6750_s1 + $0xc] sm:$0x1] }
0x20ba   :  { %v3249_v53 = vrot.slane %v3235_v47, %v5373_v51  ;;  %3252 = vst.msk [vmem:[#allocation3 + $0x3] sm:$0x1] %vm336_vm5, %v3242_v62  ;;  %4742 = vmatprep.subr.bf16.mxu0 %v5266_v0 }
0x20bc   :  { %3253 = vst.msk [vmem:[#allocation3 + $0xb] sm:$0x1] %vm336_vm5, %v3249_v53 }
0x20bd   :  { %4743 = vmatpush3.bf16.msra.mxu0 %v6057_v39 }
0x20be   :  { %4756 = vmatprep.subr.bf16.mxu0 %v5266_v0 }
0x2178   :  { %v3294_v29 = vpop.f32.mrf.mxu0 }
0x2179   :  { %v3301_v30 = vrot.slane %v3294_v29, 1  ;;  %v3304_v15 = vadd.f32 %v3294_v29, %v3254_v58 }
0x217a   :  { %v4730_v31 = vpop.f32.mrf.mxu0 }
0x217b   :  { %v3305_v12 = vadd.f32 %v3301_v30, %v3255_v28  ;;  %5149 = vtanh.f32 %v3304_v15  ;;  %v4442_v46 = vmul.f32 -1.442695, %v3304_v15 }
0x217c   :  { %v3297_v14 = vpop.f32.mrf.mxu0 }
0x217d   :  { %5151 = vtanh.f32 %v3305_v12  ;;  %v4443_v18 = vmul.f32 -1.442695, %v3305_v12 }
0x217e   :  { %v4731_v59 = vpop.f32.mrf.mxu0  ;;  %5153 = vpow2.f32 %v4442_v46 }
0x217f   :  { %5155 = vpow2.f32 %v4443_v18 }
0x2188   :  { %v5150_v39 = vpop.eup %5149 }
0x2189   :  { %3332 = vrot.lane.b32.xlu0 %v5150_v39, %s5269_s29 }
0x218a   :  { %v5152_v23 = vpop.eup %5151 }
0x218b   :  { %3334 = vrot.lane.b32.xlu1 %v5152_v23, %s5269_s29  ;;  %v5154_v42 = vpop.eup %5153 }
0x218c   :  { %v5156_v16 = vpop.eup %5155  ;;  %v3312_v17 = vadd.f32 1.0, %v5154_v42 }
0x218d   :  { %3322 = vrot.lane.b32.xlu0 %v6341_v11, %s5270_s30  ;;  %v3313_v9 = vadd.f32 1.0, %v5156_v16 }
0x218e   :  { %5157 = vrcp.f32 %v3312_v17  ;;  %v5242_v17 = vld [vmem:[%s6752_s3 + $0x30] ss:$20 sps:$4 sm:$0xff]  }
0x218f   :  { %3324 = vrot.lane.b32.xlu1 %v3321_v63, %s5270_s30  ;;  %5159 = vrcp.f32 %v3313_v9  ;;  %v5243_v9 = vld [vmem:[%s6752_s3 + $0x8] ss:$20 sps:$4 sm:$0xff]  }
0x219b   :  { %v5158_v13 = vpop.eup %5157 }
0x219c   :  { %v5160_v27 = vpop.eup %5159 }
0x21fb   :  { %v3333_v3 = vpop.permute.xlu0 %3332 }
0x21fc   :  { %v3338_v24 = vmul.f32 %v5158_v13, %v3333_v3  ;;  %v3411_v3 = vld [vmem:[%s6750_s1 + $0xd] sm:$0x1] }
0x21fd   :  { %v3335_v25 = vpop.permute.xlu1 %3334 }
0x21fe   :  { %3342 = vrot.lane.b32.xlu0 %v3338_v24, %s5270_s30  ;;  %v3339_v57 = vmul.f32 %v5160_v27, %v3335_v25 }
0x21ff   :  { %v3323_v35 = vpop.permute.xlu0 %3322 }
0x2200   :  { %3344 = vrot.lane.b32.xlu1 %v3339_v57, %s5270_s30  ;;  %v3328_v19 = vmul.f32 %v5158_v13, %v3323_v35 }
0x2201   :  { %v3325_v33 = vpop.permute.xlu1 %3324 }
0x2202   :  { %v3329_v47 = vmul.f32 %v5160_v27, %v3325_v33 }
0x2270   :  { %v3343_v61 = vpop.permute.xlu0 %3342 }
0x2271   :  { %v3348_v52 = vadd.f32 %v3343_v61, %v3328_v19 }
0x2272   :  { %v3345_v62 = vpop.permute.xlu1 %3344 }
0x2273   :  { %5161 = vtanh.f32 %v3348_v52  ;;  %v3349_v53 = vadd.f32 %v3345_v62, %v3329_v47 }
0x2275   :  { %5163 = vtanh.f32 %v3349_v53  ;;  %v3376_v29 = vrot.slane %v3349_v53, 7 }
0x2277   :  { %v3377_v30 = vsel %vm228_vm1, %v3376_v29, %v3348_v52 }
0x2280   :  { %v5162_v58 = vpop.eup %5161 }
0x2281   :  { %3354 = vrot.lane.b32.xlu0 %v5162_v58, %s5269_s29 }
0x2282   :  { %v5164_v28 = vpop.eup %5163 }
0x2283   :  { %3356 = vrot.lane.b32.xlu1 %v5164_v28, %s5269_s29 }
0x2287   :  { %3363 = vperm.xlu1 %4830, %v5760_v48  }
0x228b   :  { %3378 = vrot.lane.b32.xlu1 %v3377_v30, %s5271_s9 }
0x22f3   :  { %v3355_v15 = vpop.permute.xlu0 %3354 }
0x22f4   :  { %v3360_v14 = vmul.f32 %v5158_v13, %v3355_v15  ;;  %v3410_v13 = vld [vmem:[%s6750_s1 + $0x5] sm:$0x1] }
0x22f5   :  { %v3357_v31 = vpop.permute.xlu1 %3356 }
0x22f6   :  { %v3361_v12 = vmul.f32 %v5160_v27, %v3357_v31 }
0x22f8   :  { %v3368_v59 = vrot.slane %v3361_v12, 7 }
0x22fa   :  { %v3369_v39 = vsel %vm228_vm1, %v3368_v59, %v3360_v14 }
0x22fb   :  { %3370 = vrot.lane.b32.xlu0 %v3369_v39, %s5270_s30 }
0x2302   :  { %v3364_v55 = vpop.permute.xlu1 %3363 }
0x2303   :  { %vm3365_vm12 = vcmp.eq.s32.totalorder %v3364_v55, 1 }
0x2306   :  { %v3379_v52 = vpop.permute.xlu1 %3378 }
0x2307   :  { %v6389_v62 = vsel %vm3365_vm12, %v3379_v52, %v6341_v11 }
0x2308   :  { %v3477_v53 = vrot.slane %v6389_v62, 1 }
0x236d   :  { %v3371_v23 = vpop.permute.xlu0 %3370 }
0x236e   :  { %v6359_v63 = vsel %vm3365_vm12, %v3371_v23, %v6315_v56  ;;  %v3382_v48 = vsel %vm3365_vm12, %v3371_v23, 0.0 }
0x236f   :  { %v3390_v46 = vrot.slane %v3382_v48, %v5373_v51  ;;  %v3412_v18 = vpack.c.bf16 %v6359_v63, %v6359_v63 }
0x2371   :  { %v3391_v42 = vcombine.high %v3390_v46, %v3390_v46  ;;  %v3398_v16 = vrot.slane %v3390_v46, %v5373_v51  ;;  %4737 = vmatmul.mubr.msk.bf16.vlgmr.msra.gmra.mxu1 %vm62_vm4, %v3412_v18 }
0x2372   :  { %4749 = vmatpush3.bf16.msra.mxu1 %v5242_v17  ;;  %4752 = vmatprep.mubr.msk.bf16.mxu1 %vm5267_vm0, %v5266_v0 }
0x2373   :  { %v3405_v56 = vrot.slane %v3391_v42, %v5373_v51  ;;  %3408 = vst.msk [vmem:[#allocation3 + $0x4] sm:$0x1] %vm336_vm5, %v3398_v16  ;;  %4750 = vmatprep.subr.bf16.mxu1 %v5266_v0 }
0x2375   :  { %3409 = vst.msk [vmem:[#allocation3 + $0xc] sm:$0x1] %vm336_vm5, %v3405_v56 }
0x2376   :  { %4751 = vmatpush3.bf16.msra.mxu1 %v5243_v9 }
0x2377   :  { %4768 = vmatprep.subr.bf16.mxu1 %v5266_v0 }
0x2431   :  { %v3450_v24 = vpop.f32.mrf.mxu1 }
0x2432   :  { %v3457_v27 = vrot.slane %v3450_v24, 1  ;;  %v3460_v25 = vadd.f32 %v3450_v24, %v3410_v13 }
0x2433   :  { %v4738_v57 = vpop.f32.mrf.mxu1 }
0x2434   :  { %v3461_v35 = vadd.f32 %v3457_v27, %v3411_v3  ;;  %5165 = vtanh.f32 %v3460_v25  ;;  %v4445_v58 = vmul.f32 -1.442695, %v3460_v25 }
0x2435   :  { %v3453_v19 = vpop.f32.mrf.mxu1 }
0x2436   :  { %5167 = vtanh.f32 %v3461_v35  ;;  %v4446_v28 = vmul.f32 -1.442695, %v3461_v35 }
0x2437   :  { %v4739_v33 = vpop.f32.mrf.mxu1  ;;  %5169 = vpow2.f32 %v4445_v58 }
0x2438   :  { %5171 = vpow2.f32 %v4446_v28 }
0x2441   :  { %v5166_v61 = vpop.eup %5165 }
0x2442   :  { %3488 = vrot.lane.b32.xlu1 %v5166_v61, %s5269_s29 }
0x2443   :  { %v5168_v47 = vpop.eup %5167 }
0x2444   :  { %3490 = vrot.lane.b32.xlu0 %v5168_v47, %s5269_s29  ;;  %v5170_v29 = vpop.eup %5169 }
0x2445   :  { %v5172_v30 = vpop.eup %5171  ;;  %v3468_v15 = vadd.f32 1.0, %v5170_v29 }
0x2446   :  { %3478 = vrot.lane.b32.xlu1 %v6389_v62, %s5270_s30  ;;  %v3469_v31 = vadd.f32 1.0, %v5172_v30 }
0x2447   :  { %5173 = vrcp.f32 %v3468_v15  ;;  %v3567_v15 = vld [vmem:[%s6750_s1 + $0xe] sm:$0x1] }
0x2448   :  { %3480 = vrot.lane.b32.xlu0 %v3477_v53, %s5270_s30  ;;  %5175 = vrcp.f32 %v3469_v31 }
0x2454   :  { %v5174_v11 = vpop.eup %5173 }
0x2455   :  { %v5176_v59 = vpop.eup %5175 }
0x24b4   :  { %v3489_v12 = vpop.permute.xlu1 %3488 }
0x24b5   :  { %v3494_v14 = vmul.f32 %v5174_v11, %v3489_v12 }
0x24b6   :  { %v3491_v39 = vpop.permute.xlu0 %3490 }
0x24b7   :  { %3498 = vrot.lane.b32.xlu1 %v3494_v14, %s5270_s30  ;;  %v3495_v55 = vmul.f32 %v5176_v59, %v3491_v39 }
0x24b8   :  { %v3479_v23 = vpop.permute.xlu1 %3478 }
0x24b9   :  { %3500 = vrot.lane.b32.xlu0 %v3495_v55, %s5270_s30  ;;  %v3484_v48 = vmul.f32 %v5174_v11, %v3479_v23 }
0x24ba   :  { %v3481_v46 = vpop.permute.xlu0 %3480 }
0x24bb   :  { %v3485_v16 = vmul.f32 %v5176_v59, %v3481_v46 }
0x2529   :  { %v3499_v18 = vpop.permute.xlu1 %3498 }
0x252a   :  { %v3504_v42 = vadd.f32 %v3499_v18, %v3484_v48 }
0x252b   :  { %v3501_v17 = vpop.permute.xlu0 %3500 }
0x252c   :  { %5177 = vtanh.f32 %v3504_v42  ;;  %v3505_v56 = vadd.f32 %v3501_v17, %v3485_v16 }
0x252e   :  { %5179 = vtanh.f32 %v3505_v56  ;;  %v3532_v3 = vrot.slane %v3505_v56, 7 }
0x2530   :  { %v3533_v24 = vsel %vm228_vm1, %v3532_v3, %v3504_v42 }
0x2539   :  { %v5178_v9 = vpop.eup %5177 }
0x253a   :  { %3510 = vrot.lane.b32.xlu1 %v5178_v9, %s5269_s29 }
0x253b   :  { %v5180_v13 = vpop.eup %5179 }
0x253c   :  { %3512 = vrot.lane.b32.xlu0 %v5180_v13, %s5269_s29 }
0x2540   :  { %3519 = vperm.xlu0 %4829, %v5756_v4  }
0x2544   :  { %3534 = vrot.lane.b32.xlu0 %v3533_v24, %s5271_s9 }
0x25ac   :  { %v3511_v27 = vpop.permute.xlu1 %3510 }
0x25ad   :  { %v3516_v35 = vmul.f32 %v5174_v11, %v3511_v27 }
0x25ae   :  { %v3513_v25 = vpop.permute.xlu0 %3512 }
0x25af   :  { %v3517_v57 = vmul.f32 %v5176_v59, %v3513_v25 }
0x25b1   :  { %v3524_v19 = vrot.slane %v3517_v57, 7 }
0x25b3   :  { %v3525_v33 = vsel %vm228_vm1, %v3524_v19, %v3516_v35 }
0x25b4   :  { %3526 = vrot.lane.b32.xlu1 %v3525_v33, %s5270_s30 }
0x25bb   :  { %v3520_v61 = vpop.permute.xlu0 %3519 }
0x25bc   :  { %vm3521_vm13 = vcmp.eq.s32.totalorder %v3520_v61, 1 }
0x25bf   :  { %v3535_v48 = vpop.permute.xlu0 %3534 }
0x25c0   :  { %v6429_v18 = vsel %vm3521_vm13, %v3535_v48, %v6389_v62 }
0x25c1   :  { %v3633_v42 = vrot.slane %v6429_v18, 1 }
0x2626   :  { %v3527_v52 = vpop.permute.xlu1 %3526 }
0x2627   :  { %v6407_v47 = vsel %vm3521_vm13, %v3527_v52, %v6359_v63  ;;  %v3538_v4 = vsel %vm3521_vm13, %v3527_v52, 0.0  ;;  %v3566_v63 = vld [vmem:[%s6750_s1 + $0x6] sm:$0x1] }
0x2628   :  { %v3546_v53 = vrot.slane %v3538_v4, %v5373_v51  ;;  %v3568_v58 = vpack.c.bf16 %v6407_v47, %v6407_v47 }
0x262a   :  { %v3547_v28 = vcombine.high %v3546_v53, %v3546_v53  ;;  %v3554_v29 = vrot.slane %v3546_v53, %v5373_v51  ;;  %4745 = vmatmul.mubr.msk.bf16.vlgmr.msra.gmra.mxu0 %vm62_vm4, %v3568_v58 }
0x262b   :  { %4764 = vmatprep.mubr.msk.bf16.mxu0 %vm5267_vm0, %v5266_v0 }
0x262c   :  { %v3561_v30 = vrot.slane %v3547_v28, %v5373_v51  ;;  %3564 = vst.msk [vmem:[#allocation3 + $0x5] sm:$0x1] %vm336_vm5, %v3554_v29 }
0x262e   :  { %3565 = vst.msk [vmem:[#allocation3 + $0xd] sm:$0x1] %vm336_vm5, %v3561_v30 }
0x26ea   :  { %v3606_v31 = vpop.f32.mrf.mxu0 }
0x26eb   :  { %v3613_v11 = vrot.slane %v3606_v31, 1  ;;  %v3616_v12 = vadd.f32 %v3606_v31, %v3566_v63  ;;  %v2363_v63 = vld [vmem:[%s6749_s0 + $0x8] ss:$0 sm:$0xff] }
0x26ec   :  { %v4746_v14 = vpop.f32.mrf.mxu0 }
0x26ed   :  { %v3617_v59 = vadd.f32 %v3613_v11, %v3567_v15  ;;  %5181 = vtanh.f32 %v3616_v12  ;;  %v4448_v16 = vmul.f32 -1.442695, %v3616_v12  ;;  %v2413_v15 = vadd.f32 %v6198_v6, %v2363_v63  ;;  %v3722_v63 = vld [vmem:[%s6750_s1 + $0x7] sm:$0x1] }
0x26ee   :  { %v3609_v39 = vpop.f32.mrf.mxu0 }
0x26ef   :  { %5183 = vtanh.f32 %v3617_v59  ;;  %v4449_v17 = vmul.f32 -1.442695, %v3617_v59  ;;  %v4425_v14 = vmul.f32 -1.442695, %v2413_v15  ;;  %v2410_v59 = vrot.slane %v6198_v6, 1 }
0x26f0   :  { %v4747_v55 = vpop.f32.mrf.mxu0  ;;  %5185 = vpow2.f32 %v4448_v16  ;;  %v2364_v39 = vld [vmem:[%s6749_s0 + $0x18] ss:$0 sm:$0xff] }
0x26f1   :  { %5187 = vpow2.f32 %v4449_v17  ;;  %v2414_v55 = vadd.f32 %v2410_v59, %v2364_v39 }
0x26fa   :  { %v5182_v23 = vpop.eup %5181 }
0x26fb   :  { %3644 = vrot.lane.b32.xlu0 %v5182_v23, %s5269_s29 }
0x26fc   :  { %v5184_v46 = vpop.eup %5183 }
0x26fd   :  { %3646 = vrot.lane.b32.xlu1 %v5184_v46, %s5269_s29  ;;  %v5186_v56 = vpop.eup %5185 }
0x26fe   :  { %v5188_v9 = vpop.eup %5187  ;;  %v3624_v13 = vadd.f32 1.0, %v5186_v56 }
0x26ff   :  { %3634 = vrot.lane.b32.xlu0 %v6429_v18, %s5270_s30  ;;  %v3625_v3 = vadd.f32 1.0, %v5188_v9 }
0x2700   :  { %5189 = vrcp.f32 %v3624_v13 }
0x2701   :  { %3636 = vrot.lane.b32.xlu1 %v3633_v42, %s5270_s30  ;;  %5191 = vrcp.f32 %v3625_v3 }
0x270d   :  { %v5190_v62 = vpop.eup %5189 }
0x270e   :  { %v5192_v25 = vpop.eup %5191 }
0x276d   :  { %v3645_v24 = vpop.permute.xlu0 %3644 }
0x276e   :  { %v3650_v27 = vmul.f32 %v5190_v62, %v3645_v24 }
0x276f   :  { %v3647_v57 = vpop.permute.xlu1 %3646 }
0x2770   :  { %3654 = vrot.lane.b32.xlu0 %v3650_v27, %s5270_s30  ;;  %v3651_v35 = vmul.f32 %v5192_v25, %v3647_v57 }
0x2771   :  { %v3635_v19 = vpop.permute.xlu0 %3634 }
0x2772   :  { %3656 = vrot.lane.b32.xlu1 %v3651_v35, %s5270_s30  ;;  %v3640_v33 = vmul.f32 %v5190_v62, %v3635_v19 }
0x2773   :  { %v3637_v61 = vpop.permute.xlu1 %3636 }
0x2774   :  { %v3641_v53 = vmul.f32 %v5192_v25, %v3637_v61 }
0x27e2   :  { %v3655_v52 = vpop.permute.xlu0 %3654 }
0x27e3   :  { %v3660_v4 = vadd.f32 %v3655_v52, %v3640_v33 }
0x27e4   :  { %v3657_v58 = vpop.permute.xlu1 %3656 }
0x27e5   :  { %5193 = vtanh.f32 %v3660_v4  ;;  %v3661_v28 = vadd.f32 %v3657_v58, %v3641_v53 }
0x27e7   :  { %5195 = vtanh.f32 %v3661_v28  ;;  %v3688_v29 = vrot.slane %v3661_v28, 7 }
0x27e8   :  { %5197 = vtanh.f32 %v2413_v15  ;;  %v3723_v15 = vld [vmem:[%s6750_s1 + $0xf] sm:$0x1] }
0x27e9   :  { %v3689_v30 = vsel %vm228_vm1, %v3688_v29, %v3660_v4  ;;  %5199 = vpow2.f32 %v4425_v14 }
0x27ea   :  { %5201 = vtanh.f32 %v2414_v55 }
0x27f2   :  { %v5194_v31 = vpop.eup %5193 }
0x27f3   :  { %3666 = vrot.lane.b32.xlu0 %v5194_v31, %s5269_s29 }
0x27f4   :  { %v5196_v11 = vpop.eup %5195 }
0x27f5   :  { %3668 = vrot.lane.b32.xlu1 %v5196_v11, %s5269_s29  ;;  %v5198_v12 = vpop.eup %5197 }
0x27f6   :  { %v5200_v46 = vpop.eup %5199 }
0x27f7   :  { %v5202_v6 = vpop.eup %5201 }
0x27f9   :  { %3675 = vperm.xlu1 %4830, %v5627_v32  }
0x27fd   :  { %2240 = vrot.lane.b32.xlu1 %v6151_v10, %s5271_s9  ;;  %v2494_v10 = vadd.f32 1.0, %v5200_v46 }
0x27ff   :  { %5203 = vrcp.f32 %v2494_v10 }
0x2801   :  { %2514 = vrot.lane.b32.xlu1 %v5198_v12, %s5269_s29 }
0x2865   :  { %v3667_v23 = vpop.permute.xlu0 %3666 }
0x2866   :  { %v3672_v42 = vmul.f32 %v5190_v62, %v3667_v23  ;;  %v6460_v62 = vpop.eup %5203 }
0x2867   :  { %v3669_v48 = vpop.permute.xlu1 %3668 }
0x2868   :  { %v3673_v32 = vmul.f32 %v5192_v25, %v3669_v48  ;;  %v4426_v25 = vmul.f32 -1.442695, %v2414_v55 }
0x286a   :  { %v3680_v16 = vrot.slane %v3673_v32, 7  ;;  %5205 = vpow2.f32 %v4426_v25 }
0x286c   :  { %v3681_v17 = vsel %vm228_vm1, %v3680_v16, %v3672_v42 }
0x286d   :  { %3682 = vrot.lane.b32.xlu0 %v3681_v17, %s5270_s30 }
0x2871   :  { %2516 = vrot.lane.b32.xlu0 %v5202_v6, %s5269_s29 }
0x2874   :  { %v3676_v56 = vpop.permute.xlu1 %3675 }
0x2875   :  { %vm3677_vm2 = vcmp.eq.s32.totalorder %v3676_v56, 1 }
0x2877   :  { %v5206_v57 = vpop.eup %5205 }
0x2878   :  { %v2241_v9 = vpop.permute.xlu1 %2240  ;;  %v2495_v35 = vadd.f32 1.0, %v5206_v57 }
0x2879   :  { %v2243_v13 = vsel %vm545_vm7, %v2241_v9, %v6122_v38  ;;  %vm3916_vm7 = vcmask 523264  }
0x287a   :  { %v2503_v3 = vrot.slane %v2243_v13, 1  ;;  %2504 = vrot.lane.b32.xlu1 %v2243_v13, %s5270_s30  ;;  %5207 = vrcp.f32 %v2495_v35 }
0x287c   :  { %2506 = vrot.lane.b32.xlu0 %v2503_v3, %s5270_s30  ;;  %v2515_v24 = vpop.permute.xlu1 %2514 }
0x287d   :  { %v2520_v27 = vmul.f32 %v6460_v62, %v2515_v24 }
0x287f   :  { %2524 = vrot.lane.b32.xlu1 %v2520_v27, %s5270_s30 }
0x2887   :  { %v6469_v4 = vpop.eup %5207 }
0x28df   :  { %v3683_v19 = vpop.permute.xlu0 %3682 }
0x28e0   :  { %v3685_v38 = vsel %vm3677_vm2, %v3683_v19, %v6407_v47  ;;  %v3694_v33 = vsel %vm3677_vm2, %v3683_v19, 0.0 }
0x28e1   :  { %v3702_v61 = vrot.slane %v3694_v33, %v5373_v51  ;;  %v3724_v52 = vpack.c.bf16 %v3685_v38, %v3685_v38 }
0x28e3   :  { %v3703_v53 = vcombine.high %v3702_v61, %v3702_v61  ;;  %v3710_v58 = vrot.slane %v3702_v61, %v5373_v51  ;;  %v2517_v28 = vpop.permute.xlu0 %2516  ;;  %4753 = vmatmul.mubr.msk.bf16.vlgmr.msra.gmra.mxu1 %vm62_vm4, %v3724_v52 }
0x28e4   :  { %v2521_v29 = vmul.f32 %v6469_v4, %v2517_v28  ;;  %4772 = vmatprep.mubr.msk.bf16.mxu1 %vm5267_vm0, %v5266_v0 }
0x28e5   :  { %v3717_v47 = vrot.slane %v3703_v53, %v5373_v51  ;;  %3720 = vst.msk [vmem:[#allocation3 + $0x6] sm:$0x1] %vm336_vm5, %v3710_v58 }
0x28e6   :  { %2526 = vrot.lane.b32.xlu0 %v2521_v29, %s5270_s30 }
0x28e7   :  { %3721 = vst.msk [vmem:[#allocation3 + $0xe] sm:$0x1] %vm336_vm5, %v3717_v47 }
0x28ea   :  { %3690 = vrot.lane.b32.xlu0 %v3689_v30, %s5271_s9 }
0x28ec   :  { %v2505_v9 = vpop.permute.xlu1 %2504 }
0x28ed   :  { %v2510_v56 = vmul.f32 %v6460_v62, %v2505_v9 }
0x28ee   :  { %v2507_v55 = vpop.permute.xlu0 %2506 }
0x28ef   :  { %v2511_v25 = vmul.f32 %v6469_v4, %v2507_v55 }
0x28f1   :  { %v2525_v24 = vpop.permute.xlu1 %2524 }
0x2958   :  { %v2527_v48 = vpop.permute.xlu0 %2526 }
0x2959   :  { %v2531_v57 = vadd.f32 %v2527_v48, %v2511_v25  ;;  %v346_v48 = vrot.slane %v5535_v43, %v5373_v51  ;;  %v968_v43 = vsel %vm951_vm8, %v5773_v7, 0.0 }
0x295c   :  { %v3691_v46 = vpop.permute.xlu0 %3690 }
0x295d   :  { %v3693_v42 = vsel %vm3677_vm2, %v3691_v46, %v6429_v18  ;;  %v2530_v18 = vadd.f32 %v2525_v24, %v2510_v56 }
0x295e   :  { %v3789_v16 = vrot.slane %v3693_v42, 1 }
0x29a3   :  { %v3762_v31 = vpop.f32.mrf.mxu1 }
0x29a4   :  { %v3769_v11 = vrot.slane %v3762_v31, 1  ;;  %v3772_v12 = vadd.f32 %v3762_v31, %v3722_v63 }
0x29a5   :  { %v4754_v14 = vpop.f32.mrf.mxu1 }
0x29a6   :  { %v3773_v59 = vadd.f32 %v3769_v11, %v3723_v15  ;;  %5209 = vtanh.f32 %v3772_v12  ;;  %v4451_v10 = vmul.f32 -1.442695, %v3772_v12 }
0x29a7   :  { %v3765_v39 = vpop.f32.mrf.mxu1 }
0x29a8   :  { %5211 = vtanh.f32 %v3773_v59  ;;  %v4452_v17 = vmul.f32 -1.442695, %v3773_v59 }
0x29a9   :  { %v4755_v23 = vpop.f32.mrf.mxu1  ;;  %5213 = vpow2.f32 %v4451_v10 }
0x29aa   :  { %5215 = vpow2.f32 %v4452_v17  ;;  %v1003_v17 = vrot.slane %v968_v43, %v5373_v51 }
0x29ac   :  { %v1004_v56 = vcombine.high %v1003_v17, %v1003_v17 }
0x29b3   :  { %v5210_v30 = vpop.eup %5209 }
0x29b4   :  { %3800 = vrot.lane.b32.xlu0 %v5210_v30, %s5269_s29  ;;  %v640_v30 = vsel %vm623_vm14, %v5645_v34, 0.0 }
0x29b5   :  { %v5212_v32 = vpop.eup %5211 }
0x29b6   :  { %3802 = vrot.lane.b32.xlu1 %v5212_v32, %s5269_s29  ;;  %v5214_v6 = vpop.eup %5213  ;;  %v675_v32 = vrot.slane %v640_v30, %v5373_v51 }
0x29b7   :  { %v5216_v13 = vpop.eup %5215  ;;  %v3780_v3 = vadd.f32 1.0, %v5214_v6 }
0x29b8   :  { %3790 = vrot.lane.b32.xlu0 %v3693_v42, %s5270_s30  ;;  %v3781_v27 = vadd.f32 1.0, %v5216_v13  ;;  %v354_v42 = vrot.slane %v346_v48, %v5373_v51  ;;  %v683_v10 = vrot.slane %v675_v32, %v5373_v51  ;;  %v676_v9 = vcombine.high %v675_v32, %v675_v32  ;;  %v4839_v32 = vld [vmem:[%s6753_s4 + $0x8] sm:$0xff]  }
0x29b9   :  { %5217 = vrcp.f32 %v3780_v3  ;;  %v1011_v13 = vrot.slane %v1003_v17, %v5373_v51 }
0x29ba   :  { %3792 = vrot.lane.b32.xlu1 %v3789_v16, %s5270_s30  ;;  %5219 = vrcp.f32 %v3781_v27  ;;  %v347_v16 = vcombine.high %v346_v48, %v346_v48  ;;  %v1612_v27 = vsel %vm1201_vm15, %v5965_v60, 0.0  ;;  %v4837_v48 = vld [vmem:[%s6753_s4 + $0x18] sm:$0xff]  }
0x29bb   :  { %5221 = vtanh.f32 %v2530_v18  ;;  %4757 = vmatpush3.bf16.msra.mxu0 %v4837_v48 }
0x29bc   :  { %5223 = vtanh.f32 %v2531_v57  ;;  %v361_v7 = vrot.slane %v347_v16, %v5373_v51  ;;  %v1647_v57 = vrot.slane %v1612_v27, %v5373_v51  ;;  %4758 = vmatprep.subr.bf16.mxu0 %v5266_v0  ;;  %v1855_v27 = vsel %vm951_vm8, %v5893_v54, 0.0 }
0x29bd   :  { %v1936_v20 = vrot.slane %v1855_v27, %v5373_v51 }
0x29c6   :  { %v6495_v35 = vpop.eup %5217 }
0x29c7   :  { %v6498_v33 = vpop.eup %5219 }
0x29c8   :  { %v5222_v53 = vpop.eup %5221 }
0x29c9   :  { %v5224_v58 = vpop.eup %5223 }
0x2a26   :  { %v3801_v19 = vpop.permute.xlu0 %3800 }
0x2a27   :  { %v3806_v38 = vmul.f32 %v6495_v35, %v3801_v19 }
0x2a28   :  { %v3803_v61 = vpop.permute.xlu1 %3802 }
0x2a29   :  { %3810 = vrot.lane.b32.xlu0 %v3806_v38, %s5270_s30  ;;  %v3807_v52 = vmul.f32 %v6498_v33, %v3803_v61  ;;  %v1655_v61 = vrot.slane %v1647_v57, %v5373_v51 }
0x2a2a   :  { %v3791_v28 = vpop.permute.xlu0 %3790 }
0x2a2b   :  { %3812 = vrot.lane.b32.xlu1 %v3807_v52, %s5270_s30  ;;  %v3796_v29 = vmul.f32 %v6495_v35, %v3791_v28  ;;  %v1963_v52 = vrot.slane %v1928_v1, %v5373_v51 }
0x2a2c   :  { %v3793_v47 = vpop.permute.xlu1 %3792 }
0x2a2d   :  { %2536 = vrot.lane.b32.xlu0 %v5222_v53, %s5269_s29  ;;  %v3797_v31 = vmul.f32 %v6498_v33, %v3793_v47  ;;  %v2279_v47 = vrot.slane %v2244_v45, %v5373_v51  ;;  %v1964_v37 = vcombine.high %v1963_v52, %v1963_v52  ;;  %v1937_v45 = vcombine.high %v1936_v20, %v1936_v20 }
0x2a2f   :  { %2538 = vrot.lane.b32.xlu1 %v5224_v58, %s5269_s29  ;;  %v1648_v58 = vcombine.high %v1647_v57, %v1647_v57  ;;  %v1944_v57 = vrot.slane %v1936_v20, %v5373_v51 }
0x2a31   :  { %v1662_v5 = vrot.slane %v1648_v58, %v5373_v51 }
0x2a9b   :  { %v3811_v63 = vpop.permute.xlu0 %3810 }
0x2a9c   :  { %v3816_v15 = vadd.f32 %v3811_v63, %v3796_v29  ;;  %v1971_v29 = vrot.slane %v1963_v52, %v5373_v51 }
0x2a9d   :  { %v3813_v11 = vpop.permute.xlu1 %3812 }
0x2a9e   :  { %5225 = vtanh.f32 %v3816_v15  ;;  %v3817_v12 = vadd.f32 %v3813_v11, %v3797_v31  ;;  %v2287_v31 = vrot.slane %v2279_v47, %v5373_v51 }
0x2a9f   :  { %v2537_v14 = vpop.permute.xlu0 %2536 }
0x2aa0   :  { %5227 = vtanh.f32 %v3817_v12  ;;  %v2542_v55 = vmul.f32 %v6460_v62, %v2537_v14  ;;  %v1978_v12 = vrot.slane %v1964_v37, %v5373_v51  ;;  %v2280_v14 = vcombine.high %v2279_v47, %v2279_v47 }
0x2aa1   :  { %v2539_v59 = vpop.permute.xlu1 %2538  ;;  %v1951_v47 = vrot.slane %v1937_v45, %v5373_v51 }
0x2aa2   :  { %v2543_v39 = vmul.f32 %v6469_v4, %v2539_v59  ;;  %v6519_v4 = vsub.s32 0, %v5367_v49  ;;  %v1296_v49 = vsel %vm1279_vm9, %v5876_v44, 0.0  ;;  %v690_v44 = vrot.slane %v676_v9, %v5373_v51 }
0x2aa3   :  { %v1331_v3 = vrot.slane %v1296_v49, %v5373_v51 }
0x2aa4   :  { %v2546_v23 = vrot.slane %v2543_v39, 7  ;;  %v365_v6 = vrot.slane %v354_v42, %v6519_v4  ;;  %v694_v24 = vrot.slane %v683_v10, %v6519_v4  ;;  %v369_v18 = vrot.slane %v361_v7, %v6519_v4  ;;  %v6617_v7 = vld [vmem:[%s6752_s3 + $0x38] ss:$20 sps:$4 sm:$0xff]  }
0x2aa5   :  { %v1339_v25 = vrot.slane %v1331_v3, %v5373_v51  ;;  %v1022_v19 = vrot.slane %v1011_v13, %v6519_v4  ;;  %v1332_v60 = vcombine.high %v1331_v3, %v1331_v3  ;;  %v698_v38 = vrot.slane %v690_v44, %v6519_v4  ;;  %4769 = vmatpush3.bf16.msra.mxu1 %v6617_v7  ;;  %v6632_v44 = vld [vmem:[%s6752_s3 + $0x10] ss:$20 sps:$4 sm:$0xff]  }
0x2aa6   :  { %v2547_v46 = vsel %vm228_vm1, %v2546_v23, %v2542_v55  ;;  %v1666_v63 = vrot.slane %v1655_v61, %v6519_v4  ;;  %v1982_v11 = vrot.slane %v1971_v29, %v6519_v4  ;;  %v1670_v59 = vrot.slane %v1662_v5, %v6519_v4  ;;  %4770 = vmatprep.subr.bf16.mxu1 %v5266_v0 }
0x2aa7   :  { %2548 = vrot.lane.b32.xlu1 %v2547_v46, %s5270_s30  ;;  %v1350_v53 = vrot.slane %v1339_v25, %v6519_v4  ;;  %v1346_v2 = vrot.slane %v1332_v60, %v5373_v51  ;;  %v2298_v39 = vrot.slane %v2287_v31, %v6519_v4  ;;  %v2294_v55 = vrot.slane %v2280_v14, %v5373_v51  ;;  %v4838_v46 = vld [vmem:[%s6753_s4 + $0x10] sm:$0xff]  }
0x2aa8   :  { %v1986_v23 = vrot.slane %v1978_v12, %v6519_v4  ;;  %4759 = vmatpush3.bf16.msra.mxu0 %v4838_v46  ;;  %v2252_v13 = vrot.slane %v2171_v50, %v5373_v51  ;;  %v1539_v25 = vsel %vm1279_vm9, %v5803_v22, 0.0 }
0x2aa9   :  { %v1354_v15 = vrot.slane %v1346_v2, %v6519_v4  ;;  %v2302_v30 = vrot.slane %v2294_v55, %v6519_v4  ;;  %4760 = vmatprep.subr.bf16.mxu0 %v5266_v0  ;;  %4771 = vmatpush3.bf16.msra.mxu1 %v6632_v44 }
0x2aaa   :  { %v2260_v54 = vrot.slane %v2252_v13, %v5373_v51  ;;  %4776 = vmatprep.subr.bf16.mxu1 %v5266_v0 }
0x2aab   :  { %v5226_v62 = vpop.eup %5225 }
0x2aac   :  { %3822 = vrot.lane.b32.xlu1 %v5226_v62, %s5269_s29  ;;  %4761 = vmatpush3.bf16.msra.mxu0 %v4839_v32  ;;  %v2487_v62 = vsel %vm294_vm10, %v6086_v8, 0.0  ;;  %vm4145_vm10 = vcmask 1043456  }
0x2aad   :  { %v5228_v34 = vpop.eup %5227  ;;  %4762 = vmatprep.subr.bf16.mxu0 %v5266_v0  ;;  %v2559_v10 = vrot.slane %v2487_v62, %v5373_v51 }
0x2aae   :  { %3824 = vrot.lane.b32.xlu0 %v5228_v34, %s5269_s29  ;;  %v4840_v34 = vld [vmem:[%s6753_s4] sm:$0xff]  }
0x2aaf   :  { %v2567_v3 = vrot.slane %v2559_v10, %v5373_v51  ;;  %v2560_v1 = vcombine.high %v2559_v10, %v2559_v10 }
0x2ab0   :  { %370 = vrot.lane.b32.xlu1 %v365_v6, %s5270_s30  ;;  %4763 = vmatpush3.bf16.msra.mxu0 %v4840_v34 }
0x2ab1   :  { %4782 = vmatprep.subr.bf16.mxu0 %v5266_v0  ;;  %v2574_v61 = vrot.slane %v2560_v1, %v5373_v51 }
0x2ab2   :  { %3831 = vperm.xlu0 %4829, %v5515_v26   ;;  %v1018_v26 = vrot.slane %v1004_v56, %v5373_v51 }
0x2ab4   :  { %699 = vrot.lane.b32.xlu1 %v694_v24, %s5270_s30  ;;  %v1026_v28 = vrot.slane %v1018_v26, %v6519_v4 }
0x2ab6   :  { %372 = vrot.lane.b32.xlu0 %v369_v18, %s5270_s30 }
0x2ab8   :  { %1027 = vrot.lane.b32.xlu1 %v1022_v19, %s5270_s30 }
0x2aba   :  { %701 = vrot.lane.b32.xlu0 %v698_v38, %s5270_s30  ;;  %v2253_v38 = vcombine.high %v2252_v13, %v2252_v13 }
0x2abc   :  { %1355 = vrot.lane.b32.xlu1 %v1350_v53, %s5270_s30  ;;  %v2267_v2 = vrot.slane %v2253_v38, %v5373_v51 }
0x2abe   :  { %1029 = vrot.lane.b32.xlu0 %v1026_v28, %s5270_s30 }
0x2ac0   :  { %1671 = vrot.lane.b32.xlu1 %v1666_v63, %s5270_s30 }
0x2ac2   :  { %1357 = vrot.lane.b32.xlu0 %v1354_v15, %s5270_s30 }
0x2ac4   :  { %1987 = vrot.lane.b32.xlu1 %v1982_v11, %s5270_s30 }
0x2ac6   :  { %1673 = vrot.lane.b32.xlu0 %v1670_v59, %s5270_s30 }
0x2ac8   :  { %2303 = vrot.lane.b32.xlu1 %v2298_v39, %s5270_s30 }
0x2aca   :  { %1989 = vrot.lane.b32.xlu0 %v1986_v23, %s5270_s30 }
0x2ace   :  { %2305 = vrot.lane.b32.xlu0 %v2302_v30, %s5270_s30 }
0x2b19   :  { %v2549_v42 = vpop.permute.xlu1 %2548 }
0x2b1a   :  { %v2551_v43 = vsel %vm224_vm3, %v2549_v42, 0.0  ;;  %vm376_vm3 = vcmask 516352  }
0x2b1b   :  { %v2586_v16 = vrot.slane %v2551_v43, %v5373_v51 }
0x2b1d   :  { %v2587_v17 = vcombine.high %v2586_v16, %v2586_v16  ;;  %v2594_v6 = vrot.slane %v2586_v16, %v5373_v51 }
0x2b1e   :  { %v3823_v49 = vpop.permute.xlu1 %3822 }
0x2b1f   :  { %v2601_v41 = vrot.slane %v2587_v17, %v5373_v51  ;;  %v2605_v8 = vrot.slane %v2594_v6, %v6519_v4 }
0x2b20   :  { %v3825_v9 = vpop.permute.xlu0 %3824 }
0x2b21   :  { %v3829_v40 = vmul.f32 %v6498_v33, %v3825_v9  ;;  %2610 = vrot.lane.b32.xlu1 %v2605_v8, %s5270_s30  ;;  %v2609_v24 = vrot.slane %v2601_v41, %v6519_v4  ;;  %v3828_v33 = vmul.f32 %v6495_v35, %v3823_v49  ;;  %v1620_v35 = vrot.slane %v1539_v25, %v5373_v51 }
0x2b22   :  { %v371_v36 = vpop.permute.xlu1 %370 }
0x2b23   :  { %377 = vst.msk [vmem:[#allocation2 + $0x7] sm:$0x1] %vm376_vm3, %v371_v36  ;;  %v3836_v56 = vrot.slane %v3829_v40, 7  ;;  %2612 = vrot.lane.b32.xlu0 %v2609_v24, %s5270_s30  ;;  %v1628_v22 = vrot.slane %v1620_v35, %v5373_v51  ;;  %v1621_v29 = vcombine.high %v1620_v35, %v1620_v35 }
0x2b24   :  { %2577 = vst.msk [vmem:[#allocation2 + $0x7] sm:$0x1] %vm336_vm5, %v2567_v3 }
0x2b25   :  { %v3837_v4 = vsel %vm228_vm1, %v3836_v56, %v3828_v33  ;;  %v1635_v37 = vrot.slane %v1621_v29, %v5373_v51 }
0x2b26   :  { %v700_v18 = vpop.permute.xlu1 %699  ;;  %3838 = vrot.lane.b32.xlu1 %v3837_v4, %s5270_s30 }
0x2b27   :  { %705 = vst.msk [vmem:[#allocation2 + $0x6] sm:$0x1] %vm376_vm3, %v700_v18  ;;  %3913 = vrot.lane.b32.xlu0 %v6655_v21, %s5269_s29 }
0x2b28   :  { %2270 = vst.msk [vmem:[#allocation2 + $0x6] sm:$0x1] %vm336_vm5, %v2260_v54 }
0x2b2a   :  { %v1028_v19 = vpop.permute.xlu1 %1027 }
0x2b2b   :  { %1033 = vst.msk [vmem:[#allocation2 + $0x5] sm:$0x1] %vm376_vm3, %v1028_v19 }
0x2b2c   :  { %1954 = vst.msk [vmem:[#allocation2 + $0x5] sm:$0x1] %vm336_vm5, %v1944_v57 }
0x2b2d   :  { %v3832_v26 = vpop.permute.xlu0 %3831 }
0x2b2e   :  { %v1356_v60 = vpop.permute.xlu1 %1355  ;;  %vm3833_vm1 = vcmp.eq.s32.totalorder %v3832_v26, 1 }
0x2b2f   :  { %1361 = vst.msk [vmem:[#allocation2 + $0x4] sm:$0x1] %vm376_vm3, %v1356_v60 }
0x2b30   :  { %1638 = vst.msk [vmem:[#allocation2 + $0x4] sm:$0x1] %vm336_vm5, %v1628_v22 }
0x2b31   :  { %v373_v52 = vpop.permute.xlu0 %372 }
0x2b32   :  { %v1672_v53 = vpop.permute.xlu1 %1671  ;;  %378 = vst.msk [vmem:[#allocation2 + $0xf] sm:$0x1] %vm376_vm3, %v373_v52 }
0x2b33   :  { %1677 = vst.msk [vmem:[#allocation2 + $0x3] sm:$0x1] %vm376_vm3, %v1672_v53 }
0x2b34   :  { %2578 = vst.msk [vmem:[#allocation2 + $0xf] sm:$0x1] %vm336_vm5, %v2574_v61 }
0x2b35   :  { %v702_v58 = vpop.permute.xlu0 %701 }
0x2b36   :  { %v1988_v28 = vpop.permute.xlu1 %1987  ;;  %706 = vst.msk [vmem:[#allocation2 + $0xe] sm:$0x1] %vm376_vm3, %v702_v58 }
0x2b37   :  { %1993 = vst.msk [vmem:[#allocation2 + $0x2] sm:$0x1] %vm376_vm3, %v1988_v28 }
0x2b38   :  { %2271 = vst.msk [vmem:[#allocation2 + $0xe] sm:$0x1] %vm336_vm5, %v2267_v2 }
0x2b39   :  { %v1030_v63 = vpop.permute.xlu0 %1029 }
0x2b3a   :  { %v2304_v5 = vpop.permute.xlu1 %2303  ;;  %1034 = vst.msk [vmem:[#allocation2 + $0xd] sm:$0x1] %vm376_vm3, %v1030_v63 }
0x2b3b   :  { %2309 = vst.msk [vmem:[#allocation2 + $0x1] sm:$0x1] %vm376_vm3, %v2304_v5 }
0x2b3c   :  { %1955 = vst.msk [vmem:[#allocation2 + $0xd] sm:$0x1] %vm336_vm5, %v1951_v47 }
0x2b3d   :  { %v1358_v15 = vpop.permute.xlu0 %1357 }
0x2b3e   :  { %1362 = vst.msk [vmem:[#allocation2 + $0xc] sm:$0x1] %vm376_vm3, %v1358_v15 }
0x2b3f   :  { %1639 = vst.msk [vmem:[#allocation2 + $0xc] sm:$0x1] %vm336_vm5, %v1635_v37 }
0x2b41   :  { %v1674_v31 = vpop.permute.xlu0 %1673 }
0x2b42   :  { %1678 = vst.msk [vmem:[#allocation2 + $0xb] sm:$0x1] %vm376_vm3, %v1674_v31 }
0x2b45   :  { %v1990_v11 = vpop.permute.xlu0 %1989 }
0x2b46   :  { %1994 = vst.msk [vmem:[#allocation2 + $0xa] sm:$0x1] %vm376_vm3, %v1990_v11 }
0x2b49   :  { %v2306_v12 = vpop.permute.xlu0 %2305 }
0x2b4a   :  { %2310 = vst.msk [vmem:[#allocation2 + $0x9] sm:$0x1] %vm376_vm3, %v2306_v12 }
0x2b93   :  { %v2611_v14 = vpop.permute.xlu1 %2610 }
0x2b94   :  { %2616 = vst.msk [vmem:[#allocation2] sm:$0x1] %vm376_vm3, %v2611_v14 }
0x2b95   :  { %v2613_v59 = vpop.permute.xlu0 %2612 }
0x2b96   :  { %2617 = vst.msk [vmem:[#allocation2 + $0x8] sm:$0x1] %vm376_vm3, %v2613_v59 }
0x2b98   :  { %v3839_v39 = vpop.permute.xlu1 %3838 }
0x2b99   :  { %v3841_v55 = vsel %vm3833_vm1, %v3839_v39, 0.0  ;;  %v3914_v10 = vpop.permute.xlu0 %3913 }
0x2b9a   :  { %v3849_v23 = vrot.slane %v3841_v55, %v5373_v51 }
0x2b9b   :  { %v3869_v46 = vld [vmem:[#allocation2] sm:$0xff] }
0x2b9c   :  { %v3850_v48 = vcombine.high %v3849_v23, %v3849_v23  ;;  %v3857_v30 = vrot.slane %v3849_v23, %v5373_v51 }
0x2b9d   :  { %v3870_v32 = vld [vmem:[#allocation2 + $0x8] sm:$0xff] }
0x2b9e   :  { %v3864_v42 = vrot.slane %v3850_v48, %v5373_v51  ;;  %3867 = vst.msk [vmem:[#allocation3 + $0x7] sm:$0x1] %vm336_vm5, %v3857_v30  ;;  %v3871_v62 = vpack.c.bf16 %v3870_v32, %v3869_v46 }
0x2ba0   :  { %3868 = vst.msk [vmem:[#allocation3 + $0xf] sm:$0x1] %vm336_vm5, %v3864_v42  ;;  %4765 = vmatmul.mubr.msk.bf16.vlgmr.msra.gmra.mxu0 %vm3916_vm7, %v3871_v62  ;;  %vm4114_vm5 = vcmask 64512  }
0x2ba1   :  { %4784 = vmatprep.mubr.msk.bf16.mxu0 %vm5267_vm0, %v5266_v0 }
0x2ba5   :  { %v3872_v43 = vld [vmem:[#allocation3] sm:$0xff] }
0x2ba7   :  { %v3873_v16 = vld [vmem:[#allocation3 + $0x8] sm:$0xff] }
0x2ba8   :  { %v3874_v34 = vpack.c.bf16 %v3873_v16, %v3872_v43 }
0x2baa   :  { %4773 = vmatmul.mubr.msk.bf16.vlgmr.msra.gmra.mxu1 %vm62_vm4, %v3874_v34  ;;  %v4843_v34 = vld [vmem:[%s6752_s3 + $0x34] ss:$20 sps:$4 sm:$0xff]  }
0x2bab   :  { %4778 = vmatprep.mubr.msk.bf16.mxu1 %vm5267_vm0, %v5266_v0 }
0x2c60   :  { %v3954_v17 = vpop.f32.mrf.mxu0 }
0x2c61   :  { %v3955_v51 = vadd.f32 %v3954_v17, %v3914_v10 }
0x2c62   :  { %v4766_v6 = vpop.f32.mrf.mxu0 }
0x2c63   :  { %v4020_v49 = vpack.c.bf16 %v3955_v51, %v3955_v51 }
0x2c64   :  { %v3957_v50 = vpop.f32.mrf.mxu0 }
0x2c65   :  { %v4026_v41 = vsel %vm62_vm4, %v4020_v49, 0  ;;  %v3958_v8 = vadd.f32 %v3957_v50, %v3914_v10  ;;  %v4844_v10 = vld [vmem:[%s6752_s3 + $0xc] ss:$20 sps:$4 sm:$0xff]   ;;  %s5274_s3 = smov [#allocation4]  }
0x2c66   :  { %v4767_v9 = vpop.f32.mrf.mxu0  ;;  %4777 = vmatpush3.bf16.xpose.msra.mxu1 %v4026_v41  ;;  %s4366_s27 = sshll.u32 %s5274_s3, 4  ;;  %s4367_s27 = int_to_ptr.vmem [resolvable:$true] %s4366_s27 }
0x2c67   :  { %v4021_v13 = vpack.c.bf16 %v3958_v8, %v3958_v8  ;;  %4788 = vmatprep.subr.bf16.mxu1 %v5266_v0  ;;  %p5249_p1 = scmp.lt.s32.totalorder %s4367_s27, %s4367_s27 }
0x2c69   :  { %v4072_v3 = vsel %vm62_vm4, %v4021_v13, 0 }
0x2c6a   :  { %v4011_v40 = vpop.f32.mrf.mxu1  ;;  %4783 = vmatpush3.bf16.xpose.msra.mxu0 %v4072_v3 }
0x2c6b   :  { %v6697_v36 = vadd.f32 %v6655_v21, %v4011_v40  ;;  %4794 = vmatprep.subr.bf16.mxu0 %v5266_v0 }
0x2c6c   :  { %v4774_v24 = vpop.f32.mrf.mxu1 }
0x2c6d   :  { %v4018_v27 = vpack.c.bf16 %v6697_v36, %v6697_v36 }
0x2c6e   :  { %v4014_v33 = vpop.f32.mrf.mxu1 }
0x2c6f   :  { %v6703_v56 = vadd.f32 %v6655_v21, %v4014_v33  ;;  %4779 = vmatmul.mubr.msk.bf16.vlgmr.msra.gmra.mxu1 %vm62_vm4, %v4018_v27 }
0x2c70   :  { %v4775_v20 = vpop.f32.mrf.mxu1  ;;  %4790 = vmatprep.mubr.msk.bf16.mxu1 %vm5267_vm0, %v5266_v0 }
0x2c71   :  { %v4019_v54 = vpack.c.bf16 %v6703_v56, %v6703_v56 }
0x2c73   :  { %4785 = vmatmul.mubr.msk.bf16.vlgmr.msra.gmra.mxu0 %vm62_vm4, %v4019_v54 }
0x2c74   :  { %4796 = vmatprep.mubr.msk.bf16.mxu0 %vm5267_vm0, %v5266_v0 }
0x2d2f   :  { %v4062_v4 = vpop.f32.mrf.mxu1 }
0x2d30   :  { %v4115_v18 = vsel %vm4114_vm5, %v4062_v4, -inf }
0x2d31   :  { %4116 = vmax.xlane.f32.xlu1 %v4115_v18  ;;  %v4780_v25 = vpop.f32.mrf.mxu1 }
0x2d33   :  { %v4065_v35 = vpop.f32.mrf.mxu1  ;;  %v4108_v57 = vpop.f32.mrf.mxu0 }
0x2d34   :  { %v4118_v19 = vsel %vm4114_vm5, %v4108_v57, -inf }
0x2d35   :  { %v4781_v21 = vpop.f32.mrf.mxu1  ;;  %4119 = vmax.xlane.f32.xlu0 %v4118_v19  ;;  %v4786_v22 = vpop.f32.mrf.mxu0 }
0x2d37   :  { %v4111_v1 = vpop.f32.mrf.mxu0 }
0x2d39   :  { %v4787_v26 = vpop.f32.mrf.mxu0 }
0x2dba   :  { %v4117_v60 = vpop.xlane.xlu1 %4116 }
0x2dbb   :  { %v4121_v38 = vsub.f32 %v4062_v4, %v4117_v60 }
0x2dbd   :  { %v4123_v61 = vmul.f32 1.442695, %v4121_v38 }
0x2dbe   :  { %v4120_v52 = vpop.xlane.xlu0 %4119 }
0x2dbf   :  { %5229 = vpow2.f32 %v4123_v61  ;;  %v4122_v53 = vsub.f32 %v4108_v57, %v4120_v52 }
0x2dc1   :  { %v4125_v45 = vmul.f32 1.442695, %v4122_v53 }
0x2dc3   :  { %5231 = vpow2.f32 %v4125_v45 }
0x2dcc   :  { %v5230_v2 = vpop.eup %5229 }
0x2dcd   :  { %v4127_v58 = vsel %vm4114_vm5, %v5230_v2, 0.0 }
0x2dce   :  { %4128 = vadd.xlane.f32.xlu0 %v4127_v58 }
0x2dd0   :  { %v5232_v28 = vpop.eup %5231 }
0x2dd1   :  { %v4130_v29 = vsel %vm4114_vm5, %v5232_v28, 0.0 }
0x2dd2   :  { %4131 = vadd.xlane.f32.xlu1 %v4130_v29 }
0x2de3   :  { %4190 = vrot.lane.b32.xlu1 %v4021_v13, %s5271_s9 }
0x2de4   :  { %4140 = vrot.lane.b32.xlu0 %v4020_v49, %s5271_s9 }
0x2de7   :  { %4241 = vrot.lane.b32.xlu1 %v6617_v7, %s5269_s29 }
0x2de8   :  { %4239 = vrot.lane.b32.xlu0 %v6632_v44, %s5269_s29 }
0x2e57   :  { %v4129_v47 = vpop.xlane.xlu0 %4128 }
0x2e58   :  { %5233 = vrcp.f32 %v4129_v47 }
0x2e5b   :  { %v4132_v63 = vpop.xlane.xlu1 %4131  ;;  %v4141_v5 = vpop.permute.xlu0 %4140 }
0x2e5c   :  { %5235 = vrcp.f32 %v4132_v63  ;;  %v4147_v37 = vsel %vm4145_vm10, %v4141_v5, 0 }
0x2e5d   :  { %4789 = vmatpush3.bf16.msra.mxu1 %v4147_v37 }
0x2e5e   :  { %4800 = vmatprep.subr.bf16.mxu1 %v5266_v0 }
0x2e5f   :  { %v4191_v15 = vpop.permute.xlu1 %4190  ;;  %v4240_v55 = vpop.permute.xlu0 %4239 }
0x2e60   :  { %v4196_v31 = vsel %vm4145_vm10, %v4191_v15, 0 }
0x2e61   :  { %4795 = vmatpush3.bf16.msra.mxu0 %v4196_v31 }
0x2e62   :  { %4808 = vmatprep.subr.bf16.mxu0 %v5266_v0 }
0x2e63   :  { %v4242_v14 = vpop.permute.xlu1 %4241 }
0x2e65   :  { %v5234_v11 = vpop.eup %5233 }
0x2e66   :  { %v4134_v7 = vmul.f32 %v5234_v11, %v5230_v2 }
0x2e68   :  { %v4137_v12 = vpack.c.bf16 %v4134_v7, %v4134_v7 }
0x2e69   :  { %v5236_v44 = vpop.eup %5235 }
0x2e6a   :  { %4791 = vmatmul.mubr.msk.bf16.vlgmr.msra.gmra.mxu1 %vm4114_vm5, %v4137_v12  ;;  %v4136_v59 = vmul.f32 %v5236_v44, %v5232_v28 }
0x2e6b   :  { %4801 = vmatpush3.bf16.msra.mxu1 %v4242_v14  ;;  %4804 = vmatprep.mubr.msk.bf16.mxu1 %vm5267_vm0, %v5266_v0 }
0x2e6c   :  { %v4138_v39 = vpack.c.bf16 %v4136_v59, %v4136_v59  ;;  %4802 = vmatprep.subr.bf16.mxu1 %v5266_v0 }
0x2e6e   :  { %4797 = vmatmul.mubr.msk.bf16.vlgmr.msra.gmra.mxu0 %vm4114_vm5, %v4138_v39 }
0x2e6f   :  { %4812 = vmatprep.mubr.msk.bf16.mxu0 %vm5267_vm0, %v5266_v0  ;;  %4803 = vmatpush3.bf16.msra.mxu1 %v4240_v55 }
0x2e70   :  { %4809 = vmatpush3.bf16.msra.mxu0 %v4843_v34 }
0x2e71   :  { %4810 = vmatprep.subr.bf16.mxu0 %v5266_v0 }
0x2e74   :  { %4811 = vmatpush3.bf16.msra.mxu0 %v4844_v10 }
0x2f2a   :  { %v4183_v23 = vpop.f32.mrf.mxu1 }
0x2f2c   :  { %v4792_v48 = vpop.f32.mrf.mxu1 }
0x2f2e   :  { %v4186_v30 = vpop.f32.mrf.mxu1  ;;  %v4232_v46 = vpop.f32.mrf.mxu0 }
0x2f2f   :  { %v4238_v32 = vpack.c.bf16 %v4232_v46, %v4183_v23 }
0x2f30   :  { %v4793_v42 = vpop.f32.mrf.mxu1  ;;  %v4798_v62 = vpop.f32.mrf.mxu0 }
0x2f31   :  { %4805 = vmatmul.mubr.msk.bf16.vlgmr.msra.gmra.mxu1 %vm62_vm4, %v4238_v32 }
0x2f32   :  { %v4235_v43 = vpop.f32.mrf.mxu0 }
0x2f34   :  { %v4799_v16 = vpop.f32.mrf.mxu0 }
0x2ff1   :  { %v4282_v17 = vpop.f32.mrf.mxu1 }
0x2ff2   :  { %4291 = vrot.lane.b32.xlu1 %v4282_v17, %s5270_s30 }
0x2ff3   :  { %v4806_v51 = vpop.f32.mrf.mxu1 }
0x2ff5   :  { %v4285_v6 = vpop.f32.mrf.mxu1 }
0x2ff6   :  { %4293 = vrot.lane.b32.xlu0 %v4285_v6, %s5270_s30  ;;  %s5244_s30 = scalar_lea.vmem %s4367_s27, 256 }
0x2ff7   :  { %v4807_v49 = vpop.f32.mrf.mxu1  ;;  %p5245_p0 = scmp.ne.s32.totalorder %s4367_s27, %s5244_s30  ;;  %p5250_p2 = scmp.lt.s32.totalorder %s5244_s30, %s5244_s30 }
0x2ff9   :  { %p5251_p3 = por %p5250_p2, %p5249_p1 }
0x2ffb   :  { %p5252_p4 = pnand %p5251_p3, %p5245_p0 }
0x3064   :  { %v4292_v50 = vpop.permute.xlu1 %4291 }
0x3065   :  { %v4297_v8 = vadd.f32 %v4292_v50, %v6697_v36 }
0x3068   :  { %v4294_v41 = vpop.permute.xlu0 %4293 }
0x3069   :  { %v4298_v9 = vadd.f32 %v4294_v41, %v6703_v56 }
0x306b   :  { %v4299_v13 = vpack.c.bf16 %v4298_v9, %v4297_v8 }
0x306d   :  { %4301 = vrot.lane.b32.xlu1 %v4299_v13, %s5271_s9 }
0x30df   :  { %v4302_v3 = vpop.permute.xlu1 %4301 }
0x30e0   :  { %4813 = vmatmul.mubr.msk.bf16.vlgmr.msra.gmra.mxu0 %vm62_vm4, %v4302_v3 }
0x31a0   :  { %v4352_v0 = vpop.f32.mrf.mxu0 }
0x31a1   :  { %4359 = vst [vmem:[#allocation4] sm:$0xff] %v4352_v0 }
0x31a2   :  { %v4814_v40 = vpop.f32.mrf.mxu0 }
0x31a4   :  { %v4355_v24 = vpop.f32.mrf.mxu0 }
0x31a5   :  { %4360 = vst [vmem:[#allocation4 + $0x8] sm:$0xff] %v4355_v24 }
0x31a6   :  { %v4815_v27 = vpop.f32.mrf.mxu0 }
0x31a7   :  { %5255 = shalt.err (!%p5252_p4)
}
0x31a8   :  { %s5275_s9 = smov 128   ;;  %s5276_s28 = smov 8  }
0x31a9   :  { %4372 = dma.vmem_to_hbm [thread:$0]  %s4367_s27, 256, %s6755_s6, [#allocation5], %s5275_s9, %s5275_s9, %s5276_s28  }
0x31aa   :  { %5264 = dma.done.wait [#allocation5], 256  }
0x31ab   :  { %5265 = vsyncadd [#allocation5], 4294967040 }
0x31ac   :  { %4376 = vsyncpa [#allocation5], 1 }

</bundles_post_ra>
